<compile_context>
chip_gen: v6e
topology: v6e:2x2x1
jax: 0.10.0
libtpu: 0.0.40
codegen_flags: <defaults>
</compile_context>

<pallas_src>
import math
from functools import partial

import jax
import jax.numpy as jnp
from jax import lax
from jax.experimental import pallas as pl
from jax.experimental.pallas import tpu as pltpu


# ----------------------------- helpers -----------------------------

def _round_up(x, m):
    return ((x + m - 1) // m) * m


def calculate_conv2d_padding(stride, kernel_size, d_in, d_out, dilation=1):
    if isinstance(stride, int):
        stride = (stride, stride)
    if isinstance(kernel_size, int):
        kernel_size = (kernel_size, kernel_size)
    if isinstance(dilation, int):
        dilation = (dilation, dilation)
    h_in, w_in = d_in
    h_out, w_out = d_out
    h_k, w_k = kernel_size
    h_s, w_s = stride
    h_d, w_d = dilation
    padding_h = math.ceil(((h_out - 1) * h_s + h_k - h_in + (h_k - 1) * (h_d - 1)) / 2)
    padding_w = math.ceil(((w_out - 1) * w_s + w_k - w_in + (w_k - 1) * (w_d - 1)) / 2)
    assert padding_h >= 0 and padding_w >= 0
    return (padding_h, padding_w)


def _fold_bn(w, b, gamma, beta, mean, var, eps=1e-5):
    """Fold eval-mode BatchNorm2d into conv weight (Cout, Cin, kh, kw) / bias."""
    scale = gamma / jnp.sqrt(var + eps)
    w_f = w * scale[:, None, None, None]
    b_f = (b - mean) * scale + beta
    return w_f, b_f


def init_resblock2d_params(key, in_channel, kernel_size=3):
    mid = in_channel // 2
    ks = [jax.random.fold_in(key, i) for i in range(10)]
    p = {
        "w1": jax.random.normal(ks[0], (mid, in_channel, 1, 1), jnp.float32) * 0.2,
        "b1": jax.random.normal(ks[1], (mid,), jnp.float32) * 0.1,
        "bn1_gamma": 1.0 + 0.1 * jax.random.normal(ks[2], (mid,), jnp.float32),
        "bn1_beta": 0.1 * jax.random.normal(ks[3], (mid,), jnp.float32),
        "bn1_mean": 0.05 * jax.random.normal(ks[4], (mid,), jnp.float32),
        "bn1_var": jnp.abs(1.0 + 0.1 * jax.random.normal(ks[5], (mid,), jnp.float32)),
        "w2": jax.random.normal(
            ks[6], (in_channel, mid, kernel_size, kernel_size), jnp.float32) * 0.2,
        "b2": jax.random.normal(ks[7], (in_channel,), jnp.float32) * 0.1,
        "bn2_gamma": 1.0 + 0.1 * jax.random.normal(ks[8], (in_channel,), jnp.float32),
        "bn2_beta": 0.1 * jax.random.normal(ks[9], (in_channel,), jnp.float32),
        "bn2_mean": jnp.zeros((in_channel,), jnp.float32),
        "bn2_var": jnp.ones((in_channel,), jnp.float32),
    }
    return p


def _vmem_capacity_bytes():
    try:
        info = pltpu.get_tpu_info()
        cap = getattr(info, "vmem_capacity_bytes", None)
        if cap:
            return int(cap)
    except Exception:
        pass
    return 64 << 20                      # conservative fallback (v7x per-core)


def _use_wide_mxu():
    """True on 256-wide MXU generations (v6e/v7x) where depth-128 dots run at
    half rate -> pack the K kx-taps into one deeper contraction."""
    try:
        kind = jax.devices()[0].device_kind.lower()
    except Exception:
        return False
    return ("v6" in kind) or ("v7" in kind) or ("7x" in kind) or ("trillium" in kind)


def _choose_tile_h(H, Wp2, Cin_p, Cout_p, Mp, K, fuse, budget_bytes, fixed_bytes):
    """Tile height (multiple of 8 image rows) from a VMEM byte budget.
    Per-position accounting: bf16 in/out double-buffered, bf16 h scratch,
    bf16 tap slab (fused path), f32 conv1/acc temporaries."""
    per_pos = 4 * Cin_p + 12 * Cout_p + 8 * Mp + (2 * K * Mp if fuse else 0)
    per_row = Wp2 * per_pos
    avail = max(budget_bytes - fixed_bytes, 8 * per_row)
    th = max(8, (int(avail // per_row) // 8) * 8)
    th = min(th, _round_up(H, 8))
    return int(th)


def _const_spec(shape, index_map):
    """Constant-index (weight/bias) blocks: request single buffering when the
    installed Pallas supports pipeline_mode; fall back silently otherwise."""
    buffered = getattr(pl, "Buffered", None)
    if buffered is not None:
        try:
            return pl.BlockSpec(shape, index_map,
                                pipeline_mode=buffered(buffer_count=1))
        except Exception:
            pass
    return pl.BlockSpec(shape, index_map)


# ----------------------------- fused Pallas kernel -----------------------------

def _resblock_fused_kernel(xm_ref, xf_ref, w1_ref, w2_ref, b2_ref, o_ref,
                           h_ref, *scratch, ROWS, FR, Wp2, K, dil, Mp,
                           Cout_p, s, fuse):
    # ---- conv1 (1x1) + folded BN + ReLU, directly on the bf16 input blocks.
    # The bias is carried by the "ones" input channel, so zero-padded
    # positions produce exactly h = 0 (true zero padding for conv2).
    hm = jnp.dot(xm_ref[...], w1_ref[...], preferred_element_type=jnp.float32)
    h_ref[pl.ds(0, ROWS), :] = jnp.maximum(hm, 0.0).astype(jnp.bfloat16)
    hf = jnp.dot(xf_ref[...], w1_ref[...], preferred_element_type=jnp.float32)
    h_ref[pl.ds(ROWS, FR), :] = jnp.maximum(hf, 0.0).astype(jnp.bfloat16)

    # ---- conv2 (KxK) + folded BN + ReLU ----
    acc = jnp.broadcast_to(b2_ref[...], (ROWS, Cout_p))
    if fuse:
        # 256-wide MXU: pack the K kx-taps of one ky row into a (ROWS, K*Mp)
        # slab and contract with the contiguous (K*Mp, Cout_p) weight slice.
        tap_ref = scratch[0]
        for ky in range(K):
            base = ky * dil * Wp2
            for kx in range(K):
                off = base + kx * dil
                tap_ref[:, kx * Mp:(kx + 1) * Mp] = h_ref[pl.ds(off, ROWS), :]
            wk = w2_ref[pl.ds(ky * K * Mp, K * Mp), :]
            acc = acc + jnp.dot(tap_ref[...], wk,
                                preferred_element_type=jnp.float32)
    else:
        # 128-wide MXU (v4/v5e): depth-Mp dots are already full rate.
        for ky in range(K):
            for kx in range(K):
                off = (ky * Wp2 + kx) * dil
                tap = h_ref[pl.ds(off, ROWS), :]
                wk = w2_ref[pl.ds((ky * K + kx) * Mp, Mp), :]
                acc = acc + jnp.dot(tap, wk, preferred_element_type=jnp.float32)
    y = jnp.maximum(acc, 0.0)

    # ---- residual add straight from the two input refs (split at ROWS - s) ----
    if s > 0:
        top = ROWS - s
        res_m = xm_ref[pl.ds(s, top), :Cout_p].astype(jnp.float32)
        o_ref[pl.ds(0, top), :] = (y[0:top, :] + res_m).astype(o_ref.dtype)
        res_f = xf_ref[pl.ds(0, s), :Cout_p].astype(jnp.float32)
        o_ref[pl.ds(top, s), :] = (y[top:ROWS, :] + res_f).astype(o_ref.dtype)
    else:
        o_ref[...] = (y + xm_ref[:, :Cout_p].astype(jnp.float32)).astype(o_ref.dtype)


# ----------------------------- module wrapper -----------------------------

def resblock2d_forward(x_nchw, params, kernel_size=3, dilation=1, stride=1):
    """Forward of ResBlock_2d (eval mode). Input/Output in NCHW like PyTorch."""
    # TODO(synk): DropPath is stochastic depth applied only in training; in
    # eval mode it is identity, which is what is implemented here.
    assert stride == 1, "residual add requires stride == 1"
    N, C, H, W = x_nchw.shape
    mid = C // 2
    K = kernel_size
    dil = dilation
    ph, pw = calculate_conv2d_padding(stride, K, (H, W), (H, W), dil)
    eh = (K - 1) * dil
    ew = (K - 1) * dil
    assert 2 * ph == eh and 2 * pw == ew, "'same' conv required for residual add"

    # Fold eval-mode BN into the conv weights / biases.
    w1f, b1f = _fold_bn(params["w1"], params["b1"], params["bn1_gamma"],
                        params["bn1_beta"], params["bn1_mean"], params["bn1_var"])
    w2f, b2f = _fold_bn(params["w2"], params["b2"], params["bn2_gamma"],
                        params["bn2_beta"], params["bn2_mean"], params["bn2_var"])

    # Lane-dense channel padding; +1 input channel carries the conv1 bias and
    # doubles as the zero-padding validity indicator.
    Cout_p = _round_up(max(C, 1), 128)
    Cin_p = _round_up(C + 1, 128)
    Mp = _round_up(max(mid, 1), 128)
    Wp2 = _round_up(W + 2 * pw, 8)           # sublane-aligned padded width

    fuse = _use_wide_mxu()
    cap = _vmem_capacity_bytes()
    vmem_limit = max(32 << 20, min(int(0.80 * cap), cap - (24 << 20)))
    budget = int(0.55 * vmem_limit)
    fixed = 2 * (Cin_p * Mp * 2 + K * K * Mp * Cout_p * 2 + Cout_p * 4)
    fixed += 8 * Wp2 * (4 * Cin_p + 6 * Mp)  # fringe blocks + fringe h/temps
    th = _choose_tile_h(H, Wp2, Cin_p, Cout_p, Mp, K, fuse, budget, fixed)
    assert th % 8 == 0
    T = -(-H // th)                          # cdiv
    ROWS = th * Wp2                          # flattened positions per tile
    FR = 8 * Wp2                             # halo fringe (one 8-row block)
    s = ph * Wp2 + pw                        # residual offset into (tile+fringe)
    assert eh * Wp2 + ew <= FR               # tap shifts stay inside tile+fringe
    assert s <= FR and s <= ROWS
    fr_per_tile = th // 8

    # ---- host layout glue: NCHW -> NHWC (+ones channel), zero-pad, bf16 ----
    # TODO(synk): in a ResNet-style stack keep activations in this padded
    # row-flattened bf16 NHWC layout between blocks so this prologue/epilogue
    # is paid once for the whole stack, not per block.
    Htot = (T + 1) * th
    x_nhwc = jnp.transpose(x_nchw, (0, 2, 3, 1))
    x_aug = jnp.concatenate([x_nhwc, jnp.ones_like(x_nhwc[..., :1])], axis=-1)
    x_p = jnp.pad(x_aug, ((0, 0), (ph, Htot - H - ph),
                          (pw, Wp2 - W - pw), (0, Cin_p - (C + 1))))
    x2d = x_p.astype(jnp.bfloat16).reshape(N, Htot * Wp2, Cin_p)

    # ---- weights: BN folded, channel padded, bf16 MXU operands ----
    w1_mat = (jnp.zeros((Cin_p, Mp), jnp.float32)
              .at[:C, :mid].set(w1f.reshape(mid, C).T)
              .at[C, :mid].set(b1f)).astype(jnp.bfloat16)
    w2_t = jnp.transpose(w2f, (2, 3, 1, 0)).reshape(K * K, mid, C)
    w2_mat = (jnp.zeros((K * K, Mp, Cout_p), jnp.float32)
              .at[:, :mid, :C].set(w2_t)
              .reshape(K * K * Mp, Cout_p)).astype(jnp.bfloat16)
    b2_row = jnp.zeros((1, Cout_p), jnp.float32).at[0, :C].set(b2f)

    # Grid: put the larger of (tiles, batch) first so a v7x megacore shards
    # the bigger extent; both axes are "parallel".
    if T >= N:
        grid = (T, N)
        to_ni = lambda a, b: (b, a)
    else:
        grid = (N, T)
        to_ni = lambda a, b: (a, b)

    def xmain_map(a, b):
        n, i = to_ni(a, b)
        return (n, i, 0)

    def xfringe_map(a, b):
        n, i = to_ni(a, b)
        return (n, (i + 1) * fr_per_tile, 0)

    kernel = partial(_resblock_fused_kernel, ROWS=ROWS, FR=FR, Wp2=Wp2, K=K,
                     dil=dil, Mp=Mp, Cout_p=Cout_p, s=s, fuse=fuse)
    scratch = [pltpu.VMEM((ROWS + FR, Mp), jnp.bfloat16)]       # bf16 h buffer
    if fuse:
        scratch.append(pltpu.VMEM((ROWS, K * Mp), jnp.bfloat16))  # tap slab

    y2d = pl.pallas_call(
        kernel,
        out_shape=jax.ShapeDtypeStruct((N, T * ROWS, Cout_p), jnp.bfloat16),
        grid_spec=pltpu.PrefetchScalarGridSpec(
            num_scalar_prefetch=0,
            grid=grid,
            in_specs=[
                # main tile rows
                pl.BlockSpec((None, ROWS, Cin_p), xmain_map),
                # 8-row halo fringe just below the tile
                pl.BlockSpec((None, FR, Cin_p), xfringe_map),
                # resident (constant-index, single-buffered) weights / bias
                _const_spec((Cin_p, Mp), lambda a, b: (0, 0)),
                _const_spec((K * K * Mp, Cout_p), lambda a, b: (0, 0)),
                _const_spec((1, Cout_p), lambda a, b: (0, 0)),
            ],
            out_specs=pl.BlockSpec((None, ROWS, Cout_p), xmain_map),
            scratch_shapes=scratch,
        ),
        compiler_params=pltpu.CompilerParams(
            dimension_semantics=("parallel", "parallel"),
            vmem_limit_bytes=int(vmem_limit)),
    )(x2d, x2d, w1_mat, w2_mat, b2_row)

    y = y2d.reshape(N, T * th, Wp2, Cout_p)[:, :H, :W, :C]
    return jnp.transpose(y, (0, 3, 1, 2)).astype(x_nchw.dtype)


# ------------------------- pure-JAX reference check -------------------------

def _reference_forward(x_nchw, params, kernel_size=3, dilation=1):
    """Reference mirroring the kernel's bf16 streaming precision (bf16 x,
    bf16 folded weights, bf16 h, f32 accumulation) so a tight tolerance
    isolates indexing/layout bugs."""
    w1f, b1f = _fold_bn(params["w1"], params["b1"], params["bn1_gamma"],
                        params["bn1_beta"], params["bn1_mean"], params["bn1_var"])
    w2f, b2f = _fold_bn(params["w2"], params["b2"], params["bn2_gamma"],
                        params["bn2_beta"], params["bn2_mean"], params["bn2_var"])
    q = lambda a: a.astype(jnp.bfloat16).astype(jnp.float32)
    xq, w1q, b1q, w2q = q(x_nchw), q(w1f), q(b1f), q(w2f)
    N, C, H, W = x_nchw.shape
    pad = calculate_conv2d_padding(1, kernel_size, (H, W), (H, W), dilation)
    dn = lax.conv_dimension_numbers(xq.shape, w1q.shape, ("NCHW", "OIHW", "NCHW"))
    h = lax.conv_general_dilated(xq, w1q, (1, 1), "VALID", dimension_numbers=dn)
    h = q(jax.nn.relu(h + b1q[None, :, None, None]))
    dn2 = lax.conv_dimension_numbers(h.shape, w2q.shape, ("NCHW", "OIHW", "NCHW"))
    y = lax.conv_general_dilated(
        h, w2q, (1, 1), ((pad[0], pad[0]), (pad[1], pad[1])),
        rhs_dilation=(dilation, dilation), dimension_numbers=dn2)
    y = jax.nn.relu(y + b2f[None, :, None, None])
    return xq + y


if __name__ == "__main__":
    key = jax.random.PRNGKey(0)
    N, C, H, W = 2, 4, 16, 16
    x = jax.random.normal(jax.random.fold_in(key, 100), (N, C, H, W), jnp.float32)
    params = init_resblock2d_params(jax.random.fold_in(key, 200), C, kernel_size=3)

    fwd = jax.jit(partial(resblock2d_forward, kernel_size=3))
    out = jax.block_until_ready(fwd(x, params))
    assert out.shape == (N, C, H, W)

    ref = _reference_forward(x, params, kernel_size=3)
    max_err = float(jnp.max(jnp.abs(out - ref)))
    # vs a bf16-quantized reference only the final bf16 output store and
    # accumulation order differ -> tight tolerance.
    assert jnp.allclose(out, ref, atol=2e-2, rtol=2e-2), \
        f"mismatch vs reference (max_err={max_err})"
    print("KERNEL_OK")
</pallas_src>

<mosaic_0001>
module attributes {stable_mosaic.version = 11 : i64} {
  func.func @_resblock_fused_kernel(%arg0: i32, %arg1: i32, %arg2: memref<1x384x128xbf16, #tpu.memory_space<vmem>>, %arg3: memref<1x192x128xbf16, #tpu.memory_space<vmem>>, %arg4: memref<128x128xbf16, #tpu.memory_space<vmem>>, %arg5: memref<1152x128xbf16, #tpu.memory_space<vmem>>, %arg6: memref<1x128xf32, #tpu.memory_space<vmem>>, %arg7: memref<1x384x128xbf16, #tpu.memory_space<vmem>>, %arg8: memref<576x128xbf16, #tpu.memory_space<vmem>>) attributes {dimension_semantics = [#tpu.dimension_semantics<parallel>, #tpu.dimension_semantics<parallel>], iteration_bounds = array<i64: 2, 1>, scalar_prefetch = 0 : i64, scratch_operands = 1 : i64, tpu.core_type = #tpu.core_type<tc>, window_params = [{transform_indices = @transform_0, window_bounds = array<i64: 1, 384, 128>}, {transform_indices = @transform_1, window_bounds = array<i64: 1, 192, 128>}, {pipeline_mode = #tpu.pipeline_mode<synchronous>, transform_indices = @transform_2, window_bounds = array<i64: 128, 128>}, {pipeline_mode = #tpu.pipeline_mode<synchronous>, transform_indices = @transform_3, window_bounds = array<i64: 1152, 128>}, {pipeline_mode = #tpu.pipeline_mode<synchronous>, transform_indices = @transform_4, window_bounds = array<i64: 1, 128>}, {transform_indices = @transform_5, window_bounds = array<i64: 1, 384, 128>}]} {
    %c0 = arith.constant 0 : index
    %c0_0 = arith.constant 0 : index
    %c0_1 = arith.constant 0 : index
    %0 = vector.load %arg2[%c0, %c0_0, %c0_1] : memref<1x384x128xbf16, #tpu.memory_space<vmem>>, vector<1x384x128xbf16>
    %1 = vector.shape_cast %0 : vector<1x384x128xbf16> to vector<384x128xbf16>
    %c0_2 = arith.constant 0 : index
    %c0_3 = arith.constant 0 : index
    %2 = vector.load %arg4[%c0_2, %c0_3] : memref<128x128xbf16, #tpu.memory_space<vmem>>, vector<128x128xbf16>
    %cst = arith.constant dense<0.000000e+00> : vector<384x128xf32>
    %3 = tpu.matmul %1, %2, %cst {dimension_numbers = #tpu.dot_dimension_numbers<[1], [0], [0], [1], [0, 0, 1, 1], [], []>} : vector<384x128xbf16>, vector<128x128xbf16>, vector<384x128xf32> -> vector<384x128xf32>
    %cst_4 = arith.constant 0.000000e+00 : f32
    %4 = vector.broadcast %cst_4 : f32 to vector<384x128xf32>
    %5 = arith.maximumf %3, %4 : vector<384x128xf32>
    %6 = arith.truncf %5 : vector<384x128xf32> to vector<384x128xbf16>
    %c0_5 = arith.constant 0 : index
    %c0_6 = arith.constant 0 : index
    %7 = vector.load %arg8[%c0_5, %c0_6] : memref<576x128xbf16, #tpu.memory_space<vmem>>, vector<384x128xbf16>
    tpu.vector_store %arg8[%c0_5, %c0_6], %6 {strides = array<i32>} : memref<576x128xbf16, #tpu.memory_space<vmem>>, vector<384x128xbf16>,
    %c0_7 = arith.constant 0 : index
    %c0_8 = arith.constant 0 : index
    %c0_9 = arith.constant 0 : index
    %8 = vector.load %arg3[%c0_7, %c0_8, %c0_9] : memref<1x192x128xbf16, #tpu.memory_space<vmem>>, vector<1x192x128xbf16>
    %9 = vector.shape_cast %8 : vector<1x192x128xbf16> to vector<192x128xbf16>
    %c0_10 = arith.constant 0 : index
    %c0_11 = arith.constant 0 : index
    %10 = vector.load %arg4[%c0_10, %c0_11] : memref<128x128xbf16, #tpu.memory_space<vmem>>, vector<128x128xbf16>
    %cst_12 = arith.constant dense<0.000000e+00> : vector<192x128xf32>
    %11 = tpu.matmul %9, %10, %cst_12 {dimension_numbers = #tpu.dot_dimension_numbers<[1], [0], [0], [1], [0, 0, 1, 1], [], []>} : vector<192x128xbf16>, vector<128x128xbf16>, vector<192x128xf32> -> vector<192x128xf32>
    %cst_13 = arith.constant 0.000000e+00 : f32
    %12 = vector.broadcast %cst_13 : f32 to vector<192x128xf32>
    %13 = arith.maximumf %11, %12 : vector<192x128xf32>
    %14 = arith.truncf %13 : vector<192x128xf32> to vector<192x128xbf16>
    %c384 = arith.constant 384 : index
    %c0_14 = arith.constant 0 : index
    %15 = vector.load %arg8[%c384, %c0_14] : memref<576x128xbf16, #tpu.memory_space<vmem>>, vector<192x128xbf16>
    tpu.vector_store %arg8[%c384, %c0_14], %14 {strides = array<i32>} : memref<576x128xbf16, #tpu.memory_space<vmem>>, vector<192x128xbf16>,
    %c0_15 = arith.constant 0 : index
    %c0_16 = arith.constant 0 : index
    %16 = vector.load %arg6[%c0_15, %c0_16] : memref<1x128xf32, #tpu.memory_space<vmem>>, vector<1x128xf32>
    %17 = vector.shape_cast %16 : vector<1x128xf32> to vector<1x128xf32>
    %18 = vector.broadcast %17 : vector<1x128xf32> to vector<384x128xf32>
    %c0_17 = arith.constant 0 : index
    %c0_18 = arith.constant 0 : index
    %19 = vector.load %arg8[%c0_17, %c0_18] : memref<576x128xbf16, #tpu.memory_space<vmem>>, vector<384x128xbf16>
    %c0_19 = arith.constant 0 : index
    %c0_20 = arith.constant 0 : index
    %20 = vector.load %arg5[%c0_19, %c0_20] : memref<1152x128xbf16, #tpu.memory_space<vmem>>, vector<128x128xbf16>
    %cst_21 = arith.constant dense<0.000000e+00> : vector<384x128xf32>
    %21 = tpu.matmul %19, %20, %cst_21 {dimension_numbers = #tpu.dot_dimension_numbers<[1], [0], [0], [1], [0, 0, 1, 1], [], []>} : vector<384x128xbf16>, vector<128x128xbf16>, vector<384x128xf32> -> vector<384x128xf32>
    %22 = arith.addf %18, %21 : vector<384x128xf32>
    %c1 = arith.constant 1 : index
    %c0_22 = arith.constant 0 : index
    %23 = vector.load %arg8[%c1, %c0_22] : memref<576x128xbf16, #tpu.memory_space<vmem>>, vector<384x128xbf16>
    %c128 = arith.constant 128 : index
    %c0_23 = arith.constant 0 : index
    %24 = vector.load %arg5[%c128, %c0_23] : memref<1152x128xbf16, #tpu.memory_space<vmem>>, vector<128x128xbf16>
    %cst_24 = arith.constant dense<0.000000e+00> : vector<384x128xf32>
    %25 = tpu.matmul %23, %24, %cst_24 {dimension_numbers = #tpu.dot_dimension_numbers<[1], [0], [0], [1], [0, 0, 1, 1], [], []>} : vector<384x128xbf16>, vector<128x128xbf16>, vector<384x128xf32> -> vector<384x128xf32>
    %26 = arith.addf %22, %25 : vector<384x128xf32>
    %c2 = arith.constant 2 : index
    %c0_25 = arith.constant 0 : index
    %27 = vector.load %arg8[%c2, %c0_25] : memref<576x128xbf16, #tpu.memory_space<vmem>>, vector<384x128xbf16>
    %c256 = arith.constant 256 : index
    %c0_26 = arith.constant 0 : index
    %28 = vector.load %arg5[%c256, %c0_26] : memref<1152x128xbf16, #tpu.memory_space<vmem>>, vector<128x128xbf16>
    %cst_27 = arith.constant dense<0.000000e+00> : vector<384x128xf32>
    %29 = tpu.matmul %27, %28, %cst_27 {dimension_numbers = #tpu.dot_dimension_numbers<[1], [0], [0], [1], [0, 0, 1, 1], [], []>} : vector<384x128xbf16>, vector<128x128xbf16>, vector<384x128xf32> -> vector<384x128xf32>
    %30 = arith.addf %26, %29 : vector<384x128xf32>
    %c24 = arith.constant 24 : index
    %c0_28 = arith.constant 0 : index
    %31 = vector.load %arg8[%c24, %c0_28] : memref<576x128xbf16, #tpu.memory_space<vmem>>, vector<384x128xbf16>
    %c384_29 = arith.constant 384 : index
    %c0_30 = arith.constant 0 : index
    %32 = vector.load %arg5[%c384_29, %c0_30] : memref<1152x128xbf16, #tpu.memory_space<vmem>>, vector<128x128xbf16>
    %cst_31 = arith.constant dense<0.000000e+00> : vector<384x128xf32>
    %33 = tpu.matmul %31, %32, %cst_31 {dimension_numbers = #tpu.dot_dimension_numbers<[1], [0], [0], [1], [0, 0, 1, 1], [], []>} : vector<384x128xbf16>, vector<128x128xbf16>, vector<384x128xf32> -> vector<384x128xf32>
    %34 = arith.addf %30, %33 : vector<384x128xf32>
    %c25 = arith.constant 25 : index
    %c0_32 = arith.constant 0 : index
    %35 = vector.load %arg8[%c25, %c0_32] : memref<576x128xbf16, #tpu.memory_space<vmem>>, vector<384x128xbf16>
    %c512 = arith.constant 512 : index
    %c0_33 = arith.constant 0 : index
    %36 = vector.load %arg5[%c512, %c0_33] : memref<1152x128xbf16, #tpu.memory_space<vmem>>, vector<128x128xbf16>
    %cst_34 = arith.constant dense<0.000000e+00> : vector<384x128xf32>
    %37 = tpu.matmul %35, %36, %cst_34 {dimension_numbers = #tpu.dot_dimension_numbers<[1], [0], [0], [1], [0, 0, 1, 1], [], []>} : vector<384x128xbf16>, vector<128x128xbf16>, vector<384x128xf32> -> vector<384x128xf32>
    %38 = arith.addf %34, %37 : vector<384x128xf32>
    %c26 = arith.constant 26 : index
    %c0_35 = arith.constant 0 : index
    %39 = vector.load %arg8[%c26, %c0_35] : memref<576x128xbf16, #tpu.memory_space<vmem>>, vector<384x128xbf16>
    %c640 = arith.constant 640 : index
    %c0_36 = arith.constant 0 : index
    %40 = vector.load %arg5[%c640, %c0_36] : memref<1152x128xbf16, #tpu.memory_space<vmem>>, vector<128x128xbf16>
    %cst_37 = arith.constant dense<0.000000e+00> : vector<384x128xf32>
    %41 = tpu.matmul %39, %40, %cst_37 {dimension_numbers = #tpu.dot_dimension_numbers<[1], [0], [0], [1], [0, 0, 1, 1], [], []>} : vector<384x128xbf16>, vector<128x128xbf16>, vector<384x128xf32> -> vector<384x128xf32>
    %42 = arith.addf %38, %41 : vector<384x128xf32>
    %c48 = arith.constant 48 : index
    %c0_38 = arith.constant 0 : index
    %43 = vector.load %arg8[%c48, %c0_38] : memref<576x128xbf16, #tpu.memory_space<vmem>>, vector<384x128xbf16>
    %c768 = arith.constant 768 : index
    %c0_39 = arith.constant 0 : index
    %44 = vector.load %arg5[%c768, %c0_39] : memref<1152x128xbf16, #tpu.memory_space<vmem>>, vector<128x128xbf16>
    %cst_40 = arith.constant dense<0.000000e+00> : vector<384x128xf32>
    %45 = tpu.matmul %43, %44, %cst_40 {dimension_numbers = #tpu.dot_dimension_numbers<[1], [0], [0], [1], [0, 0, 1, 1], [], []>} : vector<384x128xbf16>, vector<128x128xbf16>, vector<384x128xf32> -> vector<384x128xf32>
    %46 = arith.addf %42, %45 : vector<384x128xf32>
    %c49 = arith.constant 49 : index
    %c0_41 = arith.constant 0 : index
    %47 = vector.load %arg8[%c49, %c0_41] : memref<576x128xbf16, #tpu.memory_space<vmem>>, vector<384x128xbf16>
    %c896 = arith.constant 896 : index
    %c0_42 = arith.constant 0 : index
    %48 = vector.load %arg5[%c896, %c0_42] : memref<1152x128xbf16, #tpu.memory_space<vmem>>, vector<128x128xbf16>
    %cst_43 = arith.constant dense<0.000000e+00> : vector<384x128xf32>
    %49 = tpu.matmul %47, %48, %cst_43 {dimension_numbers = #tpu.dot_dimension_numbers<[1], [0], [0], [1], [0, 0, 1, 1], [], []>} : vector<384x128xbf16>, vector<128x128xbf16>, vector<384x128xf32> -> vector<384x128xf32>
    %50 = arith.addf %46, %49 : vector<384x128xf32>
    %c50 = arith.constant 50 : index
    %c0_44 = arith.constant 0 : index
    %51 = vector.load %arg8[%c50, %c0_44] : memref<576x128xbf16, #tpu.memory_space<vmem>>, vector<384x128xbf16>
    %c1024 = arith.constant 1024 : index
    %c0_45 = arith.constant 0 : index
    %52 = vector.load %arg5[%c1024, %c0_45] : memref<1152x128xbf16, #tpu.memory_space<vmem>>, vector<128x128xbf16>
    %cst_46 = arith.constant dense<0.000000e+00> : vector<384x128xf32>
    %53 = tpu.matmul %51, %52, %cst_46 {dimension_numbers = #tpu.dot_dimension_numbers<[1], [0], [0], [1], [0, 0, 1, 1], [], []>} : vector<384x128xbf16>, vector<128x128xbf16>, vector<384x128xf32> -> vector<384x128xf32>
    %54 = arith.addf %50, %53 : vector<384x128xf32>
    %cst_47 = arith.constant 0.000000e+00 : f32
    %55 = vector.broadcast %cst_47 : f32 to vector<384x128xf32>
    %56 = arith.maximumf %54, %55 : vector<384x128xf32>
    %c0_48 = arith.constant 0 : index
    %c25_49 = arith.constant 25 : index
    %c0_50 = arith.constant 0 : index
    %57 = vector.load %arg2[%c0_48, %c25_49, %c0_50] : memref<1x384x128xbf16, #tpu.memory_space<vmem>>, vector<1x359x128xbf16>
    %58 = vector.shape_cast %57 : vector<1x359x128xbf16> to vector<359x128xbf16>
    %59 = arith.extf %58 : vector<359x128xbf16> to vector<359x128xf32>
    %60 = vector.extract_strided_slice %56 {offsets = [0, 0], sizes = [359, 128], strides = [1, 1]} : vector<384x128xf32> to vector<359x128xf32>
    %61 = arith.addf %60, %59 : vector<359x128xf32>
    %62 = arith.truncf %61 : vector<359x128xf32> to vector<359x128xbf16>
    %c0_51 = arith.constant 0 : index
    %c0_52 = arith.constant 0 : index
    %c0_53 = arith.constant 0 : index
    %63 = vector.load %arg7[%c0_51, %c0_52, %c0_53] : memref<1x384x128xbf16, #tpu.memory_space<vmem>>, vector<1x359x128xbf16>
    %64 = vector.shape_cast %63 : vector<1x359x128xbf16> to vector<359x128xbf16>
    %65 = vector.shape_cast %62 : vector<359x128xbf16> to vector<1x359x128xbf16>
    tpu.vector_store %arg7[%c0_51, %c0_52, %c0_53], %65 {strides = array<i32>} : memref<1x384x128xbf16, #tpu.memory_space<vmem>>, vector<1x359x128xbf16>,
    %c0_54 = arith.constant 0 : index
    %c0_55 = arith.constant 0 : index
    %c0_56 = arith.constant 0 : index
    %66 = vector.load %arg3[%c0_54, %c0_55, %c0_56] : memref<1x192x128xbf16, #tpu.memory_space<vmem>>, vector<1x25x128xbf16>
    %67 = vector.shape_cast %66 : vector<1x25x128xbf16> to vector<25x128xbf16>
    %68 = arith.extf %67 : vector<25x128xbf16> to vector<25x128xf32>
    %69 = vector.extract_strided_slice %56 {offsets = [359, 0], sizes = [25, 128], strides = [1, 1]} : vector<384x128xf32> to vector<25x128xf32>
    %70 = arith.addf %69, %68 : vector<25x128xf32>
    %71 = arith.truncf %70 : vector<25x128xf32> to vector<25x128xbf16>
    %c0_57 = arith.constant 0 : index
    %c359 = arith.constant 359 : index
    %c0_58 = arith.constant 0 : index
    %72 = vector.load %arg7[%c0_57, %c359, %c0_58] : memref<1x384x128xbf16, #tpu.memory_space<vmem>>, vector<1x25x128xbf16>
    %73 = vector.shape_cast %72 : vector<1x25x128xbf16> to vector<25x128xbf16>
    %74 = vector.shape_cast %71 : vector<25x128xbf16> to vector<1x25x128xbf16>
    tpu.vector_store %arg7[%c0_57, %c359, %c0_58], %74 {strides = array<i32>} : memref<1x384x128xbf16, #tpu.memory_space<vmem>>, vector<1x25x128xbf16>,
    return
  }
  func.func @transform_0(%arg0: i32, %arg1: i32) -> (i32, i32, i32) {
    %c0_i32 = arith.constant 0 : i32
    %c0_i32_0 = arith.constant 0 : i32
    return %arg0, %arg1, %c0_i32 : i32, i32, i32
  }
  func.func @transform_1(%arg0: i32, %arg1: i32) -> (i32, i32, i32) {
    %c1_i32 = arith.constant 1 : i32
    %0 = arith.addi %arg1, %c1_i32 : i32
    %c2_i32 = arith.constant 2 : i32
    %1 = arith.muli %0, %c2_i32 : i32
    %c0_i32 = arith.constant 0 : i32
    %c0_i32_0 = arith.constant 0 : i32
    return %arg0, %1, %c0_i32 : i32, i32, i32
  }
  func.func @transform_2(%arg0: i32, %arg1: i32) -> (i32, i32) {
    %c0_i32 = arith.constant 0 : i32
    %c0_i32_0 = arith.constant 0 : i32
    %c0_i32_1 = arith.constant 0 : i32
    return %c0_i32, %c0_i32_0 : i32, i32
  }
  func.func @transform_3(%arg0: i32, %arg1: i32) -> (i32, i32) {
    %c0_i32 = arith.constant 0 : i32
    %c0_i32_0 = arith.constant 0 : i32
    %c0_i32_1 = arith.constant 0 : i32
    return %c0_i32, %c0_i32_0 : i32, i32
  }
  func.func @transform_4(%arg0: i32, %arg1: i32) -> (i32, i32) {
    %c0_i32 = arith.constant 0 : i32
    %c0_i32_0 = arith.constant 0 : i32
    %c0_i32_1 = arith.constant 0 : i32
    return %c0_i32, %c0_i32_0 : i32, i32
  }
  func.func @transform_5(%arg0: i32, %arg1: i32) -> (i32, i32, i32) {
    %c0_i32 = arith.constant 0 : i32
    %c0_i32_0 = arith.constant 0 : i32
    return %arg0, %arg1, %c0_i32 : i32, i32, i32
  }
}

</mosaic_0001>

<bundles_post_ra>
// kernel: resblock2d_forward.1
= control target key start
LH: loop header
LB: loop body
LE: loop exit
PB: predicated region body
PF: predicated region fallthrough
CT: control target
= control target key end

     0   :  { %s9686_s18 = smov 0   ;;  %s9688_s19 = smov 0   ;;  %s11679_s0 = inlined_call_operand.vmem [shape: bf16[2,768,128], index: 0, kind: input, shape index: {}, may-alias: {0,1}]   ;;  %s11680_s1 = inlined_call_operand.vmem [shape: bf16[2,768,128], index: 1, kind: input, shape index: {}, may-alias: {0,1}]   ;;  %s11681_s2 = inlined_call_operand.vmem [shape: bf16[128,128], index: 2, kind: input, shape index: {}]   ;;  %s11682_s3 = inlined_call_operand.vmem [shape: bf16[1152,128], index: 3, kind: input, shape index: {}]   ;;  %s11683_s4 = inlined_call_operand.vmem [shape: f32[1,128], index: 4, kind: input, shape index: {}]   ;;  %s11684_s5 = inlined_call_operand.vmem [shape: bf16[2,384,128], index: 5, kind: output, shape index: {}]  }
   0x1   :  { %s9690_s20 = smov 0  }
   0x2 LB: > { %s27_s21 = sadd.s32 1, %s9650_s19  ;;  %p7297_p0 = scmp.ge.s32.totalorder %s9654_s20, 1  ;;  %s9654_s20 = sphi %s9690_s20, %s15_s20   ;;  %s9650_s19 = sphi %s9688_s19, %s11891_s19   ;;  %s9646_s18 = sphi %s9686_s18, %s11890_s18  }
   0x3   : > { %p29_p1 = scmp.ge.s32.totalorder %s27_s21, 2  ;;  %p233_p2 = scmp.lt.s32.totalorder %s9654_s20, 3 }
   0x5   : > { %s11893_s21 = smov (%p29_p1, %s27_s21), 0  ;;  %p234_p3 = pnand %p7297_p0, %p233_p2 }
   0x7   : > { %237 = sbr.rel (%p234_p3) target bundleno = 919 (0x397), region = 40 }
   0xc   : > { %v9352_v0 = vld [vmem:[%s11681_s2 + $0x38] sm:$0xff]   ;;  %p281_p4 = scmp.lt.s32.totalorder %s9646_s18, 1  ;;  %v9353_v1 = vld [vmem:[%s11681_s2 + $0x30] sm:$0xff]   ;;  %v9354_v2 = vld [vmem:[%s11681_s2 + $0x28] sm:$0xff]   ;;  %vm2803_vm0 = vcmask 1046528   ;;  %vm7130_vm2 = vcmask 1043456  }
   0xd   : > { %8628 = vmatprep.subr.bf16.mxu0 %v9352_v0  ;;  %v9355_v3 = vld [vmem:[%s11681_s2 + $0x20] sm:$0xff]   ;;  %v9356_v5 = vld [vmem:[%s11681_s2 + $0x18] sm:$0xff]   ;;  %v9357_v6 = vld [vmem:[%s11681_s2 + $0x10] sm:$0xff]   ;;  %vm2241_vm1 = vsmask.f32 7424  ;;  %vm7179_vm5 = vcmask 1043459  }
   0xe   : > { %s11895_s18 = smov (!%p281_p4, %s9646_s18), 1  ;;  %8629 = vmatpush3.bf16.msra.mxu0 %v9352_v0  ;;  %v9358_v7 = vld [vmem:[%s11681_s2 + $0x8] sm:$0xff]   ;;  %v9374_v8 = vld [vmem:[%s11681_s2 + $0x38] sm:$0xff]   ;;  %v9359_v9 = vld [vmem:[%s11681_s2] sm:$0xff]   ;;  %vm7131_vm3 = vsmask.f32 3328 }
   0xf   : > { %8630 = vmatprep.subr.bf16.mxu0 %v9353_v1  ;;  %s9324_s28 = smul.u32 384, %s11895_s18  ;;  %8692 = vmatprep.subr.bf16.mxu1 %v9374_v8  ;;  %v9377_v10 = vld [vmem:[%s11681_s2 + $0x30] sm:$0xff]   ;;  %v9378_v11 = vld [vmem:[%s11681_s2 + $0x28] sm:$0xff]   ;;  %v9381_v13 = vld [vmem:[%s11681_s2 + $0x20] sm:$0xff]   ;;  %vm7180_vm6 = vsmask.f32 7950 }
  0x10   : > { %8693 = vmatpush3.bf16.msra.mxu1 %v9374_v8  ;;  %v9382_v15 = vld [vmem:[%s11681_s2 + $0x18] sm:$0xff]   ;;  %v9385_v17 = vld [vmem:[%s11681_s2 + $0x10] sm:$0xff]   ;;  %v9386_v20 = vld [vmem:[%s11681_s2 + $0x8] sm:$0xff]   ;;  %s9326_s12 = smul.u32 192, %s11895_s18 }
  0x11   : > { %s9721_s6 = scalar_lea.vmem %s11679_s0, %s9324_s28  ;;  %8694 = vmatprep.subr.bf16.mxu1 %v9377_v10  ;;  %s7700_s30 = sadd.s32 192, %s9324_s28  ;;  %v9389_v22 = vld [vmem:[%s11681_s2] sm:$0xff]   ;;  %v9398_v23 = vld [vmem:[%s11682_s3 + $0x78] sm:$0xff]   ;;  %v9404_v28 = vld [vmem:[%s11682_s3 + $0x70] sm:$0xff]  }
  0x12   : > { %8631 = vmatpush3.bf16.msra.mxu0 %v9353_v1  ;;  %v9360_v4 = vld [vmem:[%s9721_s6] sm:$0xff]   ;;  %v9361_v12 = vld [vmem:[%s9721_s6 + $0x8] sm:$0xff]   ;;  %v9362_v14 = vld [vmem:[%s9721_s6 + $0x10] sm:$0xff]   ;;  %s9761_s11 = scalar_lea.vmem %s11680_s1, %s7700_s30  ;;  %s11458_s28 = scalar_lea.vmem %s11684_s5, %s9326_s12 }
  0x13   : > { %8632 = vmatprep.subr.bf16.mxu0 %v9354_v2  ;;  %8644 = vmatprep.mubr.bf16.mxu0 %v9360_v4  ;;  %v9363_v16 = vld [vmem:[%s9721_s6 + $0x18] sm:$0xff]   ;;  %v9390_v18 = vld [vmem:[%s9761_s11] sm:$0xff]   ;;  %v9365_v21 = vld [vmem:[%s9721_s6 + $0x28] sm:$0xff]  }
  0x14   : > { %8695 = vmatpush3.bf16.msra.mxu1 %v9377_v10  ;;  %v9364_v19 = vld [vmem:[%s9721_s6 + $0x20] sm:$0xff]   ;;  %8708 = vmatprep.mubr.bf16.mxu1 %v9390_v18  ;;  %v9366_v24 = vld [vmem:[%s9721_s6 + $0x30] sm:$0xff]   ;;  %v9396_v25 = vld [vmem:[%s11682_s3 + $0x38] sm:$0xff]  }
  0x15   : > { %8696 = vmatprep.subr.bf16.mxu1 %v9378_v11  ;;  %v9391_v26 = vld [vmem:[%s9761_s11 + $0x8] sm:$0xff]   ;;  %v9367_v27 = vld [vmem:[%s9721_s6 + $0x38] sm:$0xff]   ;;  %v9394_v29 = vld [vmem:[%s9761_s11 + $0x10] sm:$0xff]  }
  0x16   : > { %8633 = vmatpush3.bf16.msra.mxu0 %v9354_v2  ;;  %v9397_v30 = vld [vmem:[%s11682_s3 + $0x30] sm:$0xff]   ;;  %v9368_v31 = vld [vmem:[%s9721_s6 + $0x40] sm:$0xff]   ;;  %v9401_v32 = vld [vmem:[%s11682_s3 + $0x28] sm:$0xff]  }
  0x17   : > { %8634 = vmatprep.subr.bf16.mxu0 %v9355_v3  ;;  %v9395_v33 = vld [vmem:[%s9761_s11 + $0x18] sm:$0xff]   ;;  %v9399_v34 = vld [vmem:[%s9761_s11 + $0x20] sm:$0xff]   ;;  %v9369_v35 = vld [vmem:[%s9721_s6 + $0x48] sm:$0xff]  }
  0x18   : > { %8697 = vmatpush3.bf16.msra.mxu1 %v9378_v11  ;;  %v9403_v36 = vld [vmem:[%s11682_s3 + $0x20] sm:$0xff]   ;;  %v9370_v37 = vld [vmem:[%s9721_s6 + $0x50] sm:$0xff]   ;;  %v9406_v38 = vld [vmem:[%s11682_s3 + $0x18] sm:$0xff]  }
  0x19   : > { %8698 = vmatprep.subr.bf16.mxu1 %v9381_v13  ;;  %v9400_v39 = vld [vmem:[%s9761_s11 + $0x28] sm:$0xff]   ;;  %v9402_v40 = vld [vmem:[%s9761_s11 + $0x30] sm:$0xff]   ;;  %v9371_v41 = vld [vmem:[%s9721_s6 + $0x58] sm:$0xff]  }
  0x1a   : > { %8635 = vmatpush3.bf16.msra.mxu0 %v9355_v3  ;;  %v9372_v42 = vld [vmem:[%s9721_s6 + $0x60] sm:$0xff]   ;;  %v9405_v43 = vld [vmem:[%s9761_s11 + $0x38] sm:$0xff]   ;;  %v9373_v45 = vld [vmem:[%s9721_s6 + $0x68] sm:$0xff]  }
  0x1b   : > { %8636 = vmatprep.subr.bf16.mxu0 %v9356_v5  ;;  %v9407_v44 = vld [vmem:[%s9761_s11 + $0x40] sm:$0xff]   ;;  %v9375_v46 = vld [vmem:[%s9721_s6 + $0x70] sm:$0xff]   ;;  %v9376_v47 = vld [vmem:[%s9721_s6 + $0x78] sm:$0xff]  }
  0x1c   : > { %8699 = vmatpush3.bf16.msra.mxu1 %v9381_v13  ;;  %v9379_v48 = vld [vmem:[%s9721_s6 + $0x80] sm:$0xff]   ;;  %v9380_v49 = vld [vmem:[%s9721_s6 + $0x88] sm:$0xff]   ;;  %v9383_v50 = vld [vmem:[%s9721_s6 + $0x90] sm:$0xff]  }
  0x1d   : > { %8700 = vmatprep.subr.bf16.mxu1 %v9382_v15  ;;  %v9408_v51 = vld [vmem:[%s9761_s11 + $0x48] sm:$0xff]   ;;  %v9409_v52 = vld [vmem:[%s11682_s3 + $0x10] sm:$0xff]   ;;  %v9384_v54 = vld [vmem:[%s9721_s6 + $0x98] sm:$0xff]  }
  0x1e   : > { %8637 = vmatpush3.bf16.msra.mxu0 %v9356_v5  ;;  %v9410_v53 = vld [vmem:[%s11682_s3 + $0x68] sm:$0xff]   ;;  %v9411_v55 = vld [vmem:[%s9761_s11 + $0x50] sm:$0xff]   ;;  %v9387_v56 = vld [vmem:[%s9721_s6 + $0xa0] sm:$0xff]  }
  0x1f   : > { %8638 = vmatprep.subr.bf16.mxu0 %v9357_v6  ;;  %v9412_v57 = vld [vmem:[%s9761_s11 + $0x58] sm:$0xff]   ;;  %v9413_v58 = vld [vmem:[%s11682_s3 + $0x8] sm:$0xff]   ;;  %v9414_v59 = vld [vmem:[%s11682_s3 + $0x60] sm:$0xff]  }
  0x20   : > { %8701 = vmatpush3.bf16.msra.mxu1 %v9382_v15  ;;  %v9388_v60 = vld [vmem:[%s9721_s6 + $0xa8] sm:$0xff]   ;;  %v9392_v61 = vld [vmem:[%s9721_s6 + $0xb0] sm:$0xff]   ;;  %v9415_v62 = vld [vmem:[%s11682_s3] sm:$0xff]  }
  0x21   : > { %8702 = vmatprep.subr.bf16.mxu1 %v9385_v17  ;;  %v9416_v63 = vld [vmem:[%s11682_s3 + $0x58] sm:$0xff]   ;;  %v9420_v0 = vld [vmem:[%s11682_s3 + $0x50] sm:$0xff]   ;;  %v9421_v2 = vld [vmem:[%s11682_s3 + $0x48] sm:$0xff]  }
  0x22   : > { %8639 = vmatpush3.bf16.msra.mxu0 %v9357_v6  ;;  %v9393_v1 = vld [vmem:[%s9721_s6 + $0xb8] sm:$0xff]   ;;  %v9426_v4 = vld [vmem:[%s11682_s3 + $0x40] sm:$0xff]   ;;  %vm7132_vm4 = vmand %vm7130_vm2, %vm7131_vm3 }
  0x23   : > { %8640 = vmatprep.subr.bf16.mxu0 %v9358_v7  ;;  %v9418_v3 = vld [vmem:[%s11682_s3 + $0xb8] sm:$0xff]   ;;  %vm7181_vm7 = vmand %vm7179_vm5, %vm7180_vm6 }
  0x24   : > { %8703 = vmatpush3.bf16.msra.mxu1 %v9385_v17  ;;  %v9859_v5 = vld [vmem:[%s11682_s3 + $0xf8] sm:$0xff]  }
  0x25   : > { %8704 = vmatprep.subr.bf16.mxu1 %v9386_v20 }
  0x26   : > { %8641 = vmatpush3.bf16.msra.mxu0 %v9358_v7 }
  0x27   : > { %8642 = vmatprep.subr.bf16.mxu0 %v9359_v9 }
  0x28   : > { %8705 = vmatpush3.bf16.msra.mxu1 %v9386_v20 }
  0x29   : > { %8706 = vmatprep.subr.bf16.mxu1 %v9389_v22 }
  0x2a   : > { %8643 = vmatpush3.bf16.msra.mxu0 %v9359_v9 }
  0x2b   : > { %8796 = vmatprep.subr.bf16.mxu0 %v9398_v23 }
  0x2c   : > { %8707 = vmatpush3.bf16.msra.mxu1 %v9389_v22 }
  0x2d   : > { %8645 = vmatmul.mubr.bf16.vlgmr.msra.gmra.mxu0 %v9361_v12  ;;  %8732 = vmatprep.subr.bf16.mxu1 %v9396_v25 }
  0x2e   : > { %8648 = vmatprep.mubr.bf16.mxu0 %v9362_v14  ;;  %8797 = vmatpush3.bf16.msra.mxu0 %v9398_v23 }
  0x2f   : > { %8798 = vmatprep.subr.bf16.mxu0 %v9404_v28  ;;  %8709 = vmatmul.mubr.bf16.vlgmr.msra.gmra.mxu1 %v9391_v26 }
  0x30   : > { %8712 = vmatprep.mubr.bf16.mxu1 %v9394_v29  ;;  %8733 = vmatpush3.bf16.msra.mxu1 %v9396_v25 }
  0x31   : > { %8734 = vmatprep.subr.bf16.mxu1 %v9397_v30 }
  0x32   : > { %8799 = vmatpush3.bf16.msra.mxu0 %v9404_v28  ;;  %v9427_v28 = vld [vmem:[%s11682_s3 + $0xb0] sm:$0xff]  }
  0x33   : > { %8800 = vmatprep.subr.bf16.mxu0 %v9410_v53 }
  0x34   : > { %8735 = vmatpush3.bf16.msra.mxu1 %v9397_v30 }
  0x35   : > { %8649 = vmatmul.mubr.bf16.gmra.mxu0 %v9363_v16  ;;  %8736 = vmatprep.subr.bf16.mxu1 %v9401_v32 }
  0x36   : > { %8652 = vmatprep.mubr.bf16.mxu0 %v9364_v19  ;;  %8801 = vmatpush3.bf16.msra.mxu0 %v9410_v53 }
  0x37   : > { %8713 = vmatmul.mubr.bf16.gmra.mxu1 %v9395_v33  ;;  %8802 = vmatprep.subr.bf16.mxu0 %v9414_v59 }
  0x38   : > { %8716 = vmatprep.mubr.bf16.mxu1 %v9399_v34  ;;  %8737 = vmatpush3.bf16.msra.mxu1 %v9401_v32 }
  0x39   : > { %8738 = vmatprep.subr.bf16.mxu1 %v9403_v36 }
  0x3a   : > { %8803 = vmatpush3.bf16.msra.mxu0 %v9414_v59 }
  0x3b   : > { %8804 = vmatprep.subr.bf16.mxu0 %v9416_v63 }
  0x3c   : > { %8739 = vmatpush3.bf16.msra.mxu1 %v9403_v36 }
  0x3d   : > { %8653 = vmatmul.mubr.bf16.gmra.mxu0 %v9365_v21  ;;  %8740 = vmatprep.subr.bf16.mxu1 %v9406_v38 }
  0x3e   : > { %8656 = vmatprep.mubr.bf16.mxu0 %v9366_v24  ;;  %8805 = vmatpush3.bf16.msra.mxu0 %v9416_v63 }
  0x3f   : > { %8717 = vmatmul.mubr.bf16.gmra.mxu1 %v9400_v39  ;;  %8806 = vmatprep.subr.bf16.mxu0 %v9420_v0 }
  0x40   : > { %8720 = vmatprep.mubr.bf16.mxu1 %v9402_v40  ;;  %8741 = vmatpush3.bf16.msra.mxu1 %v9406_v38 }
  0x41   : > { %8742 = vmatprep.subr.bf16.mxu1 %v9409_v52 }
  0x42   : > { %8807 = vmatpush3.bf16.msra.mxu0 %v9420_v0 }
  0x43   : > { %8808 = vmatprep.subr.bf16.mxu0 %v9421_v2 }
  0x44   : > { %8743 = vmatpush3.bf16.msra.mxu1 %v9409_v52 }
  0x45   : > { %8657 = vmatmul.mubr.bf16.gmra.mxu0 %v9367_v27  ;;  %8744 = vmatprep.subr.bf16.mxu1 %v9413_v58 }
  0x46   : > { %8660 = vmatprep.mubr.bf16.mxu0 %v9368_v31  ;;  %8809 = vmatpush3.bf16.msra.mxu0 %v9421_v2 }
  0x47   : > { %8721 = vmatmul.mubr.bf16.gmra.mxu1 %v9405_v43  ;;  %8810 = vmatprep.subr.bf16.mxu0 %v9426_v4 }
  0x48   : > { %8724 = vmatprep.mubr.bf16.mxu1 %v9407_v44  ;;  %8745 = vmatpush3.bf16.msra.mxu1 %v9413_v58 }
  0x49   : > { %8746 = vmatprep.subr.bf16.mxu1 %v9415_v62 }
  0x4a   : > { %8811 = vmatpush3.bf16.msra.mxu0 %v9426_v4 }
  0x4b   : > { %8924 = vmatprep.subr.bf16.mxu0 %v9859_v5 }
  0x4c   : > { %8747 = vmatpush3.bf16.msra.mxu1 %v9415_v62 }
  0x4d   : > { %8661 = vmatmul.mubr.bf16.gmra.mxu0 %v9369_v35  ;;  %8860 = vmatprep.subr.bf16.mxu1 %v9418_v3 }
  0x4e   : > { %8664 = vmatprep.mubr.bf16.mxu0 %v9370_v37 }
  0x4f   : > { %8725 = vmatmul.mubr.bf16.gmra.mxu1 %v9408_v51 }
  0x50   : > { %8728 = vmatprep.mubr.bf16.mxu1 %v9411_v55 }
  0x55   : > { %8665 = vmatmul.mubr.bf16.gmra.mxu0 %v9371_v41 }
  0x56   : > { %8668 = vmatprep.mubr.bf16.mxu0 %v9372_v42 }
  0x57   : > { %8729 = vmatmul.mubr.bf16.gmra.mxu1 %v9412_v57  ;;  %v9441_v57 = vld [vmem:[%s11682_s3 + $0xa0] sm:$0xff]  }
  0x5d   : > { %8669 = vmatmul.mubr.bf16.gmra.mxu0 %v9373_v45 }
  0x5e   : > { %8672 = vmatprep.mubr.bf16.mxu0 %v9375_v46 }
  0x65   : > { %8673 = vmatmul.mubr.bf16.gmra.mxu0 %v9376_v47  ;;  %v9435_v47 = vld [vmem:[%s11682_s3 + $0xa8] sm:$0xff]  }
  0x66   : > { %8676 = vmatprep.mubr.bf16.mxu0 %v9379_v48 }
  0x6d   : > { %8677 = vmatmul.mubr.bf16.gmra.mxu0 %v9380_v49 }
  0x6e   : > { %8680 = vmatprep.mubr.bf16.mxu0 %v9383_v50 }
  0x75   : > { %8681 = vmatmul.mubr.bf16.gmra.mxu0 %v9384_v54 }
  0x76   : > { %8684 = vmatprep.mubr.bf16.mxu0 %v9387_v56 }
  0x7d   : > { %8685 = vmatmul.mubr.bf16.gmra.mxu0 %v9388_v60 }
  0x7e   : > { %8688 = vmatprep.mubr.bf16.mxu0 %v9392_v61 }
  0x85   : > { %8689 = vmatmul.mubr.bf16.gmra.mxu0 %v9393_v1 }
  0xed   : > { %v8646_v6 = vpop.f32.mrf.mxu0 }
  0xee   : > { %v798_v9 = vmax.f32 %v8646_v6, 0.0 }
  0xef   : > { %v605_v7 = vpop.f32.mrf.mxu0  ;;  %v8710_v43 = vpop.f32.mrf.mxu1 }
  0xf0   : > { %v796_v12 = vmax.f32 %v605_v7, 0.0  ;;  %v1375_v58 = vmax.f32 %v8710_v43, 0.0 }
  0xf1   : > { %v8647_v8 = vpop.f32.mrf.mxu0  ;;  %v1278_v53 = vpop.f32.mrf.mxu1 }
  0xf2   : > { %v799_v10 = vmax.f32 %v8647_v8, 0.0 }
  0xf3   : > { %v608_v11 = vpop.f32.mrf.mxu0  ;;  %v8711_v63 = vpop.f32.mrf.mxu1 }
  0xf4   : > { %v7830_v13 = vpack.c.bf16 %v799_v10, %v798_v9  ;;  %v797_v14 = vmax.f32 %v608_v11, 0.0  ;;  %v1376_v9 = vmax.f32 %v8711_v63, 0.0 }
  0xf5   : > { %v8650_v15 = vpop.f32.mrf.mxu0  ;;  %v1281_v10 = vpop.f32.mrf.mxu1 }
  0xf6   : > { %8209 = vst [vmem:[#allocation2 + $0x8] sm:$0xff] %v7830_v13   ;;  %v7825_v16 = vpack.c.bf16 %v797_v14, %v796_v12  ;;  %v802_v19 = vmax.f32 %v8650_v15, 0.0  ;;  %v1374_v14 = vmax.f32 %v1281_v10, 0.0 }
  0xf7   : > { %v621_v17 = vpop.f32.mrf.mxu0 }
  0xf8   : > { %7826 = vst [vmem:[#allocation2] sm:$0xff] %v7825_v16   ;;  %v800_v22 = vmax.f32 %v621_v17, 0.0  ;;  %v7950_v17 = vpack.c.bf16 %v1376_v9, %v1375_v58 }
  0xf9   : > { %v8651_v18 = vpop.f32.mrf.mxu0 }
  0xfa   : > { %v803_v20 = vmax.f32 %v8651_v18, 0.0  ;;  %8233 = vst [vmem:[#allocation2 + $0xc8] sm:$0xff] %v7950_v17  }
  0xfb   : > { %v624_v21 = vpop.f32.mrf.mxu0 }
  0xfc   : > { %v7840_v23 = vpack.c.bf16 %v803_v20, %v802_v19  ;;  %v801_v24 = vmax.f32 %v624_v21, 0.0  ;;  %v9880_v20 = vpop.f32.mrf.mxu1 }
  0xfd   : > { %v8654_v25 = vpop.f32.mrf.mxu0  ;;  %v9862_v27 = vld [vmem:[#allocation2 + $0x8] sm:$0xff]  }
  0xfe   : > { %8211 = vst [vmem:[#allocation2 + $0x18] sm:$0xff] %v7840_v23   ;;  %v7835_v26 = vpack.c.bf16 %v801_v24, %v800_v22  ;;  %v9419_v31 = vld [vmem:[#allocation2 + $0x8] sm:$0xff]   ;;  %v2250_v34 = vshll.u32 %v9862_v27, 16  ;;  %v806_v37 = vmax.f32 %v8654_v25, 0.0  ;;  %v2254_v42 = vshrl.u32 %v9862_v27, 16  ;;  %v9449_v24 = vld [vmem:[%s11682_s3 + $0x98] sm:$0xff]  }
  0xff   : > { %v637_v29 = vpop.f32.mrf.mxu0  ;;  %v9417_v30 = vld [vmem:[#allocation2] sm:$0xff]   ;;  %v2805_v49 = vrot.slane %v9862_v27, 1  ;;  %v9461_v27 = vld [vmem:[%s11682_s3 + $0xf0] sm:$0xff]  }
 0x100   : > { %8210 = vst [vmem:[#allocation2 + $0x10] sm:$0xff] %v7835_v26   ;;  %v2053_v32 = vld [vmem:[#allocation2] sm:$0xf]  ;;  %v2054_v33 = vld [vmem:[#allocation2 + $0x4] sm:$0xf]  ;;  %8748 = vmatprep.mubr.bf16.mxu1 %v9417_v30  ;;  %v804_v39 = vmax.f32 %v637_v29, 0.0 }
 0x101   : > { %v8655_v35 = vpop.f32.mrf.mxu0  ;;  %v7458_v36 = vcombine.low %v2053_v32, %v2054_v33  ;;  %8749 = vmatmul.mubr.bf16.vlgmr.msra.gmra.mxu1 %v9419_v31  ;;  %v2252_v46 = vrot.slane %v2250_v34, 1  ;;  %v2783_v48 = vld [vmem:[#allocation2] sm:$0xe]  ;;  %v1294_v31 = vpop.f32.mrf.mxu1 }
 0x102   : > { %v807_v38 = vmax.f32 %v8655_v35, 0.0  ;;  %8861 = vmatpush3.bf16.msra.mxu1 %v9418_v3  ;;  %v7491_v0 = vcombine.low %v2783_v48, %v2054_v33  ;;  %v1373_v3 = vmax.f32 %v1278_v53, 0.0 }
 0x103   : > { %v640_v40 = vpop.f32.mrf.mxu0  ;;  %v2245_v41 = vshll.u32 %v7458_v36, 16  ;;  %8862 = vmatprep.subr.bf16.mxu1 %v9427_v28  ;;  %v2243_v51 = vshrl.u32 %v7458_v36, 16  ;;  %v2256_v1 = vor.u32 %v2254_v42, %v2252_v46  ;;  %v8715_v43 = vpop.f32.mrf.mxu1 }
 0x104   : > { %v7850_v44 = vpack.c.bf16 %v807_v38, %v806_v37  ;;  %v805_v45 = vmax.f32 %v640_v40, 0.0  ;;  %v2804_v18 = vrot.slane %v7491_v0, 1  ;;  %v7945_v25 = vpack.c.bf16 %v1374_v14, %v1373_v3  ;;  %v9456_v38 = vld [vmem:[%s11682_s3 + $0x90] sm:$0xff]   ;;  %v9465_v0 = vld [vmem:[%s11682_s3 + $0x88] sm:$0xff]   ;;  %v9477_v3 = vld [vmem:[%s11682_s3 + $0xe0] sm:$0xff]  }
 0x105   : > { %v8658_v50 = vpop.f32.mrf.mxu0  ;;  %v2247_v52 = vrot.slane %v2245_v41, 1  ;;  %v9425_v55 = vld [vmem:[#allocation2 + $0x18] sm:$0xff]   ;;  %v9468_v41 = vld [vmem:[%s11682_s3 + $0xe8] sm:$0xff]   ;;  %v9472_v14 = vld [vmem:[%s11682_s3 + $0x80] sm:$0xff]  }
 0x106   : > { %8213 = vst [vmem:[#allocation2 + $0x28] sm:$0xff] %v7850_v44   ;;  %v7845_v54 = vpack.c.bf16 %v805_v45, %v804_v39  ;;  %v9873_v56 = vld [vmem:[#allocation2 + $0x18] sm:$0xff]   ;;  %v810_v59 = vmax.f32 %v8658_v50, 0.0  ;;  %8863 = vmatpush3.bf16.msra.mxu1 %v9427_v28  ;;  %v9889_v28 = vsel %vm2803_vm0, %v2804_v18, %v2805_v49  ;;  %8232 = vst [vmem:[#allocation2 + $0xc0] sm:$0xff] %v7945_v25  }
 0x107   : > { %v653_v60 = vpop.f32.mrf.mxu0  ;;  %v2248_v61 = vor.u32 %v2247_v52, %v2243_v51  ;;  %v9424_v62 = vld [vmem:[#allocation2 + $0x10] sm:$0xff]   ;;  %8864 = vmatprep.subr.bf16.mxu1 %v9435_v47  ;;  %v2266_v8 = vshll.u32 %v9873_v56, 16  ;;  %v2809_v30 = vrot.slane %v9873_v56, 1  ;;  %v2270_v36 = vshrl.u32 %v9873_v56, 16  ;;  %v1297_v52 = vpop.f32.mrf.mxu1 }
 0x108   : > { %8212 = vst [vmem:[#allocation2 + $0x20] sm:$0xff] %v7845_v54   ;;  %v9428_v2 = vld [vmem:[#allocation2 + $0x10] sm:$0xff]   ;;  %v808_v4 = vmax.f32 %v653_v60, 0.0  ;;  %8752 = vmatprep.mubr.bf16.mxu1 %v9424_v62  ;;  %v1379_v51 = vmax.f32 %v9880_v20, 0.0  ;;  %v1378_v60 = vmax.f32 %v1297_v52, 0.0 }
 0x109   : > { %v8659_v6 = vpop.f32.mrf.mxu0  ;;  %v2253_v7 = vsel %vm2241_vm1, %v2248_v61, %v2252_v46  ;;  %8753 = vmatmul.mubr.bf16.gmra.mxu1 %v9425_v55  ;;  %v2258_v12 = vshll.u32 %v9428_v2, 16  ;;  %v2262_v13 = vshrl.u32 %v9428_v2, 16  ;;  %v2268_v16 = vrot.slane %v2266_v8, 1 }
 0x10a   : > { %v811_v11 = vmax.f32 %v8659_v6, 0.0  ;;  %8812 = vmatprep.mubr.bf16.mxu0 %v2253_v7  ;;  %8865 = vmatpush3.bf16.msra.mxu1 %v9435_v47  ;;  %v2807_v19 = vrot.slane %v9428_v2, 1 }
 0x10b   : > { %v656_v15 = vpop.f32.mrf.mxu0  ;;  %v2260_v23 = vrot.slane %v2258_v12, 1  ;;  %8866 = vmatprep.subr.bf16.mxu1 %v9441_v57  ;;  %v2272_v46 = vor.u32 %v2270_v36, %v2268_v16 }
 0x10c   : > { %v7860_v21 = vpack.c.bf16 %v811_v11, %v810_v59  ;;  %v809_v22 = vmax.f32 %v656_v15, 0.0  ;;  %v9892_v29 = vsel %vm2803_vm0, %v2805_v49, %v2807_v19  ;;  %v9906_v42 = vsel %vm2803_vm0, %v2807_v19, %v2809_v30 }
 0x10d   : > { %v8662_v26 = vpop.f32.mrf.mxu0  ;;  %v2261_v33 = vsel %vm2241_vm1, %v2256_v1, %v2260_v23  ;;  %v2264_v34 = vor.u32 %v2262_v13, %v2260_v23  ;;  %v9431_v35 = vld [vmem:[#allocation2 + $0x28] sm:$0xff]   ;;  %v1380_v59 = vmax.f32 %v8715_v43, 0.0 }
 0x10e   : > { %8215 = vst [vmem:[#allocation2 + $0x38] sm:$0xff] %v7860_v21   ;;  %v7855_v32 = vpack.c.bf16 %v809_v22, %v808_v4  ;;  %v9897_v37 = vld [vmem:[#allocation2 + $0x28] sm:$0xff]   ;;  %8813 = vmatmul.mubr.bf16.vlgmr.msra.gmra.mxu0 %v2261_v33  ;;  %8867 = vmatpush3.bf16.msra.mxu1 %v9441_v57  ;;  %v814_v47 = vmax.f32 %v8662_v26, 0.0  ;;  %v9480_v22 = vld [vmem:[%s11682_s3 + $0xd8] sm:$0xff]   ;;  %v8718_v33 = vpop.f32.mrf.mxu1 }
 0x10f   : > { %v669_v39 = vpop.f32.mrf.mxu0  ;;  %v9430_v40 = vld [vmem:[#allocation2 + $0x20] sm:$0xff]   ;;  %v2269_v44 = vsel %vm2241_vm1, %v2264_v34, %v2268_v16  ;;  %8868 = vmatprep.subr.bf16.mxu1 %v9449_v24  ;;  %8925 = vmatpush3.bf16.msra.mxu0 %v9859_v5  ;;  %v2282_v50 = vshll.u32 %v9897_v37, 16  ;;  %v2813_v56 = vrot.slane %v9897_v37, 1  ;;  %v1377_v5 = vmax.f32 %v1294_v31, 0.0  ;;  %v9984_v33 = vld [vmem:[%s11682_s3 + $0x178] sm:$0xff]  }
 0x110   : > { %8214 = vst [vmem:[#allocation2 + $0x30] sm:$0xff] %v7855_v32   ;;  %v9432_v45 = vld [vmem:[#allocation2 + $0x20] sm:$0xff]   ;;  %v812_v48 = vmax.f32 %v669_v39, 0.0  ;;  %8816 = vmatprep.mubr.bf16.mxu0 %v2269_v44  ;;  %8756 = vmatprep.mubr.bf16.mxu1 %v9430_v40  ;;  %v7960_v6 = vpack.c.bf16 %v1380_v59, %v1379_v51  ;;  %v2286_v21 = vshrl.u32 %v9897_v37, 16  ;;  %v9943_v39 = vld [vmem:[%s11682_s3 + $0x138] sm:$0xff]   ;;  %v9485_v59 = vld [vmem:[%s11682_s3 + $0xc8] sm:$0xff]  }
 0x111   : > { %v8663_v49 = vpop.f32.mrf.mxu0  ;;  %8757 = vmatmul.mubr.bf16.gmra.mxu1 %v9431_v35  ;;  %v2274_v54 = vshll.u32 %v9432_v45, 16  ;;  %8926 = vmatprep.subr.bf16.mxu0 %v9461_v27  ;;  %v2811_v55 = vrot.slane %v9432_v45, 1  ;;  %v2278_v58 = vshrl.u32 %v9432_v45, 16  ;;  %v7955_v7 = vpack.c.bf16 %v1378_v60, %v1377_v5  ;;  %v1310_v45 = vpop.f32.mrf.mxu1 }
 0x112   : > { %v815_v53 = vmax.f32 %v8663_v49, 0.0  ;;  %8869 = vmatpush3.bf16.msra.mxu1 %v9449_v24  ;;  %v2284_v11 = vrot.slane %v2282_v50, 1  ;;  %8235 = vst [vmem:[#allocation2 + $0xd8] sm:$0xff] %v7960_v6  }
 0x113   : > { %v672_v57 = vpop.f32.mrf.mxu0  ;;  %v2276_v63 = vrot.slane %v2274_v54, 1  ;;  %8870 = vmatprep.subr.bf16.mxu1 %v9456_v38  ;;  %8927 = vmatpush3.bf16.msra.mxu0 %v9461_v27  ;;  %v9917_v1 = vsel %vm2803_vm0, %v2809_v30, %v2811_v55  ;;  %v9925_v4 = vsel %vm2803_vm0, %v2811_v55, %v2813_v56  ;;  %8234 = vst [vmem:[#allocation2 + $0xd0] sm:$0xff] %v7955_v7   ;;  %v8719_v55 = vpop.f32.mrf.mxu1 }
 0x114   : > { %v7870_v61 = vpack.c.bf16 %v815_v53, %v814_v47  ;;  %v813_v62 = vmax.f32 %v672_v57, 0.0  ;;  %8928 = vmatprep.subr.bf16.mxu0 %v9468_v41  ;;  %v2288_v30 = vor.u32 %v2286_v21, %v2284_v11 }
 0x115   : > { %v8666_v2 = vpop.f32.mrf.mxu0  ;;  %v2277_v9 = vsel %vm2241_vm1, %v2272_v46, %v2276_v63  ;;  %v2280_v10 = vor.u32 %v2278_v58, %v2276_v63  ;;  %v9436_v12 = vld [vmem:[#allocation2 + $0x38] sm:$0xff]  }
 0x116   : > { %8217 = vst [vmem:[#allocation2 + $0x48] sm:$0xff] %v7870_v61   ;;  %v7865_v8 = vpack.c.bf16 %v813_v62, %v812_v48  ;;  %v9928_v13 = vld [vmem:[#allocation2 + $0x38] sm:$0xff]   ;;  %8817 = vmatmul.mubr.bf16.gmra.mxu0 %v2277_v9  ;;  %8871 = vmatpush3.bf16.msra.mxu1 %v9456_v38  ;;  %v818_v19 = vmax.f32 %v8666_v2, 0.0 }
 0x117   : > { %v685_v15 = vpop.f32.mrf.mxu0  ;;  %v9434_v16 = vld [vmem:[#allocation2 + $0x30] sm:$0xff]   ;;  %v2285_v17 = vsel %vm2241_vm1, %v2280_v10, %v2284_v11  ;;  %8872 = vmatprep.subr.bf16.mxu1 %v9465_v0  ;;  %8929 = vmatpush3.bf16.msra.mxu0 %v9468_v41  ;;  %v2298_v26 = vshll.u32 %v9928_v13, 16  ;;  %v2817_v32 = vrot.slane %v9928_v13, 1  ;;  %v2302_v5 = vshrl.u32 %v9928_v13, 16 }
 0x118   : > { %8216 = vst [vmem:[#allocation2 + $0x40] sm:$0xff] %v7865_v8   ;;  %v9437_v18 = vld [vmem:[#allocation2 + $0x30] sm:$0xff]   ;;  %8820 = vmatprep.mubr.bf16.mxu0 %v2285_v17  ;;  %8760 = vmatprep.mubr.bf16.mxu1 %v9434_v16  ;;  %v816_v23 = vmax.f32 %v685_v15, 0.0 }
 0x119   : > { %v8667_v20 = vpop.f32.mrf.mxu0  ;;  %8761 = vmatmul.mubr.bf16.gmra.mxu1 %v9436_v12  ;;  %v2290_v25 = vshll.u32 %v9437_v18, 16  ;;  %8930 = vmatprep.subr.bf16.mxu0 %v9477_v3  ;;  %v2815_v31 = vrot.slane %v9437_v18, 1  ;;  %v2294_v38 = vshrl.u32 %v9437_v18, 16  ;;  %v9483_v41 = vld [vmem:[%s11682_s3 + $0xd0] sm:$0xff]   ;;  %v2300_v49 = vrot.slane %v2298_v26, 1 }
 0x11a   : > { %v819_v24 = vmax.f32 %v8667_v20, 0.0  ;;  %8873 = vmatpush3.bf16.msra.mxu1 %v9465_v0  ;;  %v1313_v0 = vpop.f32.mrf.mxu1 }
 0x11b   : > { %v688_v27 = vpop.f32.mrf.mxu0  ;;  %v2292_v36 = vrot.slane %v2290_v25, 1  ;;  %8874 = vmatprep.subr.bf16.mxu1 %v9472_v14  ;;  %8931 = vmatpush3.bf16.msra.mxu0 %v9477_v3  ;;  %v9951_v43 = vsel %vm2803_vm0, %v2813_v56, %v2815_v31  ;;  %v9954_v44 = vsel %vm2803_vm0, %v2815_v31, %v2817_v32  ;;  %v2304_v3 = vor.u32 %v2302_v5, %v2300_v49 }
 0x11c   : > { %v7880_v34 = vpack.c.bf16 %v819_v24, %v818_v19  ;;  %v817_v35 = vmax.f32 %v688_v27, 0.0  ;;  %8932 = vmatprep.subr.bf16.mxu0 %v9480_v22  ;;  %v8722_v12 = vpop.f32.mrf.mxu1 }
 0x11d   : > { %v8670_v40 = vpop.f32.mrf.mxu0  ;;  %v2293_v47 = vsel %vm2241_vm1, %v2288_v30, %v2292_v36  ;;  %v2296_v48 = vor.u32 %v2294_v38, %v2292_v36  ;;  %v9440_v50 = vld [vmem:[#allocation2 + $0x48] sm:$0xff]  }
 0x11e   : > { %8219 = vst [vmem:[#allocation2 + $0x58] sm:$0xff] %v7880_v34   ;;  %v7875_v46 = vpack.c.bf16 %v817_v35, %v816_v23  ;;  %v9957_v51 = vld [vmem:[#allocation2 + $0x48] sm:$0xff]   ;;  %8821 = vmatmul.mubr.bf16.gmra.mxu0 %v2293_v47  ;;  %8875 = vmatpush3.bf16.msra.mxu1 %v9472_v14  ;;  %v822_v56 = vmax.f32 %v8670_v40, 0.0  ;;  %v9487_v14 = vld [vmem:[%s11682_s3 + $0xc0] sm:$0xff]   ;;  %v1326_v27 = vpop.f32.mrf.mxu1 }
 0x11f   : > { %v701_v52 = vpop.f32.mrf.mxu0  ;;  %v9439_v53 = vld [vmem:[#allocation2 + $0x40] sm:$0xff]   ;;  %v2301_v37 = vsel %vm2241_vm1, %v2296_v48, %v2300_v49  ;;  %8933 = vmatpush3.bf16.msra.mxu0 %v9480_v22  ;;  %8988 = vmatprep.subr.bf16.mxu1 %v9943_v39  ;;  %v2314_v62 = vshll.u32 %v9957_v51, 16  ;;  %v2821_v7 = vrot.slane %v9957_v51, 1  ;;  %v2318_v26 = vshrl.u32 %v9957_v51, 16 }
 0x120   : > { %8218 = vst [vmem:[#allocation2 + $0x50] sm:$0xff] %v7875_v46   ;;  %v9442_v54 = vld [vmem:[#allocation2 + $0x40] sm:$0xff]   ;;  %v820_v57 = vmax.f32 %v701_v52, 0.0  ;;  %8824 = vmatprep.mubr.bf16.mxu0 %v2301_v37  ;;  %8764 = vmatprep.mubr.bf16.mxu1 %v9439_v53  ;;  %v8723_v51 = vpop.f32.mrf.mxu1 }
 0x121   : > { %v8671_v58 = vpop.f32.mrf.mxu0  ;;  %8765 = vmatmul.mubr.bf16.gmra.mxu1 %v9440_v50  ;;  %v2306_v61 = vshll.u32 %v9442_v54, 16  ;;  %8934 = vmatprep.subr.bf16.mxu0 %v9483_v41  ;;  %v2819_v63 = vrot.slane %v9442_v54, 1  ;;  %v2310_v6 = vshrl.u32 %v9442_v54, 16  ;;  %v2316_v19 = vrot.slane %v2314_v62, 1 }
 0x122   : > { %v823_v60 = vmax.f32 %v8671_v58, 0.0  ;;  %v1329_v62 = vpop.f32.mrf.mxu1 }
 0x123   : > { %v704_v2 = vpop.f32.mrf.mxu0  ;;  %v2308_v10 = vrot.slane %v2306_v61, 1  ;;  %8935 = vmatpush3.bf16.msra.mxu0 %v9483_v41  ;;  %v9968_v11 = vsel %vm2803_vm0, %v2817_v32, %v2819_v63  ;;  %v9974_v15 = vsel %vm2803_vm0, %v2819_v63, %v2821_v7  ;;  %v2320_v41 = vor.u32 %v2318_v26, %v2316_v19 }
 0x124   : > { %v7890_v8 = vpack.c.bf16 %v823_v60, %v822_v56  ;;  %v821_v9 = vmax.f32 %v704_v2, 0.0  ;;  %8936 = vmatprep.subr.bf16.mxu0 %v9485_v59 }
 0x125   : > { %v8674_v13 = vpop.f32.mrf.mxu0  ;;  %v2309_v17 = vsel %vm2241_vm1, %v2304_v3, %v2308_v10  ;;  %v2312_v18 = vor.u32 %v2310_v6, %v2308_v10  ;;  %v9445_v20 = vld [vmem:[#allocation2 + $0x58] sm:$0xff]  }
 0x126   : > { %8221 = vst [vmem:[#allocation2 + $0x68] sm:$0xff] %v7890_v8   ;;  %v7885_v16 = vpack.c.bf16 %v821_v9, %v820_v57  ;;  %v9977_v21 = vld [vmem:[#allocation2 + $0x58] sm:$0xff]   ;;  %8825 = vmatmul.mubr.bf16.gmra.mxu0 %v2309_v17  ;;  %v826_v30 = vmax.f32 %v8674_v13, 0.0 }
 0x127   : > { %v717_v22 = vpop.f32.mrf.mxu0  ;;  %v9444_v23 = vld [vmem:[#allocation2 + $0x50] sm:$0xff]   ;;  %v2317_v24 = vsel %vm2241_vm1, %v2312_v18, %v2316_v19  ;;  %8937 = vmatpush3.bf16.msra.mxu0 %v9485_v59  ;;  %v2330_v36 = vshll.u32 %v9977_v21, 16  ;;  %v2825_v46 = vrot.slane %v9977_v21, 1  ;;  %v2334_v3 = vshrl.u32 %v9977_v21, 16 }
 0x128   : > { %8220 = vst [vmem:[#allocation2 + $0x60] sm:$0xff] %v7885_v16   ;;  %v9446_v25 = vld [vmem:[#allocation2 + $0x50] sm:$0xff]   ;;  %v824_v31 = vmax.f32 %v717_v22, 0.0  ;;  %8828 = vmatprep.mubr.bf16.mxu0 %v2317_v24  ;;  %8768 = vmatprep.mubr.bf16.mxu1 %v9444_v23 }
 0x129   : > { %v8675_v32 = vpop.f32.mrf.mxu0  ;;  %8769 = vmatmul.mubr.bf16.gmra.mxu1 %v9445_v20  ;;  %v2322_v35 = vshll.u32 %v9446_v25, 16  ;;  %8938 = vmatprep.subr.bf16.mxu0 %v9487_v14  ;;  %v2823_v38 = vrot.slane %v9446_v25, 1  ;;  %v2326_v45 = vshrl.u32 %v9446_v25, 16  ;;  %v2332_v56 = vrot.slane %v2330_v36, 1  ;;  %v8726_v20 = vpop.f32.mrf.mxu1 }
 0x12a   : > { %v827_v34 = vmax.f32 %v8675_v32, 0.0 }
 0x12b   : > { %v720_v40 = vpop.f32.mrf.mxu0  ;;  %v2324_v49 = vrot.slane %v2322_v35, 1  ;;  %8939 = vmatpush3.bf16.msra.mxu0 %v9487_v14  ;;  %v9989_v50 = vsel %vm2803_vm0, %v2821_v7, %v2823_v38  ;;  %v9992_v53 = vsel %vm2803_vm0, %v2823_v38, %v2825_v46  ;;  %v2336_v12 = vor.u32 %v2334_v3, %v2332_v56  ;;  %v1342_v38 = vpop.f32.mrf.mxu1 }
 0x12c   : > { %v7900_v47 = vpack.c.bf16 %v827_v34, %v826_v30  ;;  %v825_v48 = vmax.f32 %v720_v40, 0.0  ;;  %9052 = vmatprep.subr.bf16.mxu0 %v9984_v33 }
 0x12d   : > { %v8678_v52 = vpop.f32.mrf.mxu0  ;;  %v2325_v54 = vsel %vm2241_vm1, %v2320_v41, %v2324_v49  ;;  %v2328_v55 = vor.u32 %v2326_v45, %v2324_v49  ;;  %v9450_v57 = vld [vmem:[#allocation2 + $0x68] sm:$0xff]  }
 0x12e   : > { %8223 = vst [vmem:[#allocation2 + $0x78] sm:$0xff] %v7900_v47   ;;  %v7895_v37 = vpack.c.bf16 %v825_v48, %v824_v31  ;;  %v9996_v58 = vld [vmem:[#allocation2 + $0x68] sm:$0xff]   ;;  %8829 = vmatmul.mubr.bf16.gmra.mxu0 %v2325_v54  ;;  %v830_v63 = vmax.f32 %v8678_v52, 0.0 }
 0x12f   : > { %v733_v5 = vpop.f32.mrf.mxu0  ;;  %v9448_v59 = vld [vmem:[#allocation2 + $0x60] sm:$0xff]   ;;  %v2333_v60 = vsel %vm2241_vm1, %v2328_v55, %v2332_v56  ;;  %v2346_v8 = vshll.u32 %v9996_v58, 16  ;;  %v2829_v14 = vrot.slane %v9996_v58, 1  ;;  %v2350_v36 = vshrl.u32 %v9996_v58, 16 }
 0x130   : > { %8222 = vst [vmem:[#allocation2 + $0x70] sm:$0xff] %v7895_v37   ;;  %v9451_v61 = vld [vmem:[#allocation2 + $0x60] sm:$0xff]   ;;  %v828_v0 = vmax.f32 %v733_v5, 0.0  ;;  %8832 = vmatprep.mubr.bf16.mxu0 %v2333_v60  ;;  %8772 = vmatprep.mubr.bf16.mxu1 %v9448_v59  ;;  %v8727_v5 = vpop.f32.mrf.mxu1 }
 0x131   : > { %v8679_v2 = vpop.f32.mrf.mxu0  ;;  %8773 = vmatmul.mubr.bf16.gmra.mxu1 %v9450_v57  ;;  %v2338_v7 = vshll.u32 %v9451_v61, 16  ;;  %v2827_v9 = vrot.slane %v9451_v61, 1  ;;  %v2342_v13 = vshrl.u32 %v9451_v61, 16  ;;  %v2348_v26 = vrot.slane %v2346_v8, 1 }
 0x132   : > { %v831_v6 = vmax.f32 %v8679_v2, 0.0 }
 0x133   : > { %v736_v10 = vpop.f32.mrf.mxu0  ;;  %v2340_v18 = vrot.slane %v2338_v7, 1  ;;  %v10003_v19 = vsel %vm2803_vm0, %v2825_v46, %v2827_v9  ;;  %v10006_v21 = vsel %vm2803_vm0, %v2827_v9, %v2829_v14  ;;  %v2352_v52 = vor.u32 %v2350_v36, %v2348_v26 }
 0x134   : > { %v7910_v16 = vpack.c.bf16 %v831_v6, %v830_v63  ;;  %v829_v17 = vmax.f32 %v736_v10, 0.0  ;;  %v1345_v10 = vpop.f32.mrf.mxu1 }
 0x135   : > { %v8682_v22 = vpop.f32.mrf.mxu0  ;;  %v2341_v24 = vsel %vm2241_vm1, %v2336_v12, %v2340_v18  ;;  %v2344_v25 = vor.u32 %v2342_v13, %v2340_v18  ;;  %v9455_v27 = vld [vmem:[#allocation2 + $0x78] sm:$0xff]  }
 0x136   : > { %8225 = vst [vmem:[#allocation2 + $0x88] sm:$0xff] %v7910_v16   ;;  %v7905_v23 = vpack.c.bf16 %v829_v17, %v828_v0  ;;  %v10009_v30 = vld [vmem:[#allocation2 + $0x78] sm:$0xff]   ;;  %8833 = vmatmul.mubr.bf16.gmra.mxu0 %v2341_v24  ;;  %v834_v40 = vmax.f32 %v8682_v22, 0.0 }
 0x137   : > { %v749_v31 = vpop.f32.mrf.mxu0  ;;  %v9454_v32 = vld [vmem:[#allocation2 + $0x70] sm:$0xff]   ;;  %v2349_v34 = vsel %vm2241_vm1, %v2344_v25, %v2348_v26  ;;  %v2362_v48 = vshll.u32 %v10009_v30, 16  ;;  %v2833_v54 = vrot.slane %v10009_v30, 1  ;;  %v2366_v16 = vshrl.u32 %v10009_v30, 16 }
 0x138   : > { %8224 = vst [vmem:[#allocation2 + $0x80] sm:$0xff] %v7905_v23   ;;  %v9457_v35 = vld [vmem:[#allocation2 + $0x70] sm:$0xff]   ;;  %v832_v41 = vmax.f32 %v749_v31, 0.0  ;;  %8836 = vmatprep.mubr.bf16.mxu0 %v2349_v34  ;;  %8776 = vmatprep.mubr.bf16.mxu1 %v9454_v32 }
 0x139   : > { %v8683_v45 = vpop.f32.mrf.mxu0  ;;  %8777 = vmatmul.mubr.bf16.gmra.mxu1 %v9455_v27  ;;  %v2354_v47 = vshll.u32 %v9457_v35, 16  ;;  %v2831_v49 = vrot.slane %v9457_v35, 1  ;;  %v2358_v37 = vshrl.u32 %v9457_v35, 16  ;;  %v2364_v0 = vrot.slane %v2362_v48, 1  ;;  %v8730_v35 = vpop.f32.mrf.mxu1 }
 0x13a   : > { %v835_v46 = vmax.f32 %v8683_v45, 0.0 }
 0x13b   : > { %v752_v51 = vpop.f32.mrf.mxu0  ;;  %v2356_v57 = vrot.slane %v2354_v47, 1  ;;  %v10016_v58 = vsel %vm2803_vm0, %v2829_v14, %v2831_v49  ;;  %v10019_v60 = vsel %vm2803_vm0, %v2831_v49, %v2833_v54  ;;  %v2368_v24 = vor.u32 %v2366_v16, %v2364_v0 }
 0x13c   : > { %v7920_v55 = vpack.c.bf16 %v835_v46, %v834_v40  ;;  %v833_v56 = vmax.f32 %v752_v51, 0.0 }
 0x13d   : > { %v8686_v59 = vpop.f32.mrf.mxu0  ;;  %v2357_v62 = vsel %vm2241_vm1, %v2352_v52, %v2356_v57  ;;  %v2360_v63 = vor.u32 %v2358_v37, %v2356_v57  ;;  %v9460_v2 = vld [vmem:[#allocation2 + $0x88] sm:$0xff]  }
 0x13e   : > { %8227 = vst [vmem:[#allocation2 + $0x98] sm:$0xff] %v7920_v55   ;;  %v7915_v61 = vpack.c.bf16 %v833_v56, %v832_v41  ;;  %v10022_v3 = vld [vmem:[#allocation2 + $0x88] sm:$0xff]   ;;  %8837 = vmatmul.mubr.bf16.gmra.mxu0 %v2357_v62  ;;  %v838_v12 = vmax.f32 %v8686_v59, 0.0 }
 0x13f   : > { %v765_v6 = vpop.f32.mrf.mxu0  ;;  %v9459_v7 = vld [vmem:[#allocation2 + $0x80] sm:$0xff]   ;;  %v2365_v8 = vsel %vm2241_vm1, %v2360_v63, %v2364_v0  ;;  %v2378_v20 = vshll.u32 %v10022_v3, 16  ;;  %v2837_v26 = vrot.slane %v10022_v3, 1  ;;  %v2382_v37 = vshrl.u32 %v10022_v3, 16 }
 0x140   : > { %8226 = vst [vmem:[#allocation2 + $0x90] sm:$0xff] %v7915_v61   ;;  %v9462_v9 = vld [vmem:[#allocation2 + $0x80] sm:$0xff]   ;;  %v836_v13 = vmax.f32 %v765_v6, 0.0  ;;  %8840 = vmatprep.mubr.bf16.mxu0 %v2365_v8  ;;  %8780 = vmatprep.mubr.bf16.mxu1 %v9459_v7 }
 0x141   : > { %v8687_v14 = vpop.f32.mrf.mxu0  ;;  %8781 = vmatmul.mubr.bf16.gmra.mxu1 %v9460_v2  ;;  %v2370_v18 = vshll.u32 %v9462_v9, 16  ;;  %v2835_v22 = vrot.slane %v9462_v9, 1  ;;  %v2374_v25 = vshrl.u32 %v9462_v9, 16  ;;  %v2380_v45 = vrot.slane %v2378_v20, 1 }
 0x142   : > { %v839_v17 = vmax.f32 %v8687_v14, 0.0 }
 0x143   : > { %v768_v23 = vpop.f32.mrf.mxu0  ;;  %v2372_v32 = vrot.slane %v2370_v18, 1  ;;  %v10029_v34 = vsel %vm2803_vm0, %v2833_v54, %v2835_v22  ;;  %v10032_v30 = vsel %vm2803_vm0, %v2835_v22, %v2837_v26  ;;  %v1358_v54 = vpop.f32.mrf.mxu1  ;;  %v2384_v0 = vor.u32 %v2382_v37, %v2380_v45 }
 0x144   : > { %v7930_v27 = vpack.c.bf16 %v839_v17, %v838_v12  ;;  %v837_v31 = vmax.f32 %v768_v23, 0.0 }
 0x145   : > { %v8690_v36 = vpop.f32.mrf.mxu0  ;;  %v2373_v40 = vsel %vm2241_vm1, %v2368_v24, %v2372_v32  ;;  %v2376_v41 = vor.u32 %v2374_v25, %v2372_v32  ;;  %v9466_v46 = vld [vmem:[#allocation2 + $0x98] sm:$0xff]   ;;  %v8731_v10 = vpop.f32.mrf.mxu1 }
 0x146   : > { %8229 = vst [vmem:[#allocation2 + $0xa8] sm:$0xff] %v7930_v27   ;;  %v7925_v38 = vpack.c.bf16 %v837_v31, %v836_v13  ;;  %v9469_v47 = vld [vmem:[#allocation2 + $0x98] sm:$0xff]   ;;  %8841 = vmatmul.mubr.bf16.gmra.mxu0 %v2373_v40  ;;  %v842_v55 = vmax.f32 %v8690_v36, 0.0  ;;  %v9484_v27 = vld [vmem:[#allocation2 + $0xc0] ss:$0 sps:$4 sm:$0x11]  }
 0x147   : > { %v781_v48 = vpop.f32.mrf.mxu0  ;;  %v9464_v49 = vld [vmem:[#allocation2 + $0x90] sm:$0xff]   ;;  %v2381_v51 = vsel %vm2241_vm1, %v2376_v41, %v2380_v45  ;;  %v2394_v61 = vshll.u32 %v9469_v47, 16  ;;  %v2841_v6 = vrot.slane %v9469_v47, 1  ;;  %v1361_v25 = vpop.f32.mrf.mxu1  ;;  %v2851_v54 = vrot.slane %v9484_v27, 1 }
 0x148   : > { %8228 = vst [vmem:[#allocation2 + $0xa0] sm:$0xff] %v7925_v38   ;;  %v9467_v52 = vld [vmem:[#allocation2 + $0x90] sm:$0xff]   ;;  %v840_v56 = vmax.f32 %v781_v48, 0.0  ;;  %8844 = vmatprep.mubr.bf16.mxu0 %v2381_v51  ;;  %8784 = vmatprep.mubr.bf16.mxu1 %v9464_v49  ;;  %v9490_v25 = vld [vmem:[#allocation2 + $0x1c] sm:$0xff]  }
 0x149   : > { %v8691_v57 = vpop.f32.mrf.mxu0  ;;  %8785 = vmatmul.mubr.bf16.gmra.mxu1 %v9466_v46  ;;  %v2386_v59 = vshll.u32 %v9467_v52, 16  ;;  %v2839_v62 = vrot.slane %v9467_v52, 1  ;;  %v2390_v2 = vshrl.u32 %v9467_v52, 16  ;;  %v2396_v17 = vrot.slane %v2394_v61, 1 }
 0x14a   : > { %v843_v5 = vmax.f32 %v8691_v57, 0.0 }
 0x14b   : > { %v784_v63 = vpop.f32.mrf.mxu0  ;;  %v2388_v9 = vrot.slane %v2386_v59, 1  ;;  %v10038_v3 = vsel %vm2803_vm0, %v2837_v26, %v2839_v62  ;;  %v10041_v12 = vsel %vm2803_vm0, %v2839_v62, %v2841_v6  ;;  %v2398_v26 = vshrl.u32 %v9469_v47, 16 }
 0x14c   : > { %v7940_v7 = vpack.c.bf16 %v843_v5, %v842_v55  ;;  %v841_v8 = vmax.f32 %v784_v63, 0.0 }
 0x14d   : > { %v2389_v14 = vsel %vm2241_vm1, %v2384_v0, %v2388_v9  ;;  %v2392_v16 = vor.u32 %v2390_v2, %v2388_v9  ;;  %v9471_v18 = vld [vmem:[#allocation2 + $0xa8] sm:$0xff]   ;;  %v2400_v38 = vor.u32 %v2398_v26, %v2396_v17  ;;  %v9508_v26 = vld [vmem:[%s11682_s3 + $0x170] sm:$0xff]  }
 0x14e   : > { %8231 = vst [vmem:[#allocation2 + $0xb8] sm:$0xff] %v7940_v7   ;;  %v7935_v13 = vpack.c.bf16 %v841_v8, %v840_v56  ;;  %v9474_v20 = vld [vmem:[#allocation2 + $0xa8] sm:$0xff]   ;;  %8845 = vmatmul.mubr.bf16.gmra.mxu0 %v2389_v14  ;;  %v2434_v14 = vshll.u32 %v9484_v27, 16 }
 0x14f   : > { %v9470_v22 = vld [vmem:[#allocation2 + $0xa0] sm:$0xff]   ;;  %v2397_v23 = vsel %vm2241_vm1, %v2392_v16, %v2396_v17  ;;  %v2410_v32 = vshll.u32 %v9474_v20, 16  ;;  %v2845_v36 = vrot.slane %v9474_v20, 1  ;;  %v2414_v57 = vshrl.u32 %v9474_v20, 16  ;;  %v9488_v17 = vld [vmem:[%s11682_s3 + $0x130] sm:$0xff]   ;;  %v9511_v27 = vld [vmem:[%s11682_s3 + $0x108] sm:$0xff]  }
 0x150   : > { %8230 = vst [vmem:[#allocation2 + $0xb0] sm:$0xff] %v7935_v13   ;;  %v9473_v24 = vld [vmem:[#allocation2 + $0xa0] sm:$0xff]   ;;  %8848 = vmatprep.mubr.bf16.mxu0 %v2397_v23  ;;  %8788 = vmatprep.mubr.bf16.mxu1 %v9470_v22  ;;  %v2436_v20 = vrot.slane %v2434_v14, 1  ;;  %v9493_v22 = vld [vmem:[%s11682_s3 + $0x128] sm:$0xff]   ;;  %v9581_v14 = vld [vmem:[#allocation2 + $0x38] sm:$0xff]  }
 0x151   : > { %8789 = vmatmul.mubr.bf16.gmra.mxu1 %v9471_v18  ;;  %v2402_v31 = vshll.u32 %v9473_v24, 16  ;;  %v2843_v35 = vrot.slane %v9473_v24, 1  ;;  %v2406_v41 = vshrl.u32 %v9473_v24, 16  ;;  %v2412_v51 = vrot.slane %v2410_v32, 1  ;;  %v9486_v24 = vld [vmem:[#allocation2 + $0xc] sm:$0xff]  }
 0x152   : > { %v9492_v32 = vld [vmem:[#allocation2 + $0x2c] sm:$0xff]  }
 0x153   : > { %v2404_v40 = vrot.slane %v2402_v31, 1  ;;  %v10046_v45 = vsel %vm2803_vm0, %v2841_v6, %v2843_v35  ;;  %v10049_v46 = vsel %vm2803_vm0, %v2843_v35, %v2845_v36  ;;  %v2416_v63 = vor.u32 %v2414_v57, %v2412_v51  ;;  %v9491_v31 = vld [vmem:[#allocation2 + $0x24] sm:$0xff]   ;;  %v10112_v35 = vld [vmem:[%s11682_s3 + $0x1b8] sm:$0xff]  }
 0x154   : > { %v9516_v57 = vld [vmem:[#allocation2 + $0xa4] sm:$0xff]  }
 0x155   : > { %v2405_v48 = vsel %vm2241_vm1, %v2400_v38, %v2404_v40  ;;  %v2408_v49 = vor.u32 %v2406_v41, %v2404_v40  ;;  %v9476_v47 = vld [vmem:[#allocation2 + $0xb8] sm:$0xff]   ;;  %v9497_v40 = vld [vmem:[#allocation2 + $0x44] sm:$0xff]   ;;  %v9498_v41 = vld [vmem:[#allocation2 + $0x4c] sm:$0xff]  }
 0x156   : > { %v9481_v52 = vld [vmem:[#allocation2 + $0xb8] sm:$0xff]   ;;  %8849 = vmatmul.mubr.bf16.gmra.mxu0 %v2405_v48  ;;  %v9532_v48 = vld [vmem:[%s11682_s3 + $0x140] sm:$0xff]  }
 0x157   : > { %v9475_v37 = vld [vmem:[#allocation2 + $0xb0] sm:$0xff]   ;;  %v2413_v55 = vsel %vm2241_vm1, %v2408_v49, %v2412_v51  ;;  %v2849_v5 = vrot.slane %v9481_v52, 1  ;;  %v2426_v61 = vshll.u32 %v9481_v52, 16  ;;  %v2430_v16 = vshrl.u32 %v9481_v52, 16  ;;  %v9495_v38 = vld [vmem:[#allocation2 + $0x3c] sm:$0xff]   ;;  %v9509_v52 = vld [vmem:[#allocation2 + $0x84] sm:$0xff]  }
 0x158   : > { %v9479_v56 = vld [vmem:[#allocation2 + $0xb0] sm:$0xff]   ;;  %8852 = vmatprep.mubr.bf16.mxu0 %v2413_v55  ;;  %8792 = vmatprep.mubr.bf16.mxu1 %v9475_v37  ;;  %v9500_v49 = vld [vmem:[#allocation2 + $0x5c] sm:$0xff]   ;;  %v3727_v37 = vld [vmem:[#allocation2 + $0xc] sm:$0xf] }
 0x159   : > { %8793 = vmatmul.mubr.bf16.gmra.mxu1 %v9476_v47  ;;  %v2418_v59 = vshll.u32 %v9479_v56, 16  ;;  %v2847_v62 = vrot.slane %v9479_v56, 1  ;;  %v10055_v0 = vsel %vm2803_vm0, %v2849_v5, %v2851_v54  ;;  %v2422_v6 = vshrl.u32 %v9479_v56, 16  ;;  %v9503_v51 = vld [vmem:[#allocation2 + $0x6c] sm:$0xff]   ;;  %v9507_v47 = vld [vmem:[#allocation2 + $0x7c] sm:$0xff]  }
 0x15a   : > { %8876 = vmatprep.mubr.bf16.mxu1 %v9889_v28  ;;  %v2428_v13 = vrot.slane %v2426_v61, 1  ;;  %v9513_v55 = vld [vmem:[#allocation2 + $0x9c] sm:$0xff]   ;;  %v9517_v61 = vld [vmem:[#allocation2 + $0xac] sm:$0xff]  }
 0x15b   : > { %v2420_v2 = vrot.slane %v2418_v59, 1  ;;  %v10058_v7 = vsel %vm2803_vm0, %v2845_v36, %v2847_v62  ;;  %v10061_v8 = vsel %vm2803_vm0, %v2847_v62, %v2849_v5  ;;  %v9494_v36 = vld [vmem:[#allocation2 + $0x34] sm:$0xff]   ;;  %v10147_v56 = vld [vmem:[#allocation2 + $0x1c] sm:$0xff]  }
 0x15c   : > { %v2432_v18 = vor.u32 %v2430_v16, %v2428_v13  ;;  %v10152_v59 = vld [vmem:[#allocation2 + $0x20] sm:$0xff]  }
 0x15d   : > { %v2421_v9 = vsel %vm2241_vm1, %v2416_v63, %v2420_v2  ;;  %v2424_v10 = vor.u32 %v2422_v6, %v2420_v2  ;;  %v3931_v63 = vshll.u32 %v10147_v56, 16  ;;  %v9577_v2 = vld [vmem:[#allocation2 + $0x28] sm:$0xff]   ;;  %v9578_v6 = vld [vmem:[#allocation2 + $0x30] sm:$0xff]  }
 0x15e   : > { %8853 = vmatmul.mubr.bf16.gmra.mxu0 %v2421_v9  ;;  %v2437_v23 = vsel %vm2241_vm1, %v2432_v18, %v2436_v20  ;;  %v6128_v9 = vld [vmem:[#allocation2 + $0x18] sm:$0xe]  ;;  %v9582_v18 = vld [vmem:[#allocation2 + $0x40] sm:$0xff]   ;;  %v10165_v20 = vld [vmem:[#allocation2 + $0x48] sm:$0xff]  }
 0x15f   : > { %v2429_v28 = vsel %vm2241_vm1, %v2424_v10, %v2428_v13  ;;  %v10157_v10 = vld [vmem:[#allocation2 + $0x24] sm:$0xff]   ;;  %v6149_v13 = vrot.slane %v10152_v59, 1  ;;  %v3933_v16 = vrot.slane %v3931_v63, 1  ;;  %11687 = vst [vmem:[#allocation3_spill] sm:$0xff] %v10165_v20 }
 0x160   : > { %8856 = vmatprep.mubr.bf16.mxu0 %v2429_v28  ;;  %v9542_v63 = vld [vmem:[%s11682_s3 + $0x1a0] sm:$0xff]  }
 0x161   : > { %8877 = vmatmul.mubr.bf16.vlgmr.msra.gmra.mxu1 %v9892_v29  ;;  %v9496_v29 = vld [vmem:[%s11682_s3 + $0x120] sm:$0xff]  }
 0x162   : > { %8989 = vmatpush3.bf16.msra.mxu1 %v9943_v39  ;;  %8880 = vmatprep.mubr.bf16.mxu1 %v9906_v42  ;;  %v9501_v42 = vld [vmem:[%s11682_s3 + $0x118] sm:$0xff]  }
 0x163   : > { %8990 = vmatprep.subr.bf16.mxu1 %v9488_v17  ;;  %v9489_v39 = vld [vmem:[#allocation2 + $0x14] sm:$0xff]  }
 0x166   : > { %8857 = vmatmul.mubr.bf16.gmra.mxu0 %v2437_v23  ;;  %8991 = vmatpush3.bf16.msra.mxu1 %v9488_v17  ;;  %v10163_v17 = vld [vmem:[#allocation2 + $0x2c] sm:$0xff]   ;;  %v6151_v23 = vrot.slane %v9577_v2, 1 }
 0x167   : > { %8940 = vmatprep.mubr.bf16.mxu0 %v9486_v24  ;;  %8992 = vmatprep.subr.bf16.mxu1 %v9493_v22  ;;  %v6153_v24 = vrot.slane %v9578_v6, 1 }
 0x169   : > { %8881 = vmatmul.mubr.bf16.gmra.mxu1 %v9917_v1  ;;  %v9505_v1 = vld [vmem:[%s11682_s3 + $0x110] sm:$0xff]  }
 0x16a   : > { %8884 = vmatprep.mubr.bf16.mxu1 %v9925_v4  ;;  %8993 = vmatpush3.bf16.msra.mxu1 %v9493_v22  ;;  %v9514_v4 = vld [vmem:[%s11682_s3 + $0x168] sm:$0xff]  }
 0x16b   : > { %8994 = vmatprep.subr.bf16.mxu1 %v9496_v29 }
 0x16e   : > { %8941 = vmatmul.mubr.bf16.vlgmr.msra.gmra.mxu0 %v9489_v39  ;;  %8995 = vmatpush3.bf16.msra.mxu1 %v9496_v29  ;;  %v3935_v29 = vshrl.u32 %v10147_v56, 16 }
 0x16f   : > { %8944 = vmatprep.mubr.bf16.mxu0 %v9490_v25  ;;  %8996 = vmatprep.subr.bf16.mxu1 %v9501_v42 }
 0x170   : > { %9053 = vmatpush3.bf16.msra.mxu0 %v9984_v33  ;;  %v9522_v33 = vld [vmem:[%s11682_s3 + $0x158] sm:$0xff]  }
 0x171   : > { %8885 = vmatmul.mubr.bf16.gmra.mxu1 %v9951_v43  ;;  %9054 = vmatprep.subr.bf16.mxu0 %v9508_v26  ;;  %v9518_v43 = vld [vmem:[%s11682_s3 + $0x160] sm:$0xff]  }
 0x172   : > { %8888 = vmatprep.mubr.bf16.mxu1 %v9954_v44  ;;  %8997 = vmatpush3.bf16.msra.mxu1 %v9501_v42  ;;  %v9515_v44 = vld [vmem:[%s11682_s3 + $0x100] sm:$0xff]   ;;  %v3939_v42 = vshll.u32 %v10157_v10, 16 }
 0x173   : > { %8998 = vmatprep.subr.bf16.mxu1 %v9505_v1 }
 0x174   : > { %9055 = vmatpush3.bf16.msra.mxu0 %v9508_v26  ;;  %v9521_v26 = vld [vmem:[#allocation2 + $0xb4] sm:$0xff]  }
 0x175   : > { %9056 = vmatprep.subr.bf16.mxu0 %v9514_v4 }
 0x176   : > { %8945 = vmatmul.mubr.bf16.gmra.mxu0 %v9491_v31  ;;  %8999 = vmatpush3.bf16.msra.mxu1 %v9505_v1  ;;  %v10177_v1 = vsel %vm2803_vm0, %v6151_v23, %v6153_v24  ;;  %v3937_v31 = vor.u32 %v3935_v29, %v3933_v16 }
 0x177   : > { %8948 = vmatprep.mubr.bf16.mxu0 %v9492_v32  ;;  %9000 = vmatprep.subr.bf16.mxu1 %v9511_v27  ;;  %11690 = vst [vmem:[#allocation6_spill] sm:$0xff] %v10177_v1  ;;  %v4456_v32 = vld [vmem:[#allocation2 + $0xc] sm:$0xe]  ;;  %v10468_v1 = vld [vmem:[#allocation2 + $0xb4] sm:$0xff]  }
 0x178   : > { %9057 = vmatpush3.bf16.msra.mxu0 %v9514_v4  ;;  %v6155_v4 = vrot.slane %v9581_v14, 1  ;;  %v10227_v14 = vld [vmem:[%s11683_s4] ss:$0 sm:$0xff] }
 0x179   : > { %8889 = vmatmul.mubr.bf16.gmra.mxu1 %v9968_v11  ;;  %9058 = vmatprep.subr.bf16.mxu0 %v9518_v43  ;;  %v9526_v11 = vld [vmem:[%s11682_s3 + $0x150] sm:$0xff]  }
 0x17a   : > { %8892 = vmatprep.mubr.bf16.mxu1 %v9974_v15  ;;  %9001 = vmatpush3.bf16.msra.mxu1 %v9511_v27  ;;  %v9529_v15 = vld [vmem:[%s11682_s3 + $0x148] sm:$0xff]   ;;  %v9523_v27 = vld [vmem:[#allocation2 + $0xbc] sm:$0xff]  }
 0x17b   : > { %9002 = vmatprep.subr.bf16.mxu1 %v9515_v44 }
 0x17c   : > { %9059 = vmatpush3.bf16.msra.mxu0 %v9518_v43  ;;  %v3947_v43 = vshll.u32 %v10163_v17, 16 }
 0x17d   : > { %9060 = vmatprep.subr.bf16.mxu0 %v9522_v33 }
 0x17e   : > { %8949 = vmatmul.mubr.bf16.gmra.mxu0 %v9494_v36  ;;  %9003 = vmatpush3.bf16.msra.mxu1 %v9515_v44  ;;  %v11685_v44 = vrot.slane %v10165_v20, 1 }
 0x17f   : > { %8952 = vmatprep.mubr.bf16.mxu0 %v9495_v38  ;;  %9116 = vmatprep.subr.bf16.mxu1 %v10112_v35 }
 0x180   : > { %9061 = vmatpush3.bf16.msra.mxu0 %v9522_v33  ;;  %v6157_v33 = vrot.slane %v9582_v18, 1 }
 0x181   : > { %8893 = vmatmul.mubr.bf16.gmra.mxu1 %v9989_v50  ;;  %9062 = vmatprep.subr.bf16.mxu0 %v9526_v11  ;;  %v10130_v50 = vld [vmem:[%s11682_s3 + $0x1f8] sm:$0xff]  }
 0x182   : > { %8896 = vmatprep.mubr.bf16.mxu1 %v9992_v53  ;;  %v9499_v53 = vld [vmem:[#allocation2 + $0x54] sm:$0xff]  }
 0x184   : > { %9063 = vmatpush3.bf16.msra.mxu0 %v9526_v11  ;;  %v10183_v11 = vsel %vm2803_vm0, %v6153_v24, %v6155_v4 }
 0x185   : > { %9064 = vmatprep.subr.bf16.mxu0 %v9529_v15  ;;  %11691 = vst [vmem:[#allocation7_spill] sm:$0xff] %v10183_v11 }
 0x186   : > { %8953 = vmatmul.mubr.bf16.gmra.mxu0 %v9497_v40  ;;  %v10185_v40 = vld [vmem:[#allocation2 + $0x34] sm:$0xff]  }
 0x187   : > { %8956 = vmatprep.mubr.bf16.mxu0 %v9498_v41  ;;  %v9534_v41 = vld [vmem:[%s11682_s3 + $0x1b0] sm:$0xff]  }
 0x188   : > { %9065 = vmatpush3.bf16.msra.mxu0 %v9529_v15  ;;  %v3941_v15 = vrot.slane %v3939_v42, 1 }
 0x189   : > { %8897 = vmatmul.mubr.bf16.gmra.mxu1 %v10003_v19  ;;  %9066 = vmatprep.subr.bf16.mxu0 %v9532_v48  ;;  %v9502_v19 = vld [vmem:[#allocation2 + $0x64] sm:$0xff]  }
 0x18a   : > { %8900 = vmatprep.mubr.bf16.mxu1 %v10006_v21  ;;  %v9506_v21 = vld [vmem:[#allocation2 + $0x74] sm:$0xff]  }
 0x18c   : > { %9067 = vmatpush3.bf16.msra.mxu0 %v9532_v48  ;;  %v10191_v48 = vsel %vm2803_vm0, %v6155_v4, %v6157_v33 }
 0x18d   : > { %9180 = vmatprep.subr.bf16.mxu0 %v10130_v50  ;;  %11692 = vst [vmem:[#allocation8_spill] sm:$0xff] %v10191_v48 }
 0x18e   : > { %8957 = vmatmul.mubr.bf16.gmra.mxu0 %v9499_v53  ;;  %v10196_v53 = vsel %vm2803_vm0, %v6157_v33, %v11685_v44  ;;  %v10442_v44 = vld [vmem:[#allocation2 + $0xa4] sm:$0xff]  }
 0x18f   : > { %8960 = vmatprep.mubr.bf16.mxu0 %v9500_v49  ;;  %11693 = vst [vmem:[#allocation9_spill] sm:$0xff] %v10196_v53 }
 0x191   : > { %8901 = vmatmul.mubr.bf16.gmra.mxu1 %v10016_v58  ;;  %v10140_v58 = vld [vmem:[#allocation2 + $0x10] sm:$0xf] }
 0x192   : > { %8904 = vmatprep.mubr.bf16.mxu1 %v10019_v60  ;;  %v9510_v60 = vld [vmem:[#allocation2 + $0x8c] sm:$0xff]   ;;  %v7532_v54 = vcombine.low %v3727_v37, %v10140_v58  ;;  %v7565_v38 = vcombine.low %v4456_v32, %v10140_v58  ;;  %v3951_v37 = vshrl.u32 %v10163_v17, 16 }
 0x194   : > { %v3916_v5 = vshrl.u32 %v7532_v54, 16 }
 0x196   : > { %8961 = vmatmul.mubr.bf16.gmra.mxu0 %v9502_v19 }
 0x197   : > { %8964 = vmatprep.mubr.bf16.mxu0 %v9503_v51  ;;  %v3942_v51 = vsel %vm2241_vm1, %v3937_v31, %v3941_v15 }
 0x199   : > { %8905 = vmatmul.mubr.bf16.gmra.mxu1 %v10029_v34  ;;  %v9512_v34 = vld [vmem:[#allocation2 + $0x94] sm:$0xff]  }
 0x19a   : > { %8908 = vmatprep.mubr.bf16.mxu1 %v10032_v30  ;;  %v3918_v30 = vshll.u32 %v7532_v54, 16  ;;  %v3955_v54 = vshll.u32 %v10185_v40, 16 }
 0x19e   : > { %8965 = vmatmul.mubr.bf16.gmra.mxu0 %v9506_v21  ;;  %v3949_v21 = vrot.slane %v3947_v43, 1 }
 0x19f   : > { %8968 = vmatprep.mubr.bf16.mxu0 %v9507_v47  ;;  %v10200_v47 = vld [vmem:[#allocation2 + $0x3c] sm:$0xff]  }
 0x1a0   : > { %v3967_v18 = vshrl.u32 %v10200_v47, 16 }
 0x1a1   : > { %8909 = vmatmul.mubr.bf16.gmra.mxu1 %v10038_v3  ;;  %v10145_v3 = vld [vmem:[#allocation2 + $0x14] sm:$0xff]  }
 0x1a2   : > { %8912 = vmatprep.mubr.bf16.mxu1 %v10041_v12  ;;  %v3920_v12 = vrot.slane %v3918_v30, 1  ;;  %v3927_v25 = vshrl.u32 %v10145_v3, 16  ;;  %v4477_v58 = vrot.slane %v10145_v3, 1  ;;  %v9528_v30 = vld [vmem:[#allocation2 + $0xc4] sm:$0xff]  }
 0x1a4   : > { %v3921_v62 = vor.u32 %v3920_v12, %v3916_v5 }
 0x1a6   : > { %8969 = vmatmul.mubr.bf16.gmra.mxu0 %v9509_v52  ;;  %v4476_v52 = vrot.slane %v7565_v38, 1  ;;  %v10252_v38 = vld [vmem:[#allocation2 + $0x54] sm:$0xff]  }
 0x1a7   : > { %8972 = vmatprep.mubr.bf16.mxu0 %v9510_v60 }
 0x1a9   : > { %8913 = vmatmul.mubr.bf16.gmra.mxu1 %v10046_v45  ;;  %v3923_v45 = vshll.u32 %v10145_v3, 16  ;;  %v4478_v3 = vsel %vm2803_vm0, %v4476_v52, %v4477_v58 }
 0x1aa   : > { %8916 = vmatprep.mubr.bf16.mxu1 %v10049_v46  ;;  %v10154_v46 = vld [vmem:[#allocation2 + $0x1c] sm:$0xf] }
 0x1ae   : > { %8973 = vmatmul.mubr.bf16.gmra.mxu0 %v9512_v34  ;;  %v9537_v34 = vld [vmem:[%s11682_s3 + $0x1a8] sm:$0xff]  }
 0x1af   : > { %8976 = vmatprep.mubr.bf16.mxu0 %v9513_v55  ;;  %v3943_v55 = vshrl.u32 %v10157_v10, 16 }
 0x1b1   : > { %8917 = vmatmul.mubr.bf16.gmra.mxu1 %v10058_v7  ;;  %v3925_v7 = vrot.slane %v3923_v45, 1  ;;  %v3945_v5 = vor.u32 %v3943_v55, %v3941_v15  ;;  %v9551_v15 = vld [vmem:[%s11682_s3 + $0x190] sm:$0xff]  }
 0x1b2   : > { %8920 = vmatprep.mubr.bf16.mxu1 %v10061_v8  ;;  %v7639_v8 = vcombine.low %v6128_v9, %v10154_v46 }
 0x1b3   : > { %v3926_v28 = vsel %vm2241_vm1, %v3921_v62, %v3925_v7  ;;  %v3929_v36 = vor.u32 %v3927_v25, %v3925_v7  ;;  %v10212_v62 = vld [vmem:[#allocation2 + $0x44] sm:$0xff]   ;;  %v3950_v2 = vsel %vm2241_vm1, %v3945_v5, %v3949_v21  ;;  %v4479_v7 = vrot.slane %v10147_v56, 1  ;;  %v9545_v56 = vld [vmem:[%s11682_s3 + $0x198] sm:$0xff]  }
 0x1b4   : > { %v6148_v22 = vrot.slane %v7639_v8, 1 }
 0x1b5   : > { %v3934_v49 = vsel %vm2241_vm1, %v3929_v36, %v3933_v16 }
 0x1b6   : > { %8977 = vmatmul.mubr.bf16.gmra.mxu0 %v9516_v57  ;;  %v10170_v39 = vsel %vm2803_vm0, %v6148_v22, %v6149_v13  ;;  %v3953_v57 = vor.u32 %v3951_v37, %v3949_v21  ;;  %v3971_v22 = vshll.u32 %v10212_v62, 16  ;;  %v10266_v37 = vld [vmem:[#allocation2 + $0x5c] sm:$0xff]  }
 0x1b7   : > { %8980 = vmatprep.mubr.bf16.mxu0 %v9517_v61  ;;  %11688 = vst [vmem:[#allocation4_spill] sm:$0xff] %v10170_v39  ;;  %v3957_v61 = vrot.slane %v3955_v54, 1  ;;  %v9558_v54 = vld [vmem:[%s11682_s3 + $0x1e8] sm:$0xff]  }
 0x1b8   : > { %v3973_v36 = vrot.slane %v3971_v22, 1 }
 0x1b9   : > { %8921 = vmatmul.mubr.bf16.gmra.mxu1 %v10055_v0  ;;  %v10173_v0 = vsel %vm2803_vm0, %v6149_v13, %v6151_v23  ;;  %v3958_v9 = vsel %vm2241_vm1, %v3953_v57, %v3957_v61  ;;  %v10222_v13 = vld [vmem:[#allocation2 + $0x4c] sm:$0xff]   ;;  %v3959_v23 = vshrl.u32 %v10185_v40, 16  ;;  %v3987_v57 = vshll.u32 %v10252_v38, 16 }
 0x1ba   : > { %9004 = vmatprep.mubr.bf16.mxu1 %v3926_v28  ;;  %11689 = vst [vmem:[#allocation5_spill] sm:$0xff] %v10173_v0  ;;  %v4481_v28 = vrot.slane %v10157_v10, 1  ;;  %v4480_v10 = vsel %vm2803_vm0, %v4477_v58, %v4479_v7  ;;  %v3979_v25 = vshll.u32 %v10222_v13, 16  ;;  %v10491_v0 = vld [vmem:[#allocation2 + $0xc4] sm:$0xff]  }
 0x1bb   : > { %v3961_v31 = vor.u32 %v3959_v23, %v3957_v61  ;;  %v3989_v23 = vrot.slane %v3987_v57, 1 }
 0x1be   : > { %8981 = vmatmul.mubr.bf16.gmra.mxu0 %v9521_v26  ;;  %v9554_v26 = vld [vmem:[%s11682_s3 + $0x1f0] sm:$0xff]  }
 0x1bf   : > { %8984 = vmatprep.mubr.bf16.mxu0 %v9523_v27  ;;  %v4482_v27 = vsel %vm2803_vm0, %v4479_v7, %v4481_v28  ;;  %v9563_v7 = vld [vmem:[%s11682_s3 + $0x1e0] sm:$0xff]  }
 0x1c1   : > { %v8750_v19 = vpop.f32.mrf.mxu1  ;;  %9005 = vmatmul.mubr.bf16.vlgmr.msra.gmra.mxu1 %v3934_v49 }
 0x1c2   : > { %9117 = vmatpush3.bf16.msra.mxu1 %v10112_v35  ;;  %9008 = vmatprep.mubr.bf16.mxu1 %v3942_v51  ;;  %v3963_v35 = vshll.u32 %v10200_v47, 16  ;;  %v2007_v24 = vadd.f32 %v8750_v19, %v10227_v14  ;;  %v4483_v19 = vrot.slane %v10163_v17, 1 }
 0x1c3   : > { %v1814_v60 = vpop.f32.mrf.mxu1  ;;  %9118 = vmatprep.subr.bf16.mxu1 %v9534_v41 }
 0x1c4   : > { %v3965_v8 = vrot.slane %v3963_v35, 1  ;;  %v2005_v32 = vadd.f32 %v10227_v14, %v1814_v60  ;;  %v3981_v60 = vrot.slane %v3979_v25, 1  ;;  %v9555_v35 = vld [vmem:[%s11682_s3 + $0x188] sm:$0xff]   ;;  %v4484_v5 = vsel %vm2803_vm0, %v4481_v28, %v4483_v19 }
 0x1c5   : > { %v8751_v12 = vpop.f32.mrf.mxu1 }
 0x1c6   : > { %8985 = vmatmul.mubr.bf16.gmra.mxu0 %v9528_v30  ;;  %9119 = vmatpush3.bf16.msra.mxu1 %v9534_v41  ;;  %v3969_v42 = vor.u32 %v3967_v18, %v3965_v8  ;;  %v3966_v49 = vsel %vm2241_vm1, %v3961_v31, %v3965_v8  ;;  %v2008_v51 = vadd.f32 %v8751_v12, %v10227_v14  ;;  %v3983_v12 = vshrl.u32 %v10222_v13, 16 }
 0x1c7   : > { %9068 = vmatprep.mubr.bf16.mxu0 %v4478_v3  ;;  %v1817_v45 = vpop.f32.mrf.mxu1  ;;  %9120 = vmatprep.subr.bf16.mxu1 %v9537_v34 }
 0x1c8   : > { %v3974_v58 = vsel %vm2241_vm1, %v3969_v42, %v3973_v36 }
 0x1c9   : > { %v10218_v6 = vpop.f32.mrf.mxu1  ;;  %9009 = vmatmul.mubr.bf16.gmra.mxu1 %v3950_v2  ;;  %v3985_v2 = vor.u32 %v3983_v12, %v3981_v60 }
 0x1ca   : > { %9012 = vmatprep.mubr.bf16.mxu1 %v3958_v9  ;;  %9121 = vmatpush3.bf16.msra.mxu1 %v9537_v34  ;;  %v2006_v34 = vadd.f32 %v10227_v14, %v1817_v45  ;;  %v2011_v45 = vadd.f32 %v10218_v6, %v10227_v14  ;;  %v3995_v9 = vshll.u32 %v10266_v37, 16 }
 0x1cb   : > { %v10230_v16 = vpop.f32.mrf.mxu1  ;;  %9122 = vmatprep.subr.bf16.mxu1 %v9542_v63  ;;  %v3990_v31 = vsel %vm2241_vm1, %v3985_v2, %v3989_v23 }
 0x1cc   : > { %v2009_v6 = vadd.f32 %v10227_v14, %v10230_v16 }
 0x1cd   : > { %v10239_v29 = vpop.f32.mrf.mxu1 }
 0x1ce   : > { %v8814_v4 = vpop.f32.mrf.mxu0  ;;  %9069 = vmatmul.mubr.bf16.vlgmr.msra.gmra.mxu0 %v4480_v10  ;;  %9123 = vmatpush3.bf16.msra.mxu1 %v9542_v63  ;;  %v9561_v10 = vld [vmem:[%s11682_s3 + $0x180] sm:$0xff]   ;;  %v2012_v16 = vadd.f32 %v10239_v29, %v10227_v14 }
 0x1cf   : > { %v10248_v43 = vadd.f32 %v8814_v4, %v2007_v24  ;;  %9072 = vmatprep.mubr.bf16.mxu0 %v4482_v27  ;;  %v10250_v33 = vpop.f32.mrf.mxu1  ;;  %9124 = vmatprep.subr.bf16.mxu1 %v9545_v56  ;;  %v10301_v24 = vld [vmem:[#allocation2 + $0x64] sm:$0xff]  }
 0x1d0   : > { %v2544_v41 = vpop.f32.mrf.mxu0  ;;  %9181 = vmatpush3.bf16.msra.mxu0 %v10130_v50  ;;  %v4485_v50 = vrot.slane %v10185_v40, 1  ;;  %v3975_v40 = vshrl.u32 %v10212_v62, 16  ;;  %v2010_v29 = vadd.f32 %v10227_v14, %v10250_v33 }
 0x1d1   : > { %v10261_v21 = vadd.f32 %v2544_v41, %v2005_v32  ;;  %v10263_v52 = vpop.f32.mrf.mxu1  ;;  %9013 = vmatmul.mubr.bf16.gmra.mxu1 %v3966_v49  ;;  %9182 = vmatprep.subr.bf16.mxu0 %v9554_v26  ;;  %v3997_v32 = vrot.slane %v3995_v9, 1  ;;  %v4489_v41 = vrot.slane %v10212_v62, 1 }
 0x1d2   : > { %v8815_v17 = vpop.f32.mrf.mxu0  ;;  %9016 = vmatprep.mubr.bf16.mxu1 %v3974_v58  ;;  %9125 = vmatpush3.bf16.msra.mxu1 %v9545_v56  ;;  %v4486_v28 = vsel %vm2803_vm0, %v4483_v19, %v4485_v50  ;;  %v3977_v18 = vor.u32 %v3975_v40, %v3973_v36  ;;  %v10315_v36 = vld [vmem:[#allocation2 + $0x6c] sm:$0xff]   ;;  %v4003_v58 = vshll.u32 %v10301_v24, 16  ;;  %v2015_v33 = vadd.f32 %v10263_v52, %v10227_v14 }
 0x1d3   : > { %v10273_v30 = vadd.f32 %v8815_v17, %v2008_v51  ;;  %v10275_v55 = vpop.f32.mrf.mxu1  ;;  %9126 = vmatprep.subr.bf16.mxu1 %v9551_v15  ;;  %v3999_v51 = vshrl.u32 %v10266_v37, 16  ;;  %v3991_v17 = vshrl.u32 %v10252_v38, 16 }
 0x1d4   : > { %v2547_v3 = vpop.f32.mrf.mxu0  ;;  %9183 = vmatpush3.bf16.msra.mxu0 %v9554_v26  ;;  %v3982_v25 = vsel %vm2241_vm1, %v3977_v18, %v3981_v60  ;;  %v4487_v26 = vrot.slane %v10200_v47, 1  ;;  %v10332_v60 = vld [vmem:[%s11682_s3 + $0x238] sm:$0xff]   ;;  %v2013_v52 = vadd.f32 %v10227_v14, %v10275_v55  ;;  %v4005_v9 = vrot.slane %v4003_v58, 1 }
 0x1d5   : > { %v10286_v61 = vadd.f32 %v2547_v3, %v2006_v34  ;;  %v10288_v63 = vpop.f32.mrf.mxu1  ;;  %9184 = vmatprep.subr.bf16.mxu0 %v9558_v54  ;;  %v4001_v57 = vor.u32 %v3999_v51, %v3997_v32  ;;  %v9568_v3 = vld [vmem:[%s11682_s3 + $0x1d0] sm:$0xff]   ;;  %v3993_v40 = vor.u32 %v3991_v17, %v3989_v23  ;;  %v4491_v18 = vrot.slane %v10222_v13, 1 }
 0x1d6   : > { %v8818_v8 = vpop.f32.mrf.mxu0  ;;  %9073 = vmatmul.mubr.bf16.gmra.mxu0 %v4484_v5  ;;  %9127 = vmatpush3.bf16.msra.mxu1 %v9551_v15  ;;  %v9565_v15 = vld [vmem:[%s11682_s3 + $0x1d8] sm:$0xff]   ;;  %v4488_v62 = vsel %vm2803_vm0, %v4485_v50, %v4487_v26  ;;  %v4490_v50 = vsel %vm2803_vm0, %v4487_v26, %v4489_v41  ;;  %v9570_v26 = vld [vmem:[%s11682_s3 + $0x1c8] sm:$0xff]   ;;  %v4493_v13 = vrot.slane %v10252_v38, 1  ;;  %v4007_v58 = vshrl.u32 %v10301_v24, 16 }
 0x1d7   : > { %v10297_v22 = vadd.f32 %v8818_v8, %v2011_v45  ;;  %9076 = vmatprep.mubr.bf16.mxu0 %v4486_v28  ;;  %v10299_v56 = vpop.f32.mrf.mxu1  ;;  %9128 = vmatprep.subr.bf16.mxu1 %v9555_v35  ;;  %v3998_v28 = vsel %vm2241_vm1, %v3993_v40, %v3997_v32  ;;  %v4492_v51 = vsel %vm2803_vm0, %v4489_v41, %v4491_v18  ;;  %v10388_v40 = vld [vmem:[#allocation2 + $0x84] sm:$0xff]  }
 0x1d8   : > { %v2560_v42 = vpop.f32.mrf.mxu0  ;;  %9185 = vmatpush3.bf16.msra.mxu0 %v9558_v54  ;;  %v4494_v41 = vsel %vm2803_vm0, %v4491_v18, %v4493_v13 }
 0x1d9   : > { %v10310_v4 = vadd.f32 %v2560_v42, %v2009_v6  ;;  %v10312_v27 = vpop.f32.mrf.mxu1  ;;  %9017 = vmatmul.mubr.bf16.gmra.mxu1 %v3982_v25  ;;  %9186 = vmatprep.subr.bf16.mxu0 %v9563_v7  ;;  %v2016_v6 = vadd.f32 %v10288_v63, %v10227_v14  ;;  %v10361_v25 = vld [vmem:[#allocation2 + $0x7c] sm:$0xff]   ;;  %v2014_v63 = vadd.f32 %v10227_v14, %v10299_v56 }
 0x1da   : > { %v8819_v47 = vpop.f32.mrf.mxu0  ;;  %9020 = vmatprep.mubr.bf16.mxu1 %v3990_v31  ;;  %9129 = vmatpush3.bf16.msra.mxu1 %v9555_v35  ;;  %v4011_v35 = vshll.u32 %v10315_v36, 16  ;;  %v4027_v17 = vshll.u32 %v10361_v25, 16 }
 0x1db   : > { %v10323_v49 = vadd.f32 %v8819_v47, %v2012_v16  ;;  %v10325_v19 = vpop.f32.mrf.mxu1  ;;  %9130 = vmatprep.subr.bf16.mxu1 %v9561_v10 }
 0x1dc   : > { %v2563_v54 = vpop.f32.mrf.mxu0  ;;  %9187 = vmatpush3.bf16.msra.mxu0 %v9563_v7  ;;  %v10351_v7 = vld [vmem:[#allocation2 + $0x74] sm:$0xff]   ;;  %v4013_v42 = vrot.slane %v4011_v35, 1  ;;  %v4009_v35 = vor.u32 %v4007_v58, %v4005_v9 }
 0x1dd   : > { %v10338_v34 = vadd.f32 %v2563_v54, %v2010_v29  ;;  %v10340_v12 = vpop.f32.mrf.mxu1  ;;  %9188 = vmatprep.subr.bf16.mxu0 %v9565_v15  ;;  %v4019_v47 = vshll.u32 %v10351_v7, 16  ;;  %v2019_v54 = vadd.f32 %v10312_v27, %v10227_v14  ;;  %v4023_v58 = vshrl.u32 %v10351_v7, 16 }
 0x1de   : > { %v8822_v5 = vpop.f32.mrf.mxu0  ;;  %9077 = vmatmul.mubr.bf16.gmra.mxu0 %v4488_v62  ;;  %9131 = vmatpush3.bf16.msra.mxu1 %v9561_v10  ;;  %v4006_v10 = vsel %vm2241_vm1, %v4001_v57, %v4005_v9  ;;  %v2020_v18 = vadd.f32 %v10340_v12, %v10227_v14  ;;  %v4031_v12 = vshrl.u32 %v10361_v25, 16 }
 0x1df   : > { %v10349_v45 = vadd.f32 %v8822_v5, %v2015_v33  ;;  %9080 = vmatprep.mubr.bf16.mxu0 %v4490_v50  ;;  %v1865_v2 = vpop.f32.mrf.mxu1  ;;  %9308 = vmatprep.subr.bf16.mxu1 %v10332_v60  ;;  %v9574_v33 = vld [vmem:[%s11682_s3 + $0x1c0] sm:$0xff]   ;;  %v4021_v50 = vrot.slane %v4019_v47, 1  ;;  %v4035_v47 = vshll.u32 %v10388_v40, 16 }
 0x1e0   : > { %v2576_v8 = vpop.f32.mrf.mxu0  ;;  %9189 = vmatpush3.bf16.msra.mxu0 %v9565_v15  ;;  %v4015_v15 = vshrl.u32 %v10315_v36, 16 }
 0x1e1   : > { %v10358_v23 = vadd.f32 %v2576_v8, %v2013_v52  ;;  %v8766_v55 = vpop.f32.mrf.mxu1  ;;  %9021 = vmatmul.mubr.bf16.gmra.mxu1 %v3998_v28  ;;  %9190 = vmatprep.subr.bf16.mxu0 %v9568_v3  ;;  %v4014_v8 = vsel %vm2241_vm1, %v4009_v35, %v4013_v42  ;;  %v4495_v28 = vrot.slane %v10266_v37, 1  ;;  %v2018_v37 = vadd.f32 %v10227_v14, %v1865_v2 }
 0x1e2   : > { %v8823_v16 = vpop.f32.mrf.mxu0  ;;  %9024 = vmatprep.mubr.bf16.mxu1 %v4006_v10  ;;  %v4017_v56 = vor.u32 %v4015_v15, %v4013_v42  ;;  %v4029_v10 = vrot.slane %v4027_v17, 1  ;;  %v4497_v42 = vrot.slane %v10301_v24, 1  ;;  %v4025_v35 = vor.u32 %v4023_v58, %v4021_v50 }
 0x1e3   : > { %v10369_v31 = vadd.f32 %v8823_v16, %v2016_v6  ;;  %v1878_v32 = vpop.f32.mrf.mxu1  ;;  %v10397_v16 = vld [vmem:[#allocation2 + $0x8c] sm:$0xff]  }
 0x1e4   : > { %v2579_v29 = vpop.f32.mrf.mxu0  ;;  %9191 = vmatpush3.bf16.msra.mxu0 %v9568_v3  ;;  %v2017_v3 = vadd.f32 %v10227_v14, %v10325_v19  ;;  %v4022_v19 = vsel %vm2241_vm1, %v4017_v56, %v4021_v50  ;;  %v4033_v17 = vor.u32 %v4031_v12, %v4029_v10  ;;  %v4043_v2 = vshll.u32 %v10397_v16, 16  ;;  %v10424_v12 = vld [vmem:[#allocation2 + $0x9c] sm:$0xff]  }
 0x1e5   : > { %v10377_v38 = vadd.f32 %v2579_v29, %v2014_v63  ;;  %v8767_v62 = vpop.f32.mrf.mxu1  ;;  %9192 = vmatprep.subr.bf16.mxu0 %v9570_v26 }
 0x1e6   : > { %v8826_v57 = vpop.f32.mrf.mxu0  ;;  %9081 = vmatmul.mubr.bf16.gmra.mxu0 %v4492_v51  ;;  %v4496_v51 = vsel %vm2803_vm0, %v4493_v13, %v4495_v28  ;;  %v2021_v13 = vadd.f32 %v10227_v14, %v1878_v32  ;;  %v4045_v50 = vrot.slane %v4043_v2, 1 }
 0x1e7   : > { %v10386_v27 = vadd.f32 %v8826_v57, %v2019_v54  ;;  %9084 = vmatprep.mubr.bf16.mxu0 %v4494_v41  ;;  %v1881_v5 = vpop.f32.mrf.mxu1  ;;  %v2023_v54 = vadd.f32 %v8766_v55, %v10227_v14  ;;  %v4498_v41 = vsel %vm2803_vm0, %v4495_v28, %v4497_v42  ;;  %v4037_v55 = vrot.slane %v4035_v47, 1 }
 0x1e8   : > { %v2592_v52 = vpop.f32.mrf.mxu0  ;;  %9193 = vmatpush3.bf16.msra.mxu0 %v9570_v26  ;;  %v4501_v47 = vrot.slane %v10351_v7, 1 }
 0x1e9   : > { %v10394_v9 = vadd.f32 %v2592_v52, %v2017_v3  ;;  %v8770_v6 = vpop.f32.mrf.mxu1  ;;  %9025 = vmatmul.mubr.bf16.gmra.mxu1 %v4014_v8  ;;  %9194 = vmatprep.subr.bf16.mxu0 %v9574_v33  ;;  %v10416_v52 = vld [vmem:[#allocation2 + $0x94] sm:$0xff]   ;;  %v4038_v32 = vsel %vm2241_vm1, %v4033_v17, %v4037_v55  ;;  %v4039_v17 = vshrl.u32 %v10388_v40, 16 }
 0x1ea   : > { %v8827_v63 = vpop.f32.mrf.mxu0  ;;  %9028 = vmatprep.mubr.bf16.mxu1 %v4022_v19  ;;  %v4499_v19 = vrot.slane %v10315_v36, 1  ;;  %v4051_v58 = vshll.u32 %v10416_v52, 16  ;;  %v2027_v2 = vadd.f32 %v8770_v6, %v10227_v14 }
 0x1eb   : > { %v10401_v26 = vadd.f32 %v8827_v63, %v2020_v18  ;;  %v1894_v15 = vpop.f32.mrf.mxu1  ;;  %v4030_v18 = vsel %vm2241_vm1, %v4025_v35, %v4029_v10  ;;  %v2024_v63 = vadd.f32 %v8767_v62, %v10227_v14  ;;  %v4047_v62 = vshrl.u32 %v10397_v16, 16 }
 0x1ec   : > { %v2595_v29 = vpop.f32.mrf.mxu0  ;;  %9195 = vmatpush3.bf16.msra.mxu0 %v9574_v33 }
 0x1ed   : > { %v10408_v56 = vadd.f32 %v2595_v29, %v2018_v37  ;;  %v8771_v24 = vpop.f32.mrf.mxu1  ;;  %9244 = vmatprep.subr.bf16.mxu0 %v10332_v60  ;;  %v4049_v7 = vor.u32 %v4047_v62, %v4045_v50  ;;  %v4503_v62 = vrot.slane %v10361_v25, 1 }
 0x1ee   : > { %v8830_v57 = vpop.f32.mrf.mxu0  ;;  %9085 = vmatmul.mubr.bf16.gmra.mxu0 %v4496_v51  ;;  %v2022_v51 = vadd.f32 %v10227_v14, %v1881_v5  ;;  %v4059_v5 = vshll.u32 %v10424_v12, 16 }
 0x1ef   : > { %v10414_v3 = vadd.f32 %v8830_v57, %v2023_v54  ;;  %9088 = vmatprep.mubr.bf16.mxu0 %v4498_v41  ;;  %v1897_v33 = vpop.f32.mrf.mxu1  ;;  %v4500_v57 = vsel %vm2803_vm0, %v4497_v42, %v4499_v19 }
 0x1f0   : > { %v2608_v8 = vpop.f32.mrf.mxu0 }
 0x1f1   : > { %v10421_v37 = vadd.f32 %v2608_v8, %v2021_v13  ;;  %v8774_v28 = vpop.f32.mrf.mxu1  ;;  %9029 = vmatmul.mubr.bf16.gmra.mxu1 %v4030_v18  ;;  %v4502_v8 = vsel %vm2803_vm0, %v4499_v19, %v4501_v47  ;;  %v4041_v18 = vor.u32 %v4039_v17, %v4037_v55  ;;  %v4061_v55 = vrot.slane %v4059_v5, 1  ;;  %v10450_v17 = vld [vmem:[#allocation2 + $0xac] sm:$0xff]  }
 0x1f2   : > { %v8831_v29 = vpop.f32.mrf.mxu0  ;;  %9032 = vmatprep.mubr.bf16.mxu1 %v4038_v32  ;;  %v2031_v5 = vadd.f32 %v8774_v28, %v10227_v14 }
 0x1f3   : > { %v10428_v10 = vadd.f32 %v8831_v29, %v2024_v63  ;;  %v1910_v36 = vpop.f32.mrf.mxu1  ;;  %v2025_v63 = vadd.f32 %v10227_v14, %v1894_v15  ;;  %v4053_v29 = vrot.slane %v4051_v58, 1  ;;  %v4505_v58 = vrot.slane %v10388_v40, 1 }
 0x1f4   : > { %v2611_v54 = vpop.f32.mrf.mxu0  ;;  %v2029_v53 = vadd.f32 %v10227_v14, %v1910_v36 }
 0x1f5   : > { %v10435_v41 = vadd.f32 %v2611_v54, %v2022_v51  ;;  %v8775_v35 = vpop.f32.mrf.mxu1  ;;  %v4046_v51 = vsel %vm2241_vm1, %v4041_v18, %v4045_v50  ;;  %v2028_v54 = vadd.f32 %v8771_v24, %v10227_v14  ;;  %v4054_v15 = vsel %vm2241_vm1, %v4049_v7, %v4053_v29 }
 0x1f6   : > { %v8834_v13 = vpop.f32.mrf.mxu0  ;;  %9089 = vmatmul.mubr.bf16.gmra.mxu0 %v4500_v57  ;;  %v4063_v24 = vshrl.u32 %v10424_v12, 16  ;;  %v4055_v7 = vshrl.u32 %v10416_v52, 16 }
 0x1f7   : > { %v10440_v32 = vadd.f32 %v8834_v13, %v2027_v2  ;;  %9092 = vmatprep.mubr.bf16.mxu0 %v4502_v8  ;;  %v1913_v42 = vpop.f32.mrf.mxu1  ;;  %v2026_v13 = vadd.f32 %v10227_v14, %v1897_v33  ;;  %v4067_v8 = vshll.u32 %v10442_v44, 16  ;;  %v4075_v33 = vshll.u32 %v10450_v17, 16 }
 0x1f8   : > { %v2624_v6 = vpop.f32.mrf.mxu0  ;;  %v4065_v40 = vor.u32 %v4063_v24, %v4061_v55  ;;  %v4507_v24 = vrot.slane %v10397_v16, 1 }
 0x1f9   : > { %v10447_v57 = vadd.f32 %v2624_v6, %v2025_v63  ;;  %v8778_v19 = vpop.f32.mrf.mxu1  ;;  %9033 = vmatmul.mubr.bf16.gmra.mxu1 %v4046_v51  ;;  %v4504_v63 = vsel %vm2803_vm0, %v4501_v47, %v4503_v62  ;;  %v4069_v11 = vrot.slane %v4067_v8, 1  ;;  %v4509_v8 = vrot.slane %v10416_v52, 1 }
 0x1fa   : > { %v8835_v2 = vpop.f32.mrf.mxu0  ;;  %9036 = vmatprep.mubr.bf16.mxu1 %v4054_v15  ;;  %v4506_v15 = vsel %vm2803_vm0, %v4503_v62, %v4505_v58 }
 0x1fb   : > { %v10454_v50 = vadd.f32 %v8835_v2, %v2028_v54  ;;  %v1926_v25 = vpop.f32.mrf.mxu1  ;;  %v4057_v2 = vor.u32 %v4055_v7, %v4053_v29  ;;  %v4070_v36 = vsel %vm2241_vm1, %v4065_v40, %v4069_v11  ;;  %v4077_v29 = vrot.slane %v4075_v33, 1  ;;  %v10476_v7 = vld [vmem:[#allocation2 + $0xbc] sm:$0xff]  }
 0x1fc   : > { %v2627_v18 = vpop.f32.mrf.mxu0  ;;  %v4071_v40 = vshrl.u32 %v10442_v44, 16  ;;  %v2035_v33 = vadd.f32 %v8778_v19, %v10227_v14  ;;  %v2033_v39 = vadd.f32 %v10227_v14, %v1926_v25 }
 0x1fd   : > { %v10461_v6 = vadd.f32 %v2627_v18, %v2026_v13  ;;  %v8779_v51 = vpop.f32.mrf.mxu1  ;;  %v4062_v13 = vsel %vm2241_vm1, %v4057_v2, %v4061_v55  ;;  %v2032_v18 = vadd.f32 %v8775_v35, %v10227_v14  ;;  %v4079_v35 = vshrl.u32 %v10450_v17, 16 }
 0x1fe   : > { %v8838_v54 = vpop.f32.mrf.mxu0  ;;  %9093 = vmatmul.mubr.bf16.gmra.mxu0 %v4504_v63  ;;  %v4508_v2 = vsel %vm2803_vm0, %v4505_v58, %v4507_v24 }
 0x1ff   : > { %v10466_v48 = vadd.f32 %v8838_v54, %v2031_v5  ;;  %9096 = vmatprep.mubr.bf16.mxu0 %v4506_v15  ;;  %v1929_v47 = vpop.f32.mrf.mxu1  ;;  %v2030_v54 = vadd.f32 %v10227_v14, %v1913_v42  ;;  %v4081_v52 = vor.u32 %v4079_v35, %v4077_v29  ;;  %v4091_v42 = vshll.u32 %v10476_v7, 16 }
 0x200   : > { %v2640_v28 = vpop.f32.mrf.mxu0  ;;  %v4511_v35 = vrot.slane %v10424_v12, 1 }
 0x201   : > { %v10473_v63 = vadd.f32 %v2640_v28, %v2029_v53  ;;  %v8782_v62 = vpop.f32.mrf.mxu1  ;;  %9037 = vmatmul.mubr.bf16.gmra.mxu1 %v4062_v13  ;;  %v4083_v53 = vshll.u32 %v10468_v1, 16 }
 0x202   : > { %v8839_v5 = vpop.f32.mrf.mxu0  ;;  %9040 = vmatprep.mubr.bf16.mxu1 %v4070_v36  ;;  %v4510_v36 = vsel %vm2803_vm0, %v4507_v24, %v4509_v8 }
 0x203   : > { %v10480_v55 = vadd.f32 %v8839_v5, %v2032_v18  ;;  %v1942_v16 = vpop.f32.mrf.mxu1  ;;  %v4073_v5 = vor.u32 %v4071_v40, %v4069_v11  ;;  %v4085_v19 = vrot.slane %v4083_v53, 1  ;;  %v4093_v40 = vrot.slane %v4091_v42, 1 }
 0x204   : > { %v2643_v15 = vpop.f32.mrf.mxu0  ;;  %v4513_v53 = vrot.slane %v10442_v44, 1 }
 0x205   : > { %v10487_v28 = vadd.f32 %v2643_v15, %v2030_v54  ;;  %v8783_v13 = vpop.f32.mrf.mxu1  ;;  %v4078_v15 = vsel %vm2241_vm1, %v4073_v5, %v4077_v29  ;;  %v4086_v25 = vsel %vm2241_vm1, %v4081_v52, %v4085_v19  ;;  %v2034_v29 = vadd.f32 %v10227_v14, %v1929_v47 }
 0x206   : > { %v8842_v18 = vpop.f32.mrf.mxu0  ;;  %9097 = vmatmul.mubr.bf16.gmra.mxu0 %v4508_v2  ;;  %v2036_v2 = vadd.f32 %v8779_v51, %v10227_v14  ;;  %v4095_v51 = vshrl.u32 %v10476_v7, 16  ;;  %v4512_v5 = vsel %vm2803_vm0, %v4509_v8, %v4511_v35  ;;  %v2039_v52 = vadd.f32 %v8782_v62, %v10227_v14 }
 0x207   : > { %11694 = vst [vmem:[#allocation10_spill] sm:$0xff] %v10487_v28  ;;  %v10494_v58 = vadd.f32 %v8842_v18, %v2035_v33  ;;  %9100 = vmatprep.mubr.bf16.mxu0 %v4510_v36  ;;  %v1945_v20 = vpop.f32.mrf.mxu1  ;;  %v4099_v28 = vshll.u32 %v10491_v0, 16  ;;  %v4087_v18 = vshrl.u32 %v10468_v1, 16  ;;  %v4514_v47 = vsel %vm2803_vm0, %v4511_v35, %v4513_v53 }
 0x208   : > { %v2656_v54 = vpop.f32.mrf.mxu0  ;;  %v4103_v62 = vshrl.u32 %v10491_v0, 16 }
 0x209   : > { %11695 = vst [vmem:[#allocation11_spill] sm:$0xff] %v10494_v58  ;;  %v10500_v24 = vadd.f32 %v2656_v54, %v2033_v39  ;;  %v8786_v11 = vpop.f32.mrf.mxu1  ;;  %9041 = vmatmul.mubr.bf16.gmra.mxu1 %v4078_v15  ;;  %v4089_v54 = vor.u32 %v4087_v18, %v4085_v19  ;;  %v10510_v15 = vld [vmem:[#allocation2 + $0xcc] ss:$0 sps:$4 sm:$0x11]  }
 0x20a   : > { %v8843_v33 = vpop.f32.mrf.mxu0  ;;  %9044 = vmatprep.mubr.bf16.mxu1 %v4086_v25  ;;  %v4097_v25 = vor.u32 %v4095_v51, %v4093_v40  ;;  %v2040_v51 = vadd.f32 %v8783_v13, %v10227_v14 }
 0x20b   : > { %11696 = vst [vmem:[#allocation12_spill] sm:$0xff] %v10500_v24  ;;  %v10506_v12 = vadd.f32 %v8843_v33, %v2036_v2  ;;  %v1958_v36 = vpop.f32.mrf.mxu1  ;;  %v4101_v24 = vrot.slane %v4099_v28, 1  ;;  %v2037_v2 = vadd.f32 %v10227_v14, %v1942_v16  ;;  %v4094_v18 = vsel %vm2241_vm1, %v4089_v54, %v4093_v40 }
 0x20c   : > { %v2659_v39 = vpop.f32.mrf.mxu0  ;;  %v4515_v16 = vrot.slane %v10450_v17, 1  ;;  %v2038_v40 = vadd.f32 %v10227_v14, %v1945_v20  ;;  %v5399_v17 = vld [vmem:[#allocation2 + $0x18] sm:$0xf]  ;;  %v2041_v20 = vadd.f32 %v10227_v14, %v1958_v36  ;;  %v4519_v36 = vrot.slane %v10476_v7, 1 }
 0x20d   : > { %v10513_v42 = vadd.f32 %v2659_v39, %v2034_v29  ;;  %v8787_v44 = vpop.f32.mrf.mxu1  ;;  %v4107_v29 = vshll.u32 %v10510_v15, 16  ;;  %v4102_v35 = vsel %vm2241_vm1, %v4097_v25, %v4101_v24 }
 0x20e   : > { %v8846_v58 = vpop.f32.mrf.mxu0  ;;  %9101 = vmatmul.mubr.bf16.gmra.mxu0 %v4512_v5  ;;  %v4517_v5 = vrot.slane %v10468_v1, 1  ;;  %v4516_v25 = vsel %vm2803_vm0, %v4513_v53, %v4515_v16 }
 0x20f   : > { %v10517_v33 = vadd.f32 %v8846_v58, %v2039_v52  ;;  %9104 = vmatprep.mubr.bf16.mxu0 %v4514_v47  ;;  %v1961_v8 = vpop.f32.mrf.mxu1  ;;  %v4109_v13 = vrot.slane %v4107_v29, 1  ;;  %v7606_v29 = vcombine.low %v5399_v17, %v10154_v46 }
 0x210   : > { %v2672_v19 = vpop.f32.mrf.mxu0  ;;  %v4518_v1 = vsel %vm2803_vm0, %v4515_v16, %v4517_v5  ;;  %v2042_v16 = vadd.f32 %v10227_v14, %v1961_v8 }
 0x211   : > { %11697 = vst [vmem:[#allocation13_spill] sm:$0xff] %v10517_v33  ;;  %v10523_v28 = vadd.f32 %v2672_v19, %v2037_v2  ;;  %v8790_v39 = vpop.f32.mrf.mxu1  ;;  %9045 = vmatmul.mubr.bf16.gmra.mxu1 %v4094_v18  ;;  %v4105_v33 = vor.u32 %v4103_v62, %v4101_v24  ;;  %v2043_v2 = vadd.f32 %v8786_v11, %v10227_v14  ;;  %v9564_v11 = vld [vmem:[#allocation2 + $0x18] sm:$0xff]  }
 0x212   : > { %v8847_v58 = vpop.f32.mrf.mxu0  ;;  %9048 = vmatprep.mubr.bf16.mxu1 %v4102_v35  ;;  %v2047_v46 = vadd.f32 %v8790_v39, %v10227_v14  ;;  %v10561_v39 = vld [vmem:[%s11682_s3 + $0x230] sm:$0xff]  }
 0x213   : > { %11698 = vst [vmem:[#allocation14_spill] sm:$0xff] %v10523_v28  ;;  %v10529_v54 = vadd.f32 %v8847_v58, %v2040_v51  ;;  %v1974_v52 = vpop.f32.mrf.mxu1  ;;  %v4110_v62 = vsel %vm2241_vm1, %v4105_v33, %v4109_v13  ;;  %v2044_v58 = vadd.f32 %v8787_v44, %v10227_v14 }
 0x214   : > { %v2675_v47 = vpop.f32.mrf.mxu0  ;;  %v2045_v8 = vadd.f32 %v10227_v14, %v1974_v52  ;;  %v4523_v52 = vrot.slane %v10510_v15, 1  ;;  %v10578_v15 = vld [vmem:[%s11682_s3 + $0x228] sm:$0xff]  }
 0x215   : > { %v10532_v19 = vadd.f32 %v2675_v47, %v2038_v40  ;;  %v8791_v18 = vpop.f32.mrf.mxu1 }
 0x216   : > { %v8850_v28 = vpop.f32.mrf.mxu0  ;;  %9105 = vmatmul.mubr.bf16.gmra.mxu0 %v4516_v25  ;;  %v5590_v25 = vshll.u32 %v7606_v29, 16 }
 0x217   : > { %v10537_v51 = vadd.f32 %v8850_v28, %v2043_v2  ;;  %9108 = vmatprep.mubr.bf16.mxu0 %v4518_v1  ;;  %v1977_v35 = vpop.f32.mrf.mxu1  ;;  %v4521_v28 = vrot.slane %v10491_v0, 1  ;;  %v4520_v1 = vsel %vm2803_vm0, %v4517_v5, %v4519_v36  ;;  %v5595_v0 = vshll.u32 %v10152_v59, 16  ;;  %v9569_v5 = vld [vmem:[#allocation2 + $0x28] sm:$0xff]  }
 0x218   : > { %v2688_v24 = vpop.f32.mrf.mxu0 }
 0x219   : > { %v10542_v53 = vadd.f32 %v2688_v24, %v2041_v20  ;;  %v8794_v40 = vpop.f32.mrf.mxu1  ;;  %9049 = vmatmul.mubr.bf16.gmra.mxu1 %v4110_v62  ;;  %v4522_v7 = vsel %vm2803_vm0, %v4519_v36, %v4521_v28 }
 0x21a   : > { %v8851_v47 = vpop.f32.mrf.mxu0  ;;  %9132 = vmatprep.mubr.bf16.mxu1 %v9564_v11  ;;  %v9567_v11 = vld [vmem:[#allocation2 + $0x20] sm:$0xff]  }
 0x21b   : > { %v10547_v2 = vadd.f32 %v8851_v47, %v2044_v58  ;;  %v1990_v33 = vpop.f32.mrf.mxu1  ;;  %v5592_v47 = vrot.slane %v5590_v25, 1 }
 0x21c   : > { %v2691_v13 = vpop.f32.mrf.mxu0 }
 0x21d   : > { %v10550_v44 = vadd.f32 %v2691_v13, %v2042_v16  ;;  %v8795_v17 = vpop.f32.mrf.mxu1  ;;  %v2048_v16 = vadd.f32 %v8791_v18, %v10227_v14 }
 0x21e   : > { %v8854_v20 = vpop.f32.mrf.mxu0  ;;  %9109 = vmatmul.mubr.bf16.gmra.mxu0 %v4520_v1  ;;  %v5588_v1 = vshrl.u32 %v7606_v29, 16 }
 0x21f   : > { %v10556_v24 = vadd.f32 %v8854_v20, %v2047_v46  ;;  %9112 = vmatprep.mubr.bf16.mxu0 %v4522_v7  ;;  %v1993_v62 = vpop.f32.mrf.mxu1  ;;  %v5597_v20 = vrot.slane %v5595_v0, 1  ;;  %v2046_v7 = vadd.f32 %v10227_v14, %v1977_v35  ;;  %v2051_v0 = vadd.f32 %v8794_v40, %v10227_v14  ;;  %v9628_v40 = vld [vmem:[#allocation2 + $0x20] sm:$0xff]  }
 0x220   : > { %v2704_v58 = vpop.f32.mrf.mxu0 }
 0x221   : > { %v10564_v36 = vadd.f32 %v2704_v58, %v2045_v8  ;;  %v8878_v59 = vpop.f32.mrf.mxu1  ;;  %9133 = vmatmul.mubr.bf16.vlgmr.msra.gmra.mxu1 %v9567_v11  ;;  %v5593_v11 = vor.u32 %v5592_v47, %v5588_v1  ;;  %v9626_v58 = vld [vmem:[#allocation2 + $0x28] sm:$0xff]   ;;  %v2049_v1 = vadd.f32 %v10227_v14, %v1990_v33 }
 0x222   : > { %v8855_v13 = vpop.f32.mrf.mxu0  ;;  %v10568_v46 = vadd.f32 %v8878_v59, %v10248_v43  ;;  %9316 = vmatpush3.bf16.msra.mxu1 %v10332_v60  ;;  %9136 = vmatprep.mubr.bf16.mxu1 %v9569_v5  ;;  %v5603_v29 = vshll.u32 %v9626_v58, 16 }
 0x223   : > { %11699 = vst [vmem:[#allocation15_spill] sm:$0xff] %v10564_v36  ;;  %v10572_v25 = vadd.f32 %v8855_v13, %v2048_v16  ;;  %v2959_v18 = vpop.f32.mrf.mxu1  ;;  %9309 = vmatprep.subr.bf16.mxu1 %v10561_v39  ;;  %v4524_v16 = vsel %vm2803_vm0, %v4521_v28, %v4523_v52  ;;  %v9573_v28 = vld [vmem:[#allocation2 + $0x30] sm:$0xff]  }
 0x224   : > { %v2707_v8 = vpop.f32.mrf.mxu0  ;;  %v10581_v43 = vadd.f32 %v2959_v18, %v10261_v21  ;;  %v9627_v21 = vld [vmem:[#allocation2 + $0x30] sm:$0xff]   ;;  %v5605_v33 = vrot.slane %v5603_v29, 1 }
 0x225   : > { %11700 = vst [vmem:[#allocation16_spill] sm:$0xff] %v10572_v25  ;;  %v10584_v35 = vadd.f32 %v2707_v8, %v2046_v7  ;;  %v8879_v5 = vpop.f32.mrf.mxu1  ;;  %v5598_v25 = vsel %vm2241_vm1, %v5593_v11, %v5597_v20  ;;  %v5611_v47 = vshll.u32 %v9627_v21, 16  ;;  %v5599_v7 = vshrl.u32 %v9628_v40, 16 }
 0x226   : > { %v8858_v59 = vpop.f32.mrf.mxu0  ;;  %v10588_v13 = vadd.f32 %v8879_v5, %v10273_v30  ;;  %9113 = vmatmul.mubr.bf16.gmra.mxu0 %v4524_v16  ;;  %9317 = vmatpush3.bf16.msra.mxu1 %v10561_v39  ;;  %v10599_v30 = vld [vmem:[%s11682_s3 + $0x220] sm:$0xff]   ;;  %v9575_v5 = vld [vmem:[#allocation2 + $0x38] sm:$0xff]  }
 0x227   : > { %11701 = vst [vmem:[#allocation17_spill] sm:$0xff] %v10584_v35  ;;  %v10593_v18 = vadd.f32 %v8858_v59, %v2051_v0  ;;  %9196 = vmatprep.mubr.bf16.mxu0 %v5598_v25  ;;  %v2962_v8 = vpop.f32.mrf.mxu1  ;;  %9310 = vmatprep.subr.bf16.mxu1 %v10578_v15  ;;  %v2052_v0 = vadd.f32 %v8795_v17, %v10227_v14  ;;  %v5607_v35 = vshrl.u32 %v9626_v58, 16  ;;  %v5613_v36 = vrot.slane %v5611_v47, 1  ;;  %v10618_v17 = vld [vmem:[%s11682_s3 + $0x218] sm:$0xff]  }
 0x228   : > { %v2720_v52 = vpop.f32.mrf.mxu0  ;;  %v10602_v11 = vadd.f32 %v2962_v8, %v10286_v61  ;;  %v5601_v16 = vor.u32 %v5599_v7, %v5597_v20  ;;  %v2050_v61 = vadd.f32 %v10227_v14, %v1993_v62  ;;  %v9629_v47 = vld [vmem:[#allocation2 + $0x38] sm:$0xff]  }
 0x229   : > { %11702 = vst [vmem:[#allocation18_spill] sm:$0xff] %v10593_v18  ;;  %v10605_v59 = vadd.f32 %v2720_v52, %v2049_v1  ;;  %v8882_v25 = vpop.f32.mrf.mxu1  ;;  %9137 = vmatmul.mubr.bf16.gmra.mxu1 %v9573_v28  ;;  %v5609_v58 = vor.u32 %v5607_v35, %v5605_v33  ;;  %v5619_v1 = vshll.u32 %v9629_v47, 16 }
 0x22a   : > { %v8859_v40 = vpop.f32.mrf.mxu0  ;;  %v10608_v18 = vadd.f32 %v8882_v25, %v10297_v22  ;;  %9140 = vmatprep.mubr.bf16.mxu1 %v9575_v5  ;;  %9318 = vmatpush3.bf16.msra.mxu1 %v10578_v15  ;;  %v5606_v62 = vsel %vm2241_vm1, %v5601_v16, %v5605_v33  ;;  %v5615_v33 = vshrl.u32 %v9627_v21, 16 }
 0x22b   : > { %v10612_v8 = vadd.f32 %v8859_v40, %v2052_v0  ;;  %v2975_v29 = vpop.f32.mrf.mxu1  ;;  %9311 = vmatprep.subr.bf16.mxu1 %v10599_v30  ;;  %v5614_v5 = vsel %vm2241_vm1, %v5609_v58, %v5613_v36  ;;  %v10630_v0 = vld [vmem:[#allocation2 + $0x40] sm:$0xff]  }
 0x22c   : > { %v2723_v20 = vpop.f32.mrf.mxu0  ;;  %v10621_v22 = vadd.f32 %v2975_v29, %v10310_v4  ;;  %v5627_v4 = vshll.u32 %v10630_v0, 16  ;;  %v9579_v40 = vld [vmem:[#allocation2 + $0x40] sm:$0xff]   ;;  %v9580_v29 = vld [vmem:[#allocation2 + $0x48] sm:$0xff]   ;;  %v5617_v21 = vor.u32 %v5615_v33, %v5613_v36 }
 0x22d   : > { %v10623_v7 = vadd.f32 %v2723_v20, %v2050_v61  ;;  %v8883_v14 = vpop.f32.mrf.mxu1  ;;  %v5621_v20 = vrot.slane %v5619_v1, 1  ;;  %v10664_v36 = vld [vmem:[%s11682_s3 + $0x208] sm:$0xff]  }
 0x22e   : > { %v10627_v28 = vadd.f32 %v8883_v14, %v10323_v49  ;;  %v8942_v52 = vpop.f32.mrf.mxu0  ;;  %9197 = vmatmul.mubr.bf16.vlgmr.msra.gmra.mxu0 %v5606_v62  ;;  %9319 = vmatpush3.bf16.msra.mxu1 %v10599_v30  ;;  %v10641_v49 = vld [vmem:[%s11682_s3 + $0x210] sm:$0xff]  }
 0x22f   : > { %v10635_v35 = vadd.f32 %v8942_v52, %v10568_v46  ;;  %9200 = vmatprep.mubr.bf16.mxu0 %v5614_v5  ;;  %v2978_v25 = vpop.f32.mrf.mxu1  ;;  %9312 = vmatprep.subr.bf16.mxu1 %v10618_v17  ;;  %v5629_v52 = vrot.slane %v5627_v4, 1  ;;  %v10654_v5 = vld [vmem:[#allocation2 + $0x50] sm:$0xff]   ;;  %v9631_v4 = vld [vmem:[#allocation2 + $0x48] sm:$0xff]   ;;  %v5622_v33 = vsel %vm2241_vm1, %v5617_v21, %v5621_v20 }
 0x230   : > { %v10644_v16 = vadd.f32 %v2978_v25, %v10338_v34  ;;  %v3488_v61 = vpop.f32.mrf.mxu0  ;;  %9245 = vmatpush3.bf16.msra.mxu0 %v10332_v60  ;;  %v5623_v34 = vshrl.u32 %v9629_v47, 16  ;;  %v5635_v25 = vshll.u32 %v9631_v4, 16 }
 0x231   : > { %v10648_v46 = vadd.f32 %v3488_v61, %v10581_v43  ;;  %v8886_v58 = vpop.f32.mrf.mxu1  ;;  %9141 = vmatmul.mubr.bf16.gmra.mxu1 %v9579_v40  ;;  %9246 = vmatprep.subr.bf16.mxu0 %v10561_v39 }
 0x232   : > { %v10652_v14 = vadd.f32 %v8886_v58, %v10349_v45  ;;  %v8943_v62 = vpop.f32.mrf.mxu0  ;;  %9144 = vmatprep.mubr.bf16.mxu1 %v9580_v29  ;;  %9320 = vmatpush3.bf16.msra.mxu1 %v10618_v17  ;;  %v5625_v1 = vor.u32 %v5623_v34, %v5621_v20  ;;  %v5643_v58 = vshll.u32 %v10654_v5, 16  ;;  %v5631_v20 = vshrl.u32 %v10630_v0, 16 }
 0x233   : > { %v10658_v60 = vadd.f32 %v8943_v62, %v10588_v13  ;;  %v2991_v43 = vpop.f32.mrf.mxu1  ;;  %9313 = vmatprep.subr.bf16.mxu1 %v10641_v49  ;;  %v9584_v62 = vld [vmem:[#allocation2 + $0x50] sm:$0xff]  }
 0x234   : > { %v10667_v45 = vadd.f32 %v2991_v43, %v10358_v23  ;;  %v3491_v47 = vpop.f32.mrf.mxu0  ;;  %9247 = vmatpush3.bf16.msra.mxu0 %v10561_v39  ;;  %v5630_v23 = vsel %vm2241_vm1, %v5625_v1, %v5629_v52  ;;  %v9585_v43 = vld [vmem:[#allocation2 + $0x58] sm:$0xff]  }
 0x235   : > { %v10671_v13 = vadd.f32 %v3491_v47, %v10602_v11  ;;  %v8887_v40 = vpop.f32.mrf.mxu1  ;;  %9248 = vmatprep.subr.bf16.mxu0 %v10578_v15  ;;  %v5637_v47 = vrot.slane %v5635_v25, 1  ;;  %v10704_v25 = vld [vmem:[#allocation2 + $0x60] sm:$0xff]  }
 0x236   : > { %v10676_v61 = vadd.f32 %v8887_v40, %v10369_v31  ;;  %v8946_v29 = vpop.f32.mrf.mxu0  ;;  %9201 = vmatmul.mubr.bf16.gmra.mxu0 %v5622_v33  ;;  %9321 = vmatpush3.bf16.msra.mxu1 %v10641_v49  ;;  %v10689_v31 = vld [vmem:[%s11682_s3 + $0x200] sm:$0xff]   ;;  %v5633_v40 = vor.u32 %v5631_v20, %v5629_v52 }
 0x237   : > { %v10682_v39 = vadd.f32 %v8946_v29, %v10608_v18  ;;  %9204 = vmatprep.mubr.bf16.mxu0 %v5630_v23  ;;  %v2994_v11 = vpop.f32.mrf.mxu1  ;;  %9314 = vmatprep.subr.bf16.mxu1 %v10664_v36  ;;  %v10694_v18 = vld [vmem:[#allocation2 + $0x58] sm:$0xff]   ;;  %v5639_v29 = vshrl.u32 %v9631_v4, 16  ;;  %v5645_v23 = vrot.slane %v5643_v58, 1 }
 0x238   : > { %v10692_v21 = vadd.f32 %v2994_v11, %v10377_v38  ;;  %v3504_v34 = vpop.f32.mrf.mxu0  ;;  %9249 = vmatpush3.bf16.msra.mxu0 %v10578_v15  ;;  %v5638_v20 = vsel %vm2241_vm1, %v5633_v40, %v5637_v47 }
 0x239   : > { %v10698_v1 = vadd.f32 %v3504_v34, %v10621_v22  ;;  %v8890_v0 = vpop.f32.mrf.mxu1  ;;  %9145 = vmatmul.mubr.bf16.gmra.mxu1 %v9584_v62  ;;  %9250 = vmatprep.subr.bf16.mxu0 %v10599_v30  ;;  %v5651_v62 = vshll.u32 %v10694_v18, 16 }
 0x23a   : > { %v10702_v33 = vadd.f32 %v8890_v0, %v10386_v27  ;;  %v8947_v38 = vpop.f32.mrf.mxu0  ;;  %9148 = vmatprep.mubr.bf16.mxu1 %v9585_v43  ;;  %9322 = vmatpush3.bf16.msra.mxu1 %v10664_v36  ;;  %v5641_v27 = vor.u32 %v5639_v29, %v5637_v47  ;;  %v5659_v43 = vshll.u32 %v10704_v25, 16  ;;  %v9588_v0 = vld [vmem:[#allocation2 + $0x60] sm:$0xff]   ;;  %v5647_v47 = vshrl.u32 %v10654_v5, 16 }
 0x23b   : > { %v10708_v15 = vadd.f32 %v8947_v38, %v10627_v28  ;;  %v3007_v22 = vpop.f32.mrf.mxu1  ;;  %9315 = vmatprep.subr.bf16.mxu1 %v10689_v31  ;;  %v9589_v38 = vld [vmem:[#allocation2 + $0x68] sm:$0xff]   ;;  %v5653_v29 = vrot.slane %v5651_v62, 1  ;;  %v10741_v62 = vld [vmem:[#allocation2 + $0x70] sm:$0xff]  }
 0x23c   : > { %v10712_v52 = vadd.f32 %v3007_v22, %v10394_v9  ;;  %v3507_v11 = vpop.f32.mrf.mxu0  ;;  %9251 = vmatpush3.bf16.msra.mxu0 %v10599_v30  ;;  %v5646_v9 = vsel %vm2241_vm1, %v5641_v27, %v5645_v23  ;;  %v10732_v22 = vld [vmem:[#allocation2 + $0x68] sm:$0xff]  }
 0x23d   : > { %v10717_v4 = vadd.f32 %v3507_v11, %v10644_v16  ;;  %v8891_v58 = vpop.f32.mrf.mxu1  ;;  %9252 = vmatprep.subr.bf16.mxu0 %v10618_v17 }
 0x23e   : > { %v10722_v28 = vadd.f32 %v8891_v58, %v10401_v26  ;;  %v8950_v34 = vpop.f32.mrf.mxu0  ;;  %9205 = vmatmul.mubr.bf16.gmra.mxu0 %v5638_v20  ;;  %9323 = vmatpush3.bf16.msra.mxu1 %v10689_v31 }
 0x23f   : > { %v10728_v30 = vadd.f32 %v8950_v34, %v10652_v14  ;;  %9208 = vmatprep.mubr.bf16.mxu0 %v5646_v9  ;;  %v3010_v16 = vpop.f32.mrf.mxu1  ;;  %v5649_v14 = vor.u32 %v5647_v47, %v5645_v23  ;;  %v5661_v34 = vrot.slane %v5659_v43, 1  ;;  %v5667_v23 = vshll.u32 %v10732_v22, 16 }
 0x240   : > { %v3163_v40 = vadd.f32 %v3010_v16, %v10408_v56  ;;  %v3520_v26 = vpop.f32.mrf.mxu0  ;;  %9253 = vmatpush3.bf16.msra.mxu0 %v10618_v17  ;;  %v5655_v56 = vshrl.u32 %v10694_v18, 16 }
 0x241   : > { %v10736_v11 = vadd.f32 %v3520_v26, %v10667_v45  ;;  %v8894_v27 = vpop.f32.mrf.mxu1  ;;  %9149 = vmatmul.mubr.bf16.gmra.mxu1 %v9588_v0  ;;  %9254 = vmatprep.subr.bf16.mxu0 %v10641_v49  ;;  %v5654_v43 = vsel %vm2241_vm1, %v5649_v14, %v5653_v29 }
 0x242   : > { %v3168_v58 = vadd.f32 %v8894_v27, %v10414_v3  ;;  %v8951_v20 = vpop.f32.mrf.mxu0  ;;  %9152 = vmatprep.mubr.bf16.mxu1 %v9589_v38  ;;  %v5657_v0 = vor.u32 %v5655_v56, %v5653_v29  ;;  %v5675_v38 = vshll.u32 %v10741_v62, 16  ;;  %v9594_v56 = vld [vmem:[#allocation2 + $0x78] sm:$0xff]  }
 0x243   : > { %v10744_v9 = vadd.f32 %v8951_v20, %v10676_v61  ;;  %v3023_v17 = vpop.f32.mrf.mxu1  ;;  %v5663_v20 = vshrl.u32 %v10704_v25, 16 }
 0x244   : > { %v3166_v45 = vadd.f32 %v3023_v17, %v10421_v37  ;;  %v3523_v16 = vpop.f32.mrf.mxu0  ;;  %9255 = vmatpush3.bf16.msra.mxu0 %v10641_v49  ;;  %v5662_v37 = vsel %vm2241_vm1, %v5657_v0, %v5661_v34  ;;  %v5669_v17 = vrot.slane %v5667_v23, 1  ;;  %v10771_v23 = vld [vmem:[#allocation2 + $0x80] sm:$0xff]  }
 0x245   : > { %v10750_v3 = vadd.f32 %v3523_v16, %v10692_v21  ;;  %v8895_v47 = vpop.f32.mrf.mxu1  ;;  %9256 = vmatprep.subr.bf16.mxu0 %v10664_v36  ;;  %v9593_v21 = vld [vmem:[#allocation2 + $0x70] sm:$0xff]  }
 0x246   : > { %v3169_v61 = vadd.f32 %v8895_v47, %v10428_v10  ;;  %v8954_v26 = vpop.f32.mrf.mxu0  ;;  %9209 = vmatmul.mubr.bf16.gmra.mxu0 %v5654_v43  ;;  %v10762_v10 = vld [vmem:[#allocation2 + $0x78] sm:$0xff]  }
 0x247   : > { %v10758_v27 = vadd.f32 %v8954_v26, %v10702_v33  ;;  %9212 = vmatprep.mubr.bf16.mxu0 %v5662_v37  ;;  %v3026_v49 = vpop.f32.mrf.mxu1  ;;  %v5665_v33 = vor.u32 %v5663_v20, %v5661_v34  ;;  %v5677_v26 = vrot.slane %v5675_v38, 1  ;;  %v5683_v34 = vshll.u32 %v10762_v10, 16 }
 0x248   : > { %v3167_v29 = vadd.f32 %v3026_v49, %v10435_v41  ;;  %v3536_v14 = vpop.f32.mrf.mxu0  ;;  %9257 = vmatpush3.bf16.msra.mxu0 %v10664_v36  ;;  %v5671_v41 = vshrl.u32 %v10732_v22, 16 }
 0x249   : > { %v10766_v16 = vadd.f32 %v3536_v14, %v10712_v52  ;;  %v8898_v0 = vpop.f32.mrf.mxu1  ;;  %9153 = vmatmul.mubr.bf16.gmra.mxu1 %v9593_v21  ;;  %9258 = vmatprep.subr.bf16.mxu0 %v10689_v31  ;;  %v5670_v14 = vsel %vm2241_vm1, %v5665_v33, %v5669_v17  ;;  %v10789_v33 = vld [vmem:[#allocation2 + $0x88] sm:$0xff]  }
 0x24a   : > { %v3172_v47 = vadd.f32 %v8898_v0, %v10440_v32  ;;  %v8955_v43 = vpop.f32.mrf.mxu0  ;;  %9156 = vmatprep.mubr.bf16.mxu1 %v9594_v56  ;;  %v5673_v21 = vor.u32 %v5671_v41, %v5669_v17  ;;  %v5691_v0 = vshll.u32 %v10771_v23, 16  ;;  %v9598_v41 = vld [vmem:[#allocation2 + $0x80] sm:$0xff]   ;;  %v5685_v17 = vrot.slane %v5683_v34, 1 }
 0x24b   : > { %v10774_v37 = vadd.f32 %v8955_v43, %v10722_v28  ;;  %v3039_v36 = vpop.f32.mrf.mxu1 }
 0x24c   : > { %v3170_v52 = vadd.f32 %v3039_v36, %v10447_v57  ;;  %v3539_v49 = vpop.f32.mrf.mxu0  ;;  %9259 = vmatpush3.bf16.msra.mxu0 %v10689_v31  ;;  %v5678_v28 = vsel %vm2241_vm1, %v5673_v21, %v5677_v26  ;;  %v5679_v31 = vshrl.u32 %v10741_v62, 16 }
 0x24d   : > { %11703 = vst [vmem:[#allocation19_spill] sm:$0xff] %v10774_v37  ;;  %v10779_v32 = vadd.f32 %v3539_v49, %v3163_v40  ;;  %v8899_v20 = vpop.f32.mrf.mxu1  ;;  %v9599_v49 = vld [vmem:[#allocation2 + $0x88] sm:$0xff]  }
 0x24e   : > { %v3173_v38 = vadd.f32 %v8899_v20, %v10454_v50  ;;  %v8958_v56 = vpop.f32.mrf.mxu0  ;;  %9213 = vmatmul.mubr.bf16.gmra.mxu0 %v5670_v14  ;;  %v5681_v21 = vor.u32 %v5679_v31, %v5677_v26 }
 0x24f   : > { %11704 = vst [vmem:[#allocation20_spill] sm:$0xff] %v10779_v32  ;;  %v10785_v57 = vadd.f32 %v8958_v56, %v3168_v58  ;;  %9216 = vmatprep.mubr.bf16.mxu0 %v5678_v28  ;;  %v3042_v43 = vpop.f32.mrf.mxu1  ;;  %v5687_v56 = vshrl.u32 %v10762_v10, 16  ;;  %v5693_v28 = vrot.slane %v5691_v0, 1 }
 0x250   : > { %v3171_v40 = vadd.f32 %v3042_v43, %v10461_v6  ;;  %v3552_v36 = vpop.f32.mrf.mxu0 }
 0x251   : > { %11705 = vst [vmem:[#allocation21_spill] sm:$0xff] %v10785_v57  ;;  %v10791_v50 = vadd.f32 %v3552_v36, %v3166_v45  ;;  %v8902_v20 = vpop.f32.mrf.mxu1  ;;  %9157 = vmatmul.mubr.bf16.gmra.mxu1 %v9598_v41  ;;  %v10795_v57 = vld [vmem:[#allocation2 + $0x90] sm:$0xff]   ;;  %v5689_v45 = vor.u32 %v5687_v56, %v5685_v17  ;;  %v5699_v36 = vshll.u32 %v10789_v33, 16  ;;  %v5695_v56 = vshrl.u32 %v10771_v23, 16 }
 0x252   : > { %v3176_v58 = vadd.f32 %v8902_v20, %v10466_v48  ;;  %v8959_v14 = vpop.f32.mrf.mxu0  ;;  %9160 = vmatprep.mubr.bf16.mxu1 %v9599_v49  ;;  %v5686_v48 = vsel %vm2241_vm1, %v5681_v21, %v5685_v17  ;;  %v10811_v21 = vld [vmem:[#allocation2 + $0x98] sm:$0xff]  }
 0x253   : > { %11706 = vst [vmem:[#allocation22_spill] sm:$0xff] %v10791_v50  ;;  %v10797_v6 = vadd.f32 %v8959_v14, %v3169_v61  ;;  %v3055_v43 = vpop.f32.mrf.mxu1  ;;  %v5694_v0 = vsel %vm2241_vm1, %v5689_v45, %v5693_v28  ;;  %v5707_v61 = vshll.u32 %v10795_v57, 16  ;;  %v9602_v14 = vld [vmem:[#allocation2 + $0x90] sm:$0xff]   ;;  %v5701_v17 = vrot.slane %v5699_v36, 1  ;;  %v11714_v36 = vld [vmem:[#allocation12_spill] sm:$0xff] }
 0x254   : > { %v3174_v34 = vadd.f32 %v3055_v43, %v10473_v63  ;;  %v3555_v32 = vpop.f32.mrf.mxu0  ;;  %v5697_v45 = vor.u32 %v5695_v56, %v5693_v28 }
 0x255   : > { %11707 = vst [vmem:[#allocation23_spill] sm:$0xff] %v10797_v6  ;;  %v10801_v41 = vadd.f32 %v3555_v32, %v3167_v29  ;;  %v8903_v26 = vpop.f32.mrf.mxu1  ;;  %v11710_v29 = vld [vmem:[#allocation10_spill] sm:$0xff]  ;;  %v10817_v6 = vld [vmem:[#allocation2 + $0xa0] sm:$0xff]  }
 0x256   : > { %v3177_v31 = vadd.f32 %v8903_v26, %v10480_v55  ;;  %v8962_v49 = vpop.f32.mrf.mxu0  ;;  %9217 = vmatmul.mubr.bf16.gmra.mxu0 %v5686_v48  ;;  %v11712_v48 = vld [vmem:[#allocation11_spill] sm:$0xff]  ;;  %v5702_v56 = vsel %vm2241_vm1, %v5697_v45, %v5701_v17  ;;  %v10833_v45 = vld [vmem:[#allocation2 + $0xa8] sm:$0xff]  }
 0x257   : > { %11708 = vst [vmem:[#allocation24_spill] sm:$0xff] %v10801_v41  ;;  %v10807_v20 = vadd.f32 %v8962_v49, %v3172_v47  ;;  %9220 = vmatprep.mubr.bf16.mxu0 %v5694_v0  ;;  %v3058_v63 = vpop.f32.mrf.mxu1  ;;  %v9603_v41 = vld [vmem:[#allocation2 + $0x98] sm:$0xff]   ;;  %v5703_v0 = vshrl.u32 %v10789_v33, 16 }
 0x258   : > { %v3175_v32 = vadd.f32 %v3058_v63, %v11710_v29  ;;  %v3568_v43 = vpop.f32.mrf.mxu0 }
 0x259   : > { %11709 = vst [vmem:[#allocation25_spill] sm:$0xff] %v10807_v20  ;;  %v10813_v55 = vadd.f32 %v3568_v43, %v3170_v52  ;;  %v8906_v26 = vpop.f32.mrf.mxu1  ;;  %9161 = vmatmul.mubr.bf16.gmra.mxu1 %v9602_v14  ;;  %v5709_v20 = vrot.slane %v5707_v61, 1  ;;  %v5705_v52 = vor.u32 %v5703_v0, %v5701_v17  ;;  %v5715_v43 = vshll.u32 %v10811_v21, 16  ;;  %v9607_v0 = vld [vmem:[#allocation2 + $0xa0] sm:$0xff]  }
 0x25a   : > { %v3180_v47 = vadd.f32 %v8906_v26, %v11712_v48  ;;  %v8963_v49 = vpop.f32.mrf.mxu0  ;;  %9164 = vmatprep.mubr.bf16.mxu1 %v9603_v41 }
 0x25b   : > { %11711 = vst [vmem:[#allocation10_spill] sm:$0xff] %v10813_v55  ;;  %v10819_v63 = vadd.f32 %v8963_v49, %v3173_v38  ;;  %v3071_v29 = vpop.f32.mrf.mxu1  ;;  %v5710_v61 = vsel %vm2241_vm1, %v5705_v52, %v5709_v20  ;;  %v5723_v38 = vshll.u32 %v10817_v6, 16  ;;  %v5717_v17 = vrot.slane %v5715_v43, 1  ;;  %v11719_v43 = vld [vmem:[#allocation14_spill] sm:$0xff] }
 0x25c   : > { %v3178_v50 = vadd.f32 %v3071_v29, %v11714_v36  ;;  %v3571_v37 = vpop.f32.mrf.mxu0  ;;  %v5711_v29 = vshrl.u32 %v10795_v57, 16  ;;  %v9608_v36 = vld [vmem:[#allocation2 + $0xa8] sm:$0xff]  }
 0x25d   : > { %11713 = vst [vmem:[#allocation11_spill] sm:$0xff] %v10819_v63  ;;  %v10823_v14 = vadd.f32 %v3571_v37, %v3171_v40  ;;  %v8907_v28 = vpop.f32.mrf.mxu1 }
 0x25e   : > { %v3181_v41 = vadd.f32 %v8907_v28, %v10506_v12  ;;  %v8966_v26 = vpop.f32.mrf.mxu0  ;;  %9221 = vmatmul.mubr.bf16.gmra.mxu0 %v5702_v56  ;;  %v5713_v52 = vor.u32 %v5711_v29, %v5709_v20  ;;  %v11717_v56 = vld [vmem:[#allocation13_spill] sm:$0xff] }
 0x25f   : > { %11715 = vst [vmem:[#allocation12_spill] sm:$0xff] %v10823_v14  ;;  %v10829_v48 = vadd.f32 %v8966_v26, %v3176_v58  ;;  %9224 = vmatprep.mubr.bf16.mxu0 %v5710_v61  ;;  %v3074_v49 = vpop.f32.mrf.mxu1  ;;  %v5719_v61 = vshrl.u32 %v10811_v21, 16  ;;  %v10839_v14 = vld [vmem:[#allocation2 + $0xb0] sm:$0xff]  }
 0x260   : > { %v3179_v37 = vadd.f32 %v3074_v49, %v10513_v42  ;;  %v3584_v40 = vpop.f32.mrf.mxu0  ;;  %v5718_v29 = vsel %vm2241_vm1, %v5713_v52, %v5717_v17  ;;  %v9613_v52 = vld [vmem:[#allocation2 + $0xb8] sm:$0xff]  }
 0x261   : > { %11716 = vst [vmem:[#allocation26_spill] sm:$0xff] %v10829_v48  ;;  %v10835_v12 = vadd.f32 %v3584_v40, %v3174_v34  ;;  %v8910_v28 = vpop.f32.mrf.mxu1  ;;  %9165 = vmatmul.mubr.bf16.gmra.mxu1 %v9607_v0  ;;  %v5725_v48 = vrot.slane %v5723_v38, 1  ;;  %v5721_v34 = vor.u32 %v5719_v61, %v5717_v17  ;;  %v5731_v40 = vshll.u32 %v10833_v45, 16 }
 0x262   : > { %v3184_v58 = vadd.f32 %v8910_v28, %v11717_v56  ;;  %v8967_v26 = vpop.f32.mrf.mxu0  ;;  %9168 = vmatprep.mubr.bf16.mxu1 %v9608_v36  ;;  %v10851_v56 = vld [vmem:[#allocation2 + $0xb8] sm:$0xff]  }
 0x263   : > { %v10841_v42 = vadd.f32 %v8967_v26, %v3177_v31  ;;  %v3087_v49 = vpop.f32.mrf.mxu1  ;;  %v5726_v38 = vsel %vm2241_vm1, %v5721_v34, %v5725_v48  ;;  %v5739_v31 = vshll.u32 %v10839_v14, 16 }
 0x264   : > { %v3182_v63 = vadd.f32 %v3087_v49, %v11719_v43  ;;  %v3587_v55 = vpop.f32.mrf.mxu0  ;;  %v9612_v49 = vld [vmem:[#allocation2 + $0xb0] sm:$0xff]  }
 0x265   : > { %11718 = vst [vmem:[#allocation13_spill] sm:$0xff] %v10841_v42  ;;  %v10845_v0 = vadd.f32 %v3587_v55, %v3175_v32  ;;  %v8911_v20 = vpop.f32.mrf.mxu1  ;;  %v5727_v32 = vshrl.u32 %v10817_v6, 16 }
 0x266   : > { %v3185_v36 = vadd.f32 %v8911_v20, %v10529_v54  ;;  %v8970_v28 = vpop.f32.mrf.mxu0  ;;  %9225 = vmatmul.mubr.bf16.gmra.mxu0 %v5718_v29  ;;  %v5733_v54 = vrot.slane %v5731_v40, 1 }
 0x267   : > { %11720 = vst [vmem:[#allocation14_spill] sm:$0xff] %v10845_v0  ;;  %v10853_v26 = vadd.f32 %v8970_v28, %v3180_v47  ;;  %9228 = vmatprep.mubr.bf16.mxu0 %v5726_v38  ;;  %v3090_v61 = vpop.f32.mrf.mxu1  ;;  %v5729_v34 = vor.u32 %v5727_v32, %v5725_v48  ;;  %v5735_v47 = vshrl.u32 %v10833_v45, 16  ;;  %v5741_v28 = vrot.slane %v5739_v31, 1 }
 0x268   : > { %v3183_v55 = vadd.f32 %v3090_v61, %v10532_v19  ;;  %v3600_v17 = vpop.f32.mrf.mxu0  ;;  %v5747_v38 = vshll.u32 %v10851_v56, 16 }
 0x269   : > { %11721 = vst [vmem:[#allocation27_spill] sm:$0xff] %v10853_v26  ;;  %v10857_v43 = vadd.f32 %v3600_v17, %v3178_v50  ;;  %v8914_v20 = vpop.f32.mrf.mxu1  ;;  %9169 = vmatmul.mubr.bf16.gmra.mxu1 %v9612_v49  ;;  %v5737_v50 = vor.u32 %v5735_v47, %v5733_v54  ;;  %v10865_v17 = vld [vmem:[#allocation2 + $0xc0] sm:$0xff]  }
 0x26a   : > { %v3188_v29 = vadd.f32 %v8914_v20, %v10537_v51  ;;  %v8971_v0 = vpop.f32.mrf.mxu0  ;;  %9172 = vmatprep.mubr.bf16.mxu1 %v9613_v52  ;;  %v5734_v51 = vsel %vm2241_vm1, %v5729_v34, %v5733_v54  ;;  %v10873_v20 = vld [vmem:[#allocation2 + $0xc8] sm:$0xff]  }
 0x26b   : > { %11722 = vst [vmem:[#allocation28_spill] sm:$0xff] %v10857_v43  ;;  %v10862_v26 = vadd.f32 %v8971_v0, %v3181_v41  ;;  %v3103_v19 = vpop.f32.mrf.mxu1  ;;  %v5742_v31 = vsel %vm2241_vm1, %v5737_v50, %v5741_v28  ;;  %v5749_v41 = vrot.slane %v5747_v38, 1  ;;  %v5755_v0 = vshll.u32 %v10865_v17, 16 }
 0x26c   : > { %v3186_v61 = vadd.f32 %v3103_v19, %v10542_v53  ;;  %v3603_v40 = vpop.f32.mrf.mxu0  ;;  %v5743_v19 = vshrl.u32 %v10839_v14, 16 }
 0x26d   : > { %11723 = vst [vmem:[#allocation29_spill] sm:$0xff] %v10862_v26  ;;  %v10867_v49 = vadd.f32 %v3603_v40, %v3179_v37  ;;  %v8915_v48 = vpop.f32.mrf.mxu1  ;;  %v9616_v37 = vld [vmem:[#allocation2 + $0xc0] sm:$0xff]   ;;  %v5751_v40 = vshrl.u32 %v10851_v56, 16 }
 0x26e   : > { %v3189_v32 = vadd.f32 %v8915_v48, %v10547_v2  ;;  %v8974_v52 = vpop.f32.mrf.mxu0  ;;  %9229 = vmatmul.mubr.bf16.gmra.mxu0 %v5734_v51  ;;  %v9617_v2 = vld [vmem:[#allocation2 + $0xc8] sm:$0xff]   ;;  %v5745_v50 = vor.u32 %v5743_v19, %v5741_v28  ;;  %v11728_v26 = vld [vmem:[#allocation15_spill] sm:$0xff]  ;;  %v5759_v19 = vshrl.u32 %v10865_v17, 16 }
 0x26f   : > { %11724 = vst [vmem:[#allocation30_spill] sm:$0xff] %v10867_v49  ;;  %v10875_v53 = vadd.f32 %v8974_v52, %v3184_v58  ;;  %9232 = vmatprep.mubr.bf16.mxu0 %v5742_v31  ;;  %v3106_v47 = vpop.f32.mrf.mxu1  ;;  %v5753_v52 = vor.u32 %v5751_v40, %v5749_v41  ;;  %v5757_v31 = vrot.slane %v5755_v0, 1  ;;  %v10884_v49 = vld [vmem:[#allocation2 + $0xd0] sm:$0xff]   ;;  %v5767_v0 = vshrl.u32 %v10873_v20, 16 }
 0x270   : > { %v3187_v54 = vadd.f32 %v3106_v47, %v10550_v44  ;;  %v3616_v34 = vpop.f32.mrf.mxu0 }
 0x271   : > { %11725 = vst [vmem:[#allocation31_spill] sm:$0xff] %v10875_v53  ;;  %v10880_v48 = vadd.f32 %v3616_v34, %v3182_v63  ;;  %v8918_v38 = vpop.f32.mrf.mxu1  ;;  %9173 = vmatmul.mubr.bf16.gmra.mxu1 %v9616_v37  ;;  %v5763_v53 = vshll.u32 %v10873_v20, 16  ;;  %v6161_v34 = vrot.slane %v10654_v5, 1 }
 0x272   : > { %v3192_v51 = vadd.f32 %v8918_v38, %v10556_v24  ;;  %v8975_v58 = vpop.f32.mrf.mxu0  ;;  %9176 = vmatprep.mubr.bf16.mxu1 %v9617_v2  ;;  %v5750_v24 = vsel %vm2241_vm1, %v5745_v50, %v5749_v41  ;;  %v11730_v2 = vld [vmem:[#allocation16_spill] sm:$0xff] }
 0x273   : > { %11726 = vst [vmem:[#allocation32_spill] sm:$0xff] %v10880_v48  ;;  %v10886_v44 = vadd.f32 %v8975_v58, %v3185_v36  ;;  %v3119_v47 = vpop.f32.mrf.mxu1  ;;  %v5758_v36 = vsel %vm2241_vm1, %v5753_v52, %v5757_v31  ;;  %v5765_v58 = vrot.slane %v5763_v53, 1  ;;  %v5761_v52 = vor.u32 %v5759_v19, %v5757_v31  ;;  %v10906_v53 = vld [vmem:[#allocation2 + $0xd8] ss:$0 sps:$4 sm:$0x11]  }
 0x274   : > { %v3190_v43 = vadd.f32 %v3119_v47, %v11728_v26  ;;  %v3619_v63 = vpop.f32.mrf.mxu0  ;;  %v5771_v26 = vshll.u32 %v10884_v49, 16  ;;  %v11735_v48 = vld [vmem:[#allocation18_spill] sm:$0xff]  ;;  %v5775_v19 = vshrl.u32 %v10884_v49, 16 }
 0x275   : > { %11727 = vst [vmem:[#allocation33_spill] sm:$0xff] %v10886_v44  ;;  %v10890_v37 = vadd.f32 %v3619_v63, %v3183_v55  ;;  %v8919_v28 = vpop.f32.mrf.mxu1  ;;  %v9621_v55 = vld [vmem:[#allocation2 + $0xd0] sm:$0xff]   ;;  %v5766_v31 = vsel %vm2241_vm1, %v5761_v52, %v5765_v58 }
 0x276   : > { %v3193_v40 = vadd.f32 %v8919_v28, %v11730_v2  ;;  %v8978_v38 = vpop.f32.mrf.mxu0  ;;  %9233 = vmatmul.mubr.bf16.gmra.mxu0 %v5750_v24  ;;  %v11732_v63 = vld [vmem:[#allocation17_spill] sm:$0xff]  ;;  %v11733_v28 = vld [vmem:[#allocation3_spill] sm:$0xff] }
 0x277   : > { %11729 = vst [vmem:[#allocation15_spill] sm:$0xff] %v10890_v37  ;;  %v10898_v47 = vadd.f32 %v8978_v38, %v3188_v29  ;;  %9236 = vmatprep.mubr.bf16.mxu0 %v5758_v36  ;;  %v3122_v5 = vpop.f32.mrf.mxu1  ;;  %v11734_v2 = vrot.slane %v11733_v28, 1  ;;  %v5769_v36 = vor.u32 %v5767_v0, %v5765_v58 }
 0x278   : > { %v3191_v41 = vadd.f32 %v3122_v5, %v11732_v63  ;;  %v3632_v50 = vpop.f32.mrf.mxu0 }
 0x279   : > { %11731 = vst [vmem:[#allocation16_spill] sm:$0xff] %v10898_v47  ;;  %v10901_v37 = vadd.f32 %v3632_v50, %v3186_v61  ;;  %v8922_v44 = vpop.f32.mrf.mxu1  ;;  %9177 = vmatmul.mubr.bf16.gmra.mxu1 %v9621_v55  ;;  %v6162_v24 = vsel %vm2803_vm0, %v11734_v2, %v6161_v34  ;;  %v5773_v47 = vrot.slane %v5771_v26, 1  ;;  %v6165_v55 = vrot.slane %v10704_v25, 1 }
 0x27a   : > { %v3196_v29 = vadd.f32 %v8922_v44, %v11735_v48  ;;  %v8979_v38 = vpop.f32.mrf.mxu0  ;;  %9272 = vmatprep.mubr.bf16.mxu1 %v6162_v24  ;;  %v5779_v48 = vshll.u32 %v10906_v53, 16 }
 0x27b   : > { %v10909_v42 = vadd.f32 %v8979_v38, %v3189_v32  ;;  %v3135_v5 = vpop.f32.mrf.mxu1  ;;  %v5774_v32 = vsel %vm2241_vm1, %v5769_v36, %v5773_v47  ;;  %v5777_v38 = vor.u32 %v5775_v19, %v5773_v47 }
 0x27c   : > { %v3194_v61 = vadd.f32 %v3135_v5, %v10605_v59  ;;  %v3635_v63 = vpop.f32.mrf.mxu0  ;;  %v6163_v59 = vrot.slane %v10694_v18, 1  ;;  %v5781_v5 = vrot.slane %v5779_v48, 1 }
 0x27d   : > { %v10913_v50 = vadd.f32 %v3635_v63, %v3187_v54  ;;  %v8923_v28 = vpop.f32.mrf.mxu1 }
 0x27e   : > { %v3197_v44 = vadd.f32 %v8923_v28, %v10612_v8  ;;  %v8982_v0 = vpop.f32.mrf.mxu0  ;;  %9237 = vmatmul.mubr.bf16.gmra.mxu0 %v5766_v31  ;;  %v6164_v58 = vsel %vm2803_vm0, %v6161_v34, %v6163_v59  ;;  %v6166_v8 = vsel %vm2803_vm0, %v6163_v59, %v6165_v55  ;;  %v5782_v34 = vsel %vm2241_vm1, %v5777_v38, %v5781_v5 }
 0x27f   : > { %v10921_v26 = vadd.f32 %v8982_v0, %v3192_v51  ;;  %9240 = vmatprep.mubr.bf16.mxu0 %v5774_v32  ;;  %v3138_v25 = vpop.f32.mrf.mxu1  ;;  %v6169_v0 = vrot.slane %v10741_v62, 1 }
 0x280   : > { %v3195_v54 = vadd.f32 %v3138_v25, %v10623_v7  ;;  %v3648_v2 = vpop.f32.mrf.mxu0 }
 0x281   : > { %v10925_v24 = vadd.f32 %v3648_v2, %v3190_v43  ;;  %v9006_v52 = vpop.f32.mrf.mxu1  ;;  %9273 = vmatmul.mubr.bf16.vlgmr.msra.gmra.mxu1 %v6164_v58 }
 0x282   : > { %v8983_v36 = vpop.f32.mrf.mxu0  ;;  %v4410_v18 = vadd.f32 %v9006_v52, %v10635_v35  ;;  %9276 = vmatprep.mubr.bf16.mxu1 %v6166_v8  ;;  %v6167_v35 = vrot.slane %v10732_v22, 1 }
 0x283   : > { %v10929_v51 = vadd.f32 %v8983_v36, %v3193_v40  ;;  %v4217_v63 = vpop.f32.mrf.mxu1  ;;  %v11736_v40 = vld [vmem:[#allocation4_spill] sm:$0xff]  ;;  %v11737_v36 = vld [vmem:[#allocation5_spill] sm:$0xff] }
 0x284   : > { %v3651_v28 = vpop.f32.mrf.mxu0  ;;  %v4408_v7 = vadd.f32 %v4217_v63, %v10648_v46  ;;  %v6170_v62 = vsel %vm2803_vm0, %v6167_v35, %v6169_v0  ;;  %v6171_v63 = vrot.slane %v10762_v10, 1 }
 0x285   : > { %v10932_v31 = vadd.f32 %v3651_v28, %v3191_v41  ;;  %v9007_v43 = vpop.f32.mrf.mxu1  ;;  %v6168_v41 = vsel %vm2803_vm0, %v6165_v55, %v6167_v35 }
 0x286   : > { %v8986_v32 = vpop.f32.mrf.mxu0  ;;  %v4411_v47 = vadd.f32 %v9007_v43, %v10658_v60  ;;  %9241 = vmatmul.mubr.bf16.gmra.mxu0 %v5782_v34 }
 0x287   : > { %v10938_v19 = vadd.f32 %v8986_v32, %v3196_v29  ;;  %9260 = vmatprep.mubr.bf16.mxu0 %v11736_v40  ;;  %v4220_v48 = vpop.f32.mrf.mxu1 }
 0x288   : > { %v3664_v59 = vpop.f32.mrf.mxu0  ;;  %v4409_v46 = vadd.f32 %v4220_v48, %v10671_v13 }
 0x289   : > { %v10943_v25 = vadd.f32 %v3664_v59, %v3194_v61  ;;  %v9010_v2 = vpop.f32.mrf.mxu1  ;;  %9277 = vmatmul.mubr.bf16.gmra.mxu1 %v6168_v41  ;;  %v6173_v61 = vrot.slane %v10771_v23, 1 }
 0x28a   : > { %v8987_v60 = vpop.f32.mrf.mxu0  ;;  %v4414_v58 = vadd.f32 %v9010_v2, %v10682_v39  ;;  %9280 = vmatprep.mubr.bf16.mxu1 %v6170_v62  ;;  %v11739_v2 = vld [vmem:[#allocation7_spill] sm:$0xff] }
 0x28b   : > { %v10947_v22 = vadd.f32 %v8987_v60, %v3197_v44  ;;  %v4233_v29 = vpop.f32.mrf.mxu1  ;;  %v11738_v44 = vld [vmem:[#allocation6_spill] sm:$0xff] }
 0x28c   : > { %v3667_v52 = vpop.f32.mrf.mxu0  ;;  %v4412_v8 = vadd.f32 %v4233_v29, %v10698_v1 }
 0x28d   : > { %v10950_v38 = vadd.f32 %v3667_v52, %v3195_v54  ;;  %v9011_v13 = vpop.f32.mrf.mxu1  ;;  %v6172_v54 = vsel %vm2803_vm0, %v6169_v0, %v6171_v63 }
 0x28e   : > { %v4415_v55 = vadd.f32 %v9011_v13, %v10708_v15  ;;  %v9070_v5 = vpop.f32.mrf.mxu0  ;;  %9261 = vmatmul.mubr.bf16.vlgmr.msra.gmra.mxu0 %v11737_v36  ;;  %v6174_v15 = vsel %vm2803_vm0, %v6171_v63, %v6173_v61 }
 0x28f   : > { %v10956_v39 = vadd.f32 %v9070_v5, %v4410_v18  ;;  %9264 = vmatprep.mubr.bf16.mxu0 %v11738_v44  ;;  %v4236_v28 = vpop.f32.mrf.mxu1 }
 0x290   : > { %v4413_v43 = vadd.f32 %v4236_v28, %v10717_v4  ;;  %v4631_v1 = vpop.f32.mrf.mxu0 }
 0x291   : > { %v10961_v34 = vadd.f32 %v4631_v1, %v4408_v7  ;;  %v9014_v23 = vpop.f32.mrf.mxu1  ;;  %9281 = vmatmul.mubr.bf16.gmra.mxu1 %v6172_v54  ;;  %v6177_v7 = vrot.slane %v10795_v57, 1  ;;  %v11742_v54 = vld [vmem:[#allocation9_spill] sm:$0xff] }
 0x292   : > { %v4418_v32 = vadd.f32 %v9014_v23, %v10728_v30  ;;  %v9071_v35 = vpop.f32.mrf.mxu0  ;;  %9284 = vmatprep.mubr.bf16.mxu1 %v6174_v15  ;;  %v6175_v30 = vrot.slane %v10789_v33, 1  ;;  %v11743_v15 = vld [vmem:[#allocation20_spill] sm:$0xff] }
 0x293   : > { %v10965_v10 = vadd.f32 %v9071_v35, %v4411_v47  ;;  %v4249_v18 = vpop.f32.mrf.mxu1  ;;  %v11740_v47 = vld [vmem:[#allocation8_spill] sm:$0xff] }
 0x294   : > { %v4416_v40 = vadd.f32 %v4249_v18, %v10736_v11  ;;  %v4634_v48 = vpop.f32.mrf.mxu0 }
 0x295   : > { %v10968_v4 = vadd.f32 %v4634_v48, %v4409_v46  ;;  %v9015_v59 = vpop.f32.mrf.mxu1  ;;  %v6176_v46 = vsel %vm2803_vm0, %v6173_v61, %v6175_v30  ;;  %v11741_v61 = vld [vmem:[#allocation19_spill] sm:$0xff] }
 0x296   : > { %v4419_v0 = vadd.f32 %v9015_v59, %v10744_v9  ;;  %v9074_v41 = vpop.f32.mrf.mxu0  ;;  %9265 = vmatmul.mubr.bf16.gmra.mxu0 %v11739_v2  ;;  %v6178_v9 = vsel %vm2803_vm0, %v6175_v30, %v6177_v7  ;;  %v11744_v59 = vld [vmem:[#allocation21_spill] sm:$0xff] }
 0x297   : > { %v10974_v62 = vadd.f32 %v9074_v41, %v4414_v58  ;;  %9268 = vmatprep.mubr.bf16.mxu0 %v11740_v47  ;;  %v4252_v60 = vpop.f32.mrf.mxu1 }
 0x298   : > { %v4417_v11 = vadd.f32 %v4252_v60, %v10750_v3  ;;  %v4647_v29 = vpop.f32.mrf.mxu0 }
 0x299   : > { %v10979_v52 = vadd.f32 %v4647_v29, %v4412_v8  ;;  %v9018_v57 = vpop.f32.mrf.mxu1  ;;  %9285 = vmatmul.mubr.bf16.gmra.mxu1 %v6176_v46  ;;  %v6181_v8 = vrot.slane %v10817_v6, 1 }
 0x29a   : > { %v4422_v13 = vadd.f32 %v9018_v57, %v10758_v27  ;;  %v9075_v5 = vpop.f32.mrf.mxu0  ;;  %9288 = vmatprep.mubr.bf16.mxu1 %v6178_v9  ;;  %v6179_v27 = vrot.slane %v10811_v21, 1 }
 0x29b   : > { %v10983_v33 = vadd.f32 %v9075_v5, %v4415_v55  ;;  %v4265_v58 = vpop.f32.mrf.mxu1  ;;  %v6183_v5 = vrot.slane %v10833_v45, 1 }
 0x29c   : > { %v4420_v36 = vadd.f32 %v4265_v58, %v10766_v16  ;;  %v4650_v63 = vpop.f32.mrf.mxu0  ;;  %v6180_v16 = vsel %vm2803_vm0, %v6177_v7, %v6179_v27  ;;  %v6182_v6 = vsel %vm2803_vm0, %v6179_v27, %v6181_v8  ;;  %v11746_v7 = vld [vmem:[#allocation23_spill] sm:$0xff] }
 0x29d   : > { %v10986_v3 = vadd.f32 %v4650_v63, %v4413_v43  ;;  %v9019_v44 = vpop.f32.mrf.mxu1 }
 0x29e   : > { %v4423_v28 = vadd.f32 %v9019_v44, %v11741_v61  ;;  %v9078_v1 = vpop.f32.mrf.mxu0  ;;  %9269 = vmatmul.mubr.bf16.gmra.mxu0 %v11742_v54  ;;  %v11747_v44 = vld [vmem:[#allocation24_spill] sm:$0xff] }
 0x29f   : > { %v10992_v23 = vadd.f32 %v9078_v1, %v4418_v32  ;;  %v4268_v55 = vpop.f32.mrf.mxu1  ;;  %v11745_v32 = vld [vmem:[#allocation22_spill] sm:$0xff]  ;;  %v6184_v1 = vsel %vm2803_vm0, %v6181_v8, %v6183_v5  ;;  %v6189_v8 = vrot.slane %v10865_v17, 1 }
 0x2a0   : > { %v4421_v35 = vadd.f32 %v4268_v55, %v11743_v15  ;;  %v4663_v18 = vpop.f32.mrf.mxu0 }
 0x2a1   : > { %v10996_v43 = vadd.f32 %v4663_v18, %v4416_v40  ;;  %v9022_v48 = vpop.f32.mrf.mxu1  ;;  %9289 = vmatmul.mubr.bf16.gmra.mxu1 %v6180_v16  ;;  %v6185_v40 = vrot.slane %v10839_v14, 1  ;;  %v11748_v14 = vld [vmem:[#allocation25_spill] sm:$0xff] }
 0x2a2   : > { %v4426_v41 = vadd.f32 %v9022_v48, %v11744_v59  ;;  %v9079_v2 = vpop.f32.mrf.mxu0  ;;  %9292 = vmatprep.mubr.bf16.mxu1 %v6182_v6 }
 0x2a3   : > { %v11000_v30 = vadd.f32 %v9079_v2, %v4419_v0  ;;  %v4281_v21 = vpop.f32.mrf.mxu1  ;;  %v6186_v27 = vsel %vm2803_vm0, %v6183_v5, %v6185_v40  ;;  %v11750_v2 = vld [vmem:[#allocation11_spill] sm:$0xff] }
 0x2a4   : > { %v4424_v47 = vadd.f32 %v4281_v21, %v11745_v32  ;;  %v4666_v60 = vpop.f32.mrf.mxu0 }
 0x2a5   : > { %v11003_v29 = vadd.f32 %v4666_v60, %v4417_v11  ;;  %v9023_v46 = vpop.f32.mrf.mxu1 }
 0x2a6   : > { %v4427_v57 = vadd.f32 %v9023_v46, %v11746_v7  ;;  %v9082_v9 = vpop.f32.mrf.mxu0  ;;  %v11751_v7 = vld [vmem:[#allocation12_spill] sm:$0xff] }
 0x2a7   : > { %v11008_v58 = vadd.f32 %v9082_v9, %v4422_v13  ;;  %v4284_v63 = vpop.f32.mrf.mxu1  ;;  %v11749_v13 = vld [vmem:[#allocation10_spill] sm:$0xff] }
 0x2a8   : > { %v4425_v0 = vadd.f32 %v4284_v63, %v11747_v44  ;;  %v4679_v61 = vpop.f32.mrf.mxu0 }
 0x2a9   : > { %v11012_v54 = vadd.f32 %v4679_v61, %v4420_v36  ;;  %v9026_v11 = vpop.f32.mrf.mxu1  ;;  %9293 = vmatmul.mubr.bf16.gmra.mxu1 %v6184_v1  ;;  %v6187_v36 = vrot.slane %v10851_v56, 1  ;;  %v11752_v56 = vld [vmem:[#allocation26_spill] sm:$0xff] }
 0x2aa   : > { %v4430_v55 = vadd.f32 %v9026_v11, %v11748_v14  ;;  %v9083_v15 = vpop.f32.mrf.mxu0  ;;  %9296 = vmatprep.mubr.bf16.mxu1 %v6186_v27  ;;  %v6191_v14 = vrot.slane %v10873_v20, 1 }
 0x2ab   : > { %v11016_v18 = vadd.f32 %v9083_v15, %v4423_v28  ;;  %v4297_v45 = vpop.f32.mrf.mxu1  ;;  %v6188_v5 = vsel %vm2803_vm0, %v6185_v40, %v6187_v36  ;;  %v6190_v44 = vsel %vm2803_vm0, %v6187_v36, %v6189_v8  ;;  %v6193_v40 = vrot.slane %v10884_v49, 1 }
 0x2ac   : > { %v4428_v16 = vadd.f32 %v4297_v45, %v11749_v13  ;;  %v4682_v48 = vpop.f32.mrf.mxu0  ;;  %v11753_v45 = vld [vmem:[#allocation13_spill] sm:$0xff] }
 0x2ad   : > { %v11019_v6 = vadd.f32 %v4682_v48, %v4421_v35  ;;  %v9027_v59 = vpop.f32.mrf.mxu1  ;;  %v6194_v20 = vsel %vm2803_vm0, %v6191_v14, %v6193_v40 }
 0x2ae   : > { %v4431_v21 = vadd.f32 %v9027_v59, %v11750_v2  ;;  %v9086_v32 = vpop.f32.mrf.mxu0  ;;  %v11754_v2 = vld [vmem:[#allocation14_spill] sm:$0xff] }
 0x2af   : > { %v11024_v60 = vadd.f32 %v9086_v32, %v4426_v41  ;;  %v4300_v46 = vpop.f32.mrf.mxu1 }
 0x2b0   : > { %v4429_v28 = vadd.f32 %v4300_v46, %v11751_v7  ;;  %v4695_v9 = vpop.f32.mrf.mxu0  ;;  %v6192_v46 = vsel %vm2803_vm0, %v6189_v8, %v6191_v14  ;;  %v11757_v8 = vld [vmem:[#allocation29_spill] sm:$0xff] }
 0x2b1   : > { %v11028_v63 = vadd.f32 %v4695_v9, %v4424_v47  ;;  %v9030_v35 = vpop.f32.mrf.mxu1  ;;  %9297 = vmatmul.mubr.bf16.gmra.mxu1 %v6188_v5 }
 0x2b2   : > { %v4434_v61 = vadd.f32 %v9030_v35, %v11752_v56  ;;  %v9087_v17 = vpop.f32.mrf.mxu0  ;;  %9300 = vmatprep.mubr.bf16.mxu1 %v6190_v44  ;;  %v11756_v35 = vld [vmem:[#allocation28_spill] sm:$0xff] }
 0x2b3   : > { %v11032_v1 = vadd.f32 %v9087_v17, %v4427_v57  ;;  %v4313_v41 = vpop.f32.mrf.mxu1  ;;  %v6195_v17 = vrot.slane %v10906_v53, 1 }
 0x2b4   : > { %v4432_v11 = vadd.f32 %v4313_v41, %v10835_v12  ;;  %v4698_v27 = vpop.f32.mrf.mxu0 }
 0x2b5   : > { %v11036_v15 = vadd.f32 %v4698_v27, %v4425_v0  ;;  %v9031_v47 = vpop.f32.mrf.mxu1  ;;  %v11755_v0 = vld [vmem:[#allocation27_spill] sm:$0xff] }
 0x2b6   : > { %v4435_v13 = vadd.f32 %v9031_v47, %v11753_v45  ;;  %v9090_v48 = vpop.f32.mrf.mxu0 }
 0x2b7   : > { %v11040_v59 = vadd.f32 %v9090_v48, %v4430_v55  ;;  %v4316_v36 = vpop.f32.mrf.mxu1  ;;  %v11758_v48 = vld [vmem:[#allocation30_spill] sm:$0xff] }
 0x2b8   : > { %v4433_v57 = vadd.f32 %v4316_v36, %v11754_v2  ;;  %v4711_v32 = vpop.f32.mrf.mxu0 }
 0x2b9   : > { %v11044_v12 = vadd.f32 %v4711_v32, %v4428_v16  ;;  %v9034_v7 = vpop.f32.mrf.mxu1  ;;  %9301 = vmatmul.mubr.bf16.gmra.mxu1 %v6192_v46 }
 0x2ba   : > { %v4438_v9 = vadd.f32 %v9034_v7, %v11755_v0  ;;  %v9091_v49 = vpop.f32.mrf.mxu0  ;;  %9304 = vmatprep.mubr.bf16.mxu1 %v6194_v20  ;;  %v11759_v7 = vld [vmem:[#allocation31_spill] sm:$0xff] }
 0x2bb   : > { %v11048_v5 = vadd.f32 %v9091_v49, %v4431_v21  ;;  %v4329_v55 = vpop.f32.mrf.mxu1  ;;  %v6196_v21 = vsel %vm2803_vm0, %v6193_v40, %v6195_v17  ;;  %v11760_v49 = vld [vmem:[#allocation32_spill] sm:$0xff]  ;;  %v11762_v17 = vld [vmem:[#allocation15_spill] sm:$0xff] }
 0x2bc   : > { %v4436_v44 = vadd.f32 %v4329_v55, %v11756_v35  ;;  %v4714_v56 = vpop.f32.mrf.mxu0 }
 0x2bd   : > { %v11052_v41 = vadd.f32 %v4714_v56, %v4429_v28  ;;  %v9035_v16 = vpop.f32.mrf.mxu1 }
 0x2be   : > { %v4439_v27 = vadd.f32 %v9035_v16, %v11757_v8  ;;  %v9094_v47 = vpop.f32.mrf.mxu0  ;;  %v11761_v16 = vld [vmem:[#allocation33_spill] sm:$0xff] }
 0x2bf   : > { %v11055_v45 = vadd.f32 %v9094_v47, %v4434_v61  ;;  %v4332_v14 = vpop.f32.mrf.mxu1 }
 0x2c0   : > { %v4437_v36 = vadd.f32 %v4332_v14, %v11758_v48  ;;  %v4727_v2 = vpop.f32.mrf.mxu0 }
 0x2c1   : > { %v11059_v32 = vadd.f32 %v4727_v2, %v4432_v11  ;;  %v9038_v46 = vpop.f32.mrf.mxu1  ;;  %9305 = vmatmul.mubr.bf16.gmra.mxu1 %v6196_v21  ;;  %v11763_v21 = vld [vmem:[#allocation16_spill] sm:$0xff] }
 0x2c2   : > { %v4442_v53 = vadd.f32 %v9038_v46, %v11759_v7  ;;  %v9095_v28 = vpop.f32.mrf.mxu0 }
 0x2c3   : > { %v11062_v20 = vadd.f32 %v9095_v28, %v4435_v13  ;;  %v4345_v0 = vpop.f32.mrf.mxu1 }
 0x2c4   : > { %v4440_v55 = vadd.f32 %v4345_v0, %v11760_v49  ;;  %v4730_v61 = vpop.f32.mrf.mxu0 }
 0x2c5   : > { %v11065_v35 = vadd.f32 %v4730_v61, %v4433_v57  ;;  %v9039_v56 = vpop.f32.mrf.mxu1 }
 0x2c6   : > { %v4443_v8 = vadd.f32 %v9039_v56, %v11761_v16  ;;  %v9098_v47 = vpop.f32.mrf.mxu0 }
 0x2c7   : > { %v11068_v40 = vadd.f32 %v9098_v47, %v4438_v9  ;;  %v4348_v11 = vpop.f32.mrf.mxu1 }
 0x2c8   : > { %v4441_v14 = vadd.f32 %v4348_v11, %v11762_v17  ;;  %v4743_v48 = vpop.f32.mrf.mxu0 }
 0x2c9   : > { %v11071_v2 = vadd.f32 %v4743_v48, %v4436_v44  ;;  %v9042_v13 = vpop.f32.mrf.mxu1 }
 0x2ca   : > { %v4446_v46 = vadd.f32 %v9042_v13, %v11763_v21  ;;  %v9099_v7 = vpop.f32.mrf.mxu0 }
 0x2cb   : > { %v11074_v28 = vadd.f32 %v9099_v7, %v4439_v27  ;;  %v4361_v57 = vpop.f32.mrf.mxu1 }
 0x2cc   : > { %v4444_v0 = vadd.f32 %v4361_v57, %v10901_v37  ;;  %v4746_v49 = vpop.f32.mrf.mxu0 }
 0x2cd   : > { %v11077_v61 = vadd.f32 %v4746_v49, %v4437_v36  ;;  %v9043_v9 = vpop.f32.mrf.mxu1 }
 0x2ce   : > { %v4447_v56 = vadd.f32 %v9043_v9, %v10909_v42  ;;  %v9102_v16 = vpop.f32.mrf.mxu0 }
 0x2cf   : > { %v11080_v47 = vadd.f32 %v9102_v16, %v4442_v53  ;;  %v4364_v44 = vpop.f32.mrf.mxu1 }
 0x2d0   : > { %v4445_v11 = vadd.f32 %v4364_v44, %v10913_v50  ;;  %v4759_v17 = vpop.f32.mrf.mxu0 }
 0x2d1   : > { %v11083_v48 = vadd.f32 %v4759_v17, %v4440_v55  ;;  %v9046_v27 = vpop.f32.mrf.mxu1 }
 0x2d2   : > { %v4450_v13 = vadd.f32 %v9046_v27, %v10921_v26  ;;  %v9103_v21 = vpop.f32.mrf.mxu0 }
 0x2d3   : > { %v11086_v37 = vadd.f32 %v9103_v21, %v4443_v8  ;;  %v4377_v36 = vpop.f32.mrf.mxu1 }
 0x2d4   : > { %v4448_v7 = vadd.f32 %v4377_v36, %v10925_v24  ;;  %v4762_v57 = vpop.f32.mrf.mxu0 }
 0x2d5   : > { %v11089_v42 = vadd.f32 %v4762_v57, %v4441_v14  ;;  %v9047_v53 = vpop.f32.mrf.mxu1 }
 0x2d6   : > { %v4451_v49 = vadd.f32 %v9047_v53, %v10929_v51  ;;  %v9106_v9 = vpop.f32.mrf.mxu0 }
 0x2d7   : > { %v11092_v50 = vadd.f32 %v9106_v9, %v4446_v46  ;;  %v4380_v55 = vpop.f32.mrf.mxu1 }
 0x2d8   : > { %v4449_v16 = vadd.f32 %v4380_v55, %v10932_v31  ;;  %v4775_v44 = vpop.f32.mrf.mxu0 }
 0x2d9   : > { %v11095_v26 = vadd.f32 %v4775_v44, %v4444_v0  ;;  %v9050_v8 = vpop.f32.mrf.mxu1 }
 0x2da   : > { %v4454_v17 = vadd.f32 %v9050_v8, %v10938_v19  ;;  %v9107_v27 = vpop.f32.mrf.mxu0 }
 0x2db   : > { %v11098_v24 = vadd.f32 %v9107_v27, %v4447_v56  ;;  %v4393_v14 = vpop.f32.mrf.mxu1 }
 0x2dc   : > { %v4452_v21 = vadd.f32 %v4393_v14, %v10943_v25  ;;  %v4778_v36 = vpop.f32.mrf.mxu0 }
 0x2dd   : > { %v11101_v51 = vadd.f32 %v4778_v36, %v4445_v11  ;;  %v9051_v46 = vpop.f32.mrf.mxu1 }
 0x2de   : > { %v4455_v57 = vadd.f32 %v9051_v46, %v10947_v22  ;;  %v9110_v53 = vpop.f32.mrf.mxu0 }
 0x2df   : > { %v11104_v31 = vadd.f32 %v9110_v53, %v4450_v13  ;;  %v4396_v0 = vpop.f32.mrf.mxu1 }
 0x2e0   : > { %v4453_v9 = vadd.f32 %v4396_v0, %v10950_v38  ;;  %v4791_v55 = vpop.f32.mrf.mxu0 }
 0x2e1   : > { %v11107_v19 = vadd.f32 %v4791_v55, %v4448_v7  ;;  %v9134_v56 = vpop.f32.mrf.mxu1 }
 0x2e2   : > { %v9111_v44 = vpop.f32.mrf.mxu0  ;;  %v5353_v8 = vadd.f32 %v9134_v56, %v10956_v39 }
 0x2e3   : > { %v11110_v25 = vadd.f32 %v9111_v44, %v4451_v49  ;;  %v5160_v11 = vpop.f32.mrf.mxu1 }
 0x2e4   : > { %v4794_v27 = vpop.f32.mrf.mxu0  ;;  %v5351_v14 = vadd.f32 %v5160_v11, %v10961_v34 }
 0x2e5   : > { %v11113_v22 = vadd.f32 %v4794_v27, %v4449_v16  ;;  %v9135_v13 = vpop.f32.mrf.mxu1 }
 0x2e6   : > { %v9114_v36 = vpop.f32.mrf.mxu0  ;;  %v5354_v46 = vadd.f32 %v9135_v13, %v10965_v10 }
 0x2e7   : > { %v11116_v38 = vadd.f32 %v9114_v36, %v4454_v17  ;;  %v5163_v7 = vpop.f32.mrf.mxu1 }
 0x2e8   : > { %v4807_v53 = vpop.f32.mrf.mxu0  ;;  %v5352_v0 = vadd.f32 %v5163_v7, %v10968_v4 }
 0x2e9   : > { %v11119_v55 = vadd.f32 %v4807_v53, %v4452_v21  ;;  %v9138_v39 = vpop.f32.mrf.mxu1 }
 0x2ea   : > { %v9115_v49 = vpop.f32.mrf.mxu0  ;;  %v5357_v56 = vadd.f32 %v9138_v39, %v10974_v62 }
 0x2eb   : > { %v11122_v44 = vadd.f32 %v9115_v49, %v4455_v57  ;;  %v5176_v34 = vpop.f32.mrf.mxu1 }
 0x2ec   : > { %v4810_v16 = vpop.f32.mrf.mxu0  ;;  %v5355_v11 = vadd.f32 %v5176_v34, %v10979_v52 }
 0x2ed   : > { %v11125_v27 = vadd.f32 %v4810_v16, %v4453_v9  ;;  %v9139_v10 = vpop.f32.mrf.mxu1 }
 0x2ee   : > { %v5358_v17 = vadd.f32 %v9139_v10, %v10983_v33  ;;  %v9198_v13 = vpop.f32.mrf.mxu0 }
 0x2ef   : > { %v11128_v36 = vadd.f32 %v9198_v13, %v5353_v8  ;;  %v5179_v4 = vpop.f32.mrf.mxu1 }
 0x2f0   : > { %v5356_v21 = vadd.f32 %v5179_v4, %v10986_v3  ;;  %v5889_v7 = vpop.f32.mrf.mxu0 }
 0x2f1   : > { %v11131_v53 = vadd.f32 %v5889_v7, %v5351_v14  ;;  %v9142_v62 = vpop.f32.mrf.mxu1 }
 0x2f2   : > { %v5361_v57 = vadd.f32 %v9142_v62, %v10992_v23  ;;  %v9199_v39 = vpop.f32.mrf.mxu0 }
 0x2f3   : > { %v11134_v49 = vadd.f32 %v9199_v39, %v5354_v46  ;;  %v5192_v52 = vpop.f32.mrf.mxu1 }
 0x2f4   : > { %v5359_v9 = vadd.f32 %v5192_v52, %v10996_v43  ;;  %v5892_v34 = vpop.f32.mrf.mxu0 }
 0x2f5   : > { %11764 = vst [vmem:[#allocation17_spill] sm:$0xff] %v11134_v49  ;;  %v11137_v33 = vadd.f32 %v5892_v34, %v5352_v0  ;;  %v9143_v8 = vpop.f32.mrf.mxu1 }
 0x2f6   : > { %v5362_v16 = vadd.f32 %v9143_v8, %v11000_v30  ;;  %v9202_v10 = vpop.f32.mrf.mxu0 }
 0x2f7   : > { %11765 = vst [vmem:[#allocation3_spill] sm:$0xff] %v11137_v33  ;;  %v11140_v3 = vadd.f32 %v9202_v10, %v5357_v56  ;;  %v5195_v14 = vpop.f32.mrf.mxu1  ;;  %v8254_v33 = vld [vmem:[%s9721_s6 + $0x60] sm:$0xff]  }
 0x2f8   : > { %v5360_v13 = vadd.f32 %v5195_v14, %v11003_v29  ;;  %v5905_v4 = vpop.f32.mrf.mxu0 }
 0x2f9   : > { %11766 = vst [vmem:[#allocation18_spill] sm:$0xff] %v11140_v3  ;;  %v11143_v23 = vadd.f32 %v5905_v4, %v5355_v11  ;;  %v9146_v46 = vpop.f32.mrf.mxu1  ;;  %v6590_v3 = vld [vmem:[%s9721_s6 + $0xc] sm:$0xf] }
 0x2fa   : > { %v11146_v7 = vadd.f32 %v9146_v46, %v11008_v58  ;;  %v9203_v43 = vpop.f32.mrf.mxu0 }
 0x2fb   : > { %11767 = vst [vmem:[#allocation4_spill] sm:$0xff] %v11143_v23  ;;  %v11148_v62 = vadd.f32 %v9203_v43, %v5358_v17  ;;  %v5208_v0 = vpop.f32.mrf.mxu1 }
 0x2fc   : > { %v11151_v39 = vadd.f32 %v5208_v0, %v11012_v54  ;;  %v5908_v30 = vpop.f32.mrf.mxu0 }
 0x2fd   : > { %11768 = vst [vmem:[#allocation5_spill] sm:$0xff] %v11148_v62  ;;  %v11153_v56 = vadd.f32 %v5908_v30, %v5356_v21  ;;  %v9147_v52 = vpop.f32.mrf.mxu1 }
 0x2fe   : > { %v11156_v29 = vadd.f32 %v9147_v52, %v11016_v18  ;;  %v9206_v11 = vpop.f32.mrf.mxu0 }
 0x2ff   : > { %11769 = vst [vmem:[#allocation6_spill] sm:$0xff] %v11153_v56  ;;  %v11158_v34 = vadd.f32 %v9206_v11, %v5361_v57  ;;  %v5211_v8 = vpop.f32.mrf.mxu1  ;;  %v8251_v56 = vld [vmem:[%s9721_s6 + $0x48] sm:$0xff]  }
 0x300   : > { %v11161_v58 = vadd.f32 %v5211_v8, %v11019_v6  ;;  %v5921_v17 = vpop.f32.mrf.mxu0 }
 0x301   : > { %11770 = vst [vmem:[#allocation7_spill] sm:$0xff] %v11158_v34  ;;  %v11163_v10 = vadd.f32 %v5921_v17, %v5359_v9  ;;  %v9150_v14 = vpop.f32.mrf.mxu1 }
 0x302   : > { %v11166_v54 = vadd.f32 %v9150_v14, %v11024_v60  ;;  %v9207_v21 = vpop.f32.mrf.mxu0 }
 0x303   : > { %11771 = vst [vmem:[#allocation8_spill] sm:$0xff] %v11163_v10  ;;  %v11168_v4 = vadd.f32 %v9207_v21, %v5362_v16  ;;  %v5224_v46 = vpop.f32.mrf.mxu1 }
 0x304   : > { %v11171_v18 = vadd.f32 %v5224_v46, %v11028_v63  ;;  %v5924_v57 = vpop.f32.mrf.mxu0 }
 0x305   : > { %11772 = vst [vmem:[#allocation19_spill] sm:$0xff] %v11168_v4  ;;  %v11173_v43 = vadd.f32 %v5924_v57, %v5360_v13  ;;  %v9151_v0 = vpop.f32.mrf.mxu1 }
 0x306   : > { %v11176_v6 = vadd.f32 %v9151_v0, %v11032_v1  ;;  %v11178_v9 = vpop.f32.mrf.mxu0 }
 0x307   : > { %11773 = vst [vmem:[#allocation9_spill] sm:$0xff] %v11173_v43  ;;  %v5227_v30 = vpop.f32.mrf.mxu1 }
 0x308   : > { %v11181_v60 = vadd.f32 %v5227_v30, %v11036_v15  ;;  %v11183_v52 = vpop.f32.mrf.mxu0 }
 0x309   : > { %v9154_v16 = vpop.f32.mrf.mxu1 }
 0x30a   : > { %v11186_v11 = vadd.f32 %v9154_v16, %v11040_v59  ;;  %v11188_v63 = vpop.f32.mrf.mxu0 }
 0x30b   : > { %v5240_v13 = vpop.f32.mrf.mxu1 }
 0x30c   : > { %v11191_v8 = vadd.f32 %v5240_v13, %v11044_v12  ;;  %v11193_v1 = vpop.f32.mrf.mxu0 }
 0x30d   : > { %v9155_v17 = vpop.f32.mrf.mxu1 }
 0x30e   : > { %v11196_v14 = vadd.f32 %v9155_v17, %v11048_v5  ;;  %v11198_v15 = vpop.f32.mrf.mxu0 }
 0x30f   : > { %v5243_v21 = vpop.f32.mrf.mxu1 }
 0x310   : > { %v11201_v46 = vadd.f32 %v5243_v21, %v11052_v41  ;;  %v11203_v59 = vpop.f32.mrf.mxu0 }
 0x311   : > { %v9158_v57 = vpop.f32.mrf.mxu1 }
 0x312   : > { %11774 = vst [vmem:[#allocation20_spill] sm:$0xff] %v11201_v46  ;;  %v11206_v0 = vadd.f32 %v9158_v57, %v11055_v45  ;;  %v11208_v12 = vpop.f32.mrf.mxu0 }
 0x313   : > { %v5256_v30 = vpop.f32.mrf.mxu1 }
 0x314   : > { %11775 = vst [vmem:[#allocation21_spill] sm:$0xff] %v11206_v0  ;;  %v11211_v16 = vadd.f32 %v5256_v30, %v11059_v32  ;;  %v11213_v5 = vpop.f32.mrf.mxu0  ;;  %v6635_v0 = vunpack.c.l.bf16 %v6590_v3 }
 0x315   : > { %v9159_v13 = vpop.f32.mrf.mxu1 }
 0x316   : > { %11776 = vst [vmem:[#allocation22_spill] sm:$0xff] %v11211_v16  ;;  %v11216_v17 = vadd.f32 %v9159_v13, %v11062_v20  ;;  %v11218_v41 = vpop.f32.mrf.mxu0 }
 0x317   : > { %v5259_v21 = vpop.f32.mrf.mxu1 }
 0x318   : > { %11777 = vst [vmem:[#allocation23_spill] sm:$0xff] %v11216_v17  ;;  %v11221_v43 = vadd.f32 %v5259_v21, %v11065_v35  ;;  %v11223_v45 = vpop.f32.mrf.mxu0 }
 0x319   : > { %v9162_v57 = vpop.f32.mrf.mxu1 }
 0x31a   : > { %11778 = vst [vmem:[#allocation24_spill] sm:$0xff] %v11221_v43  ;;  %v11226_v4 = vadd.f32 %v9162_v57, %v11068_v40  ;;  %v11228_v32 = vpop.f32.mrf.mxu0 }
 0x31b   : > { %11780 = vst [vmem:[#allocation10_spill] sm:$0xff] %v11228_v32  ;;  %v5272_v30 = vpop.f32.mrf.mxu1  ;;  %v11349_v32 = vld [vmem:[%s9721_s6 + $0x78] sm:$0xff]  }
 0x31c   : > { %11779 = vst [vmem:[#allocation25_spill] sm:$0xff] %v11226_v4  ;;  %v11231_v10 = vadd.f32 %v5272_v30, %v11071_v2  ;;  %v11233_v20 = vpop.f32.mrf.mxu0 }
 0x31d   : > { %11782 = vst [vmem:[#allocation12_spill] sm:$0xff] %v11233_v20  ;;  %v9163_v13 = vpop.f32.mrf.mxu1  ;;  %v8255_v20 = vld [vmem:[%s9721_s6 + $0x68] sm:$0xff]  }
 0x31e   : > { %11781 = vst [vmem:[#allocation11_spill] sm:$0xff] %v11231_v10  ;;  %v11236_v34 = vadd.f32 %v9163_v13, %v11074_v28  ;;  %v11238_v35 = vpop.f32.mrf.mxu0 }
 0x31f   : > { %11784 = vst [vmem:[#allocation13_spill] sm:$0xff] %v11238_v35  ;;  %v5275_v21 = vpop.f32.mrf.mxu1 }
 0x320   : > { %11783 = vst [vmem:[#allocation26_spill] sm:$0xff] %v11236_v34  ;;  %v11241_v40 = vadd.f32 %v5275_v21, %v11077_v61  ;;  %v11243_v57 = vpop.f32.mrf.mxu0 }
 0x321   : > { %11786 = vst [vmem:[#allocation27_spill] sm:$0xff] %v11243_v57  ;;  %v9166_v4 = vpop.f32.mrf.mxu1 }
 0x322   : > { %11785 = vst [vmem:[#allocation14_spill] sm:$0xff] %v11241_v40  ;;  %v11246_v2 = vadd.f32 %v9166_v4, %v11080_v47  ;;  %v11248_v30 = vpop.f32.mrf.mxu0 }
 0x323   : > { %11788 = vst [vmem:[#allocation29_spill] sm:$0xff] %v11248_v30  ;;  %v5288_v10 = vpop.f32.mrf.mxu1 }
 0x324   : > { %11787 = vst [vmem:[#allocation28_spill] sm:$0xff] %v11246_v2  ;;  %v11251_v28 = vadd.f32 %v5288_v10, %v11083_v48  ;;  %v11253_v13 = vpop.f32.mrf.mxu0  ;;  %v8250_v2 = vld [vmem:[%s9721_s6 + $0x40] sm:$0xff]  }
 0x325   : > { %11790 = vst [vmem:[#allocation31_spill] sm:$0xff] %v11253_v13  ;;  %v9167_v34 = vpop.f32.mrf.mxu1  ;;  %v8252_v13 = vld [vmem:[%s9721_s6 + $0x50] sm:$0xff]   ;;  %v8028_v62 = vunpack.c.l.bf16 %v8250_v2 }
 0x326   : > { %11789 = vst [vmem:[#allocation30_spill] sm:$0xff] %v11251_v28  ;;  %v11256_v61 = vadd.f32 %v9167_v34, %v11086_v37  ;;  %v11258_v21 = vpop.f32.mrf.mxu0  ;;  %v11273_v37 = vld [vmem:[%s9721_s6 + $0x38] sm:$0xff]   ;;  %v8037_v17 = vunpack.c.h.bf16 %v8252_v13 }
 0x327   : > { %11792 = vst [vmem:[#allocation33_spill] sm:$0xff] %v11258_v21  ;;  %v5291_v40 = vpop.f32.mrf.mxu1  ;;  %v8032_v21 = vunpack.c.l.bf16 %v8251_v56  ;;  %v8025_v43 = vunpack.c.h.bf16 %v11273_v37 }
 0x328   : > { %11791 = vst [vmem:[#allocation32_spill] sm:$0xff] %v11256_v61  ;;  %v11261_v47 = vadd.f32 %v5291_v40, %v11089_v42  ;;  %v11263_v4 = vpop.f32.mrf.mxu0  ;;  %v8029_v61 = vunpack.c.h.bf16 %v8250_v2  ;;  %v8253_v42 = vld [vmem:[%s9721_s6 + $0x58] sm:$0xff]   ;;  %v8036_v2 = vunpack.c.l.bf16 %v8252_v13 }
 0x329   : > { %11794 = vst [vmem:[#allocation16_spill] sm:$0xff] %v11263_v4  ;;  %v9170_v48 = vpop.f32.mrf.mxu1  ;;  %v8040_v23 = vunpack.c.l.bf16 %v8253_v42 }
 0x32a   : > { %11793 = vst [vmem:[#allocation15_spill] sm:$0xff] %v11261_v47  ;;  %v11268_v10 = vadd.f32 %v9170_v48, %v11092_v50  ;;  %v11270_v28 = vpop.f32.mrf.mxu0  ;;  %v8033_v50 = vunpack.c.h.bf16 %v8251_v56  ;;  %v8244_v48 = vld [vmem:[%s9721_s6 + $0x10] sm:$0xff]  }
 0x32b   : > { %11796 = vst [vmem:[#allocation35_spill] sm:$0xff] %v11270_v28  ;;  %v5304_v34 = vpop.f32.mrf.mxu1  ;;  %v8005_v16 = vunpack.c.h.bf16 %v8244_v48 }
 0x32c   : > { %11795 = vst [vmem:[#allocation34_spill] sm:$0xff] %v11268_v10  ;;  %v11278_v40 = vadd.f32 %v5304_v34, %v11095_v26  ;;  %v11280_v47 = vpop.f32.mrf.mxu0  ;;  %v8245_v10 = vld [vmem:[%s9721_s6 + $0x18] sm:$0xff]   ;;  %v6753_v26 = vrot.slane %v8029_v61, 1  ;;  %v6755_v34 = vrot.slane %v8032_v21, 1 }
 0x32d   : > { %11798 = vst [vmem:[#allocation37_spill] sm:$0xff] %v11280_v47  ;;  %v9171_v4 = vpop.f32.mrf.mxu1  ;;  %v8008_v56 = vunpack.c.l.bf16 %v8245_v10 }
 0x32e   : > { %11797 = vst [vmem:[#allocation36_spill] sm:$0xff] %v11278_v40  ;;  %v11286_v28 = vadd.f32 %v9171_v4, %v11098_v24  ;;  %v11288_v30 = vpop.f32.mrf.mxu0  ;;  %v11296_v4 = vrot.slane %v8025_v43, 1  ;;  %v11304_v13 = vsel %vm2803_vm0, %v6753_v26, %v6755_v34  ;;  %v6759_v43 = vrot.slane %v8036_v2, 1 }
 0x32f   : > { %11800 = vst [vmem:[#allocation39_spill] sm:$0xff] %v11288_v30  ;;  %v5307_v57 = vpop.f32.mrf.mxu1  ;;  %v6757_v30 = vrot.slane %v8033_v50, 1  ;;  %v6729_v50 = vrot.slane %v8005_v16, 1  ;;  %v8045_v2 = vunpack.c.h.bf16 %v8254_v33 }
 0x330   : > { %11799 = vst [vmem:[#allocation38_spill] sm:$0xff] %v11286_v28  ;;  %v11291_v40 = vadd.f32 %v5307_v57, %v11101_v51  ;;  %v11293_v47 = vpop.f32.mrf.mxu0  ;;  %v6751_v28 = vrot.slane %v8028_v62, 1  ;;  %v6761_v51 = vrot.slane %v8037_v17, 1  ;;  %v6763_v57 = vrot.slane %v8040_v23, 1 }
 0x331   : > { %11802 = vst [vmem:[#allocation41_spill] sm:$0xff] %v11293_v47  ;;  %v9174_v24 = vpop.f32.mrf.mxu1  ;;  %v8004_v47 = vunpack.c.l.bf16 %v8244_v48  ;;  %v6731_v17 = vrot.slane %v8008_v56, 1  ;;  %v8009_v48 = vunpack.c.h.bf16 %v8245_v10  ;;  %v8048_v56 = vunpack.c.l.bf16 %v8255_v20 }
 0x332   : > { %11801 = vst [vmem:[#allocation40_spill] sm:$0xff] %v11291_v40  ;;  %v11299_v35 = vadd.f32 %v9174_v24, %v11104_v31  ;;  %v11301_v61 = vpop.f32.mrf.mxu0  ;;  %v8041_v40 = vunpack.c.h.bf16 %v8253_v42  ;;  %v11315_v24 = vsel %vm2803_vm0, %v11296_v4, %v6751_v28  ;;  %v11318_v42 = vsel %vm2803_vm0, %v6755_v34, %v6757_v30 }
 0x333   : > { %11804 = vst [vmem:[#allocation43_spill] sm:$0xff] %v11301_v61  ;;  %v5320_v21 = vpop.f32.mrf.mxu1  ;;  %v11321_v3 = vsel %vm2803_vm0, %v6751_v28, %v6753_v26  ;;  %v11329_v16 = vsel %vm2803_vm0, %v6761_v51, %v6763_v57  ;;  %v6726_v61 = vrot.slane %v6635_v0, 1  ;;  %v6727_v28 = vrot.slane %v8004_v47, 1 }
 0x334   : > { %11803 = vst [vmem:[#allocation42_spill] sm:$0xff] %v11299_v35  ;;  %v11309_v62 = vadd.f32 %v5320_v21, %v11107_v19  ;;  %v11311_v31 = vpop.f32.mrf.mxu0  ;;  %v8247_v35 = vld [vmem:[%s9721_s6 + $0x28] sm:$0xff]   ;;  %v6765_v34 = vrot.slane %v8041_v40, 1  ;;  %v8044_v26 = vunpack.c.l.bf16 %v8254_v33  ;;  %v6733_v49 = vrot.slane %v8009_v48, 1  ;;  %v8256_v33 = vld [vmem:[%s9721_s6 + $0x70] sm:$0xff]  }
 0x335   : > { %11806 = vst [vmem:[#allocation45_spill] sm:$0xff] %v11311_v31  ;;  %v9175_v23 = vpop.f32.mrf.mxu1  ;;  %v8016_v0 = vunpack.c.l.bf16 %v8247_v35  ;;  %v8049_v47 = vunpack.c.h.bf16 %v8255_v20  ;;  %v8017_v48 = vunpack.c.h.bf16 %v8247_v35 }
 0x336   : > { %11805 = vst [vmem:[#allocation44_spill] sm:$0xff] %v11309_v62  ;;  %v11324_v19 = vadd.f32 %v9175_v23, %v11110_v25  ;;  %v11326_v21 = vpop.f32.mrf.mxu0  ;;  %v8246_v62 = vld [vmem:[%s9721_s6 + $0x20] sm:$0xff]   ;;  %v11339_v23 = vsel %vm2803_vm0, %v6757_v30, %v6759_v43  ;;  %v6767_v20 = vrot.slane %v8044_v26, 1 }
 0x337   : > { %11808 = vst [vmem:[#allocation47_spill] sm:$0xff] %v11326_v21  ;;  %v5323_v31 = vpop.f32.mrf.mxu1  ;;  %11811 = vst [vmem:[#allocation50_spill] sm:$0xff] %v11339_v23  ;;  %v11345_v21 = vsel %vm2803_vm0, %v6759_v43, %v6761_v51  ;;  %v8013_v40 = vunpack.c.h.bf16 %v8246_v62  ;;  %v11357_v51 = vsel %vm2803_vm0, %v6763_v57, %v6765_v34  ;;  %v11360_v43 = vsel %vm2803_vm0, %v6726_v61, %v6727_v28 }
 0x338   : > { %11807 = vst [vmem:[#allocation46_spill] sm:$0xff] %v11324_v19  ;;  %v11334_v10 = vadd.f32 %v5323_v31, %v11113_v22  ;;  %v11336_v25 = vpop.f32.mrf.mxu0  ;;  %v11342_v19 = vsel %vm2803_vm0, %v6729_v50, %v6731_v17  ;;  %11813 = vst [vmem:[#allocation52_spill] sm:$0xff] %v11345_v21  ;;  %v6769_v31 = vrot.slane %v8045_v2, 1  ;;  %v8248_v2 = vld [vmem:[%s9721_s6 + $0x30] sm:$0xff]   ;;  %v8052_v61 = vunpack.c.l.bf16 %v8256_v33 }
 0x339   : > { %11810 = vst [vmem:[#allocation49_spill] sm:$0xff] %v11336_v25  ;;  %11812 = vst [vmem:[#allocation51_spill] sm:$0xff] %v11342_v19  ;;  %v9178_v46 = vpop.f32.mrf.mxu1  ;;  %v8012_v25 = vunpack.c.l.bf16 %v8246_v62  ;;  %v8056_v62 = vunpack.c.l.bf16 %v11349_v32  ;;  %v6737_v57 = vrot.slane %v8013_v40, 1  ;;  %v11386_v40 = vrot.slane %v8017_v48, 1 }
 0x33a   : > { %11809 = vst [vmem:[#allocation48_spill] sm:$0xff] %v11334_v10  ;;  %v11352_v22 = vadd.f32 %v9178_v46, %v11116_v38  ;;  %v11354_v30 = vpop.f32.mrf.mxu0  ;;  %v6771_v10 = vrot.slane %v8048_v56, 1  ;;  %v11368_v38 = vsel %vm2803_vm0, %v6727_v28, %v6729_v50  ;;  %v8053_v46 = vunpack.c.h.bf16 %v8256_v33 }
 0x33b   : > { %11815 = vst [vmem:[#allocation54_spill] sm:$0xff] %v11354_v30  ;;  %v5336_v19 = vpop.f32.mrf.mxu1  ;;  %v6773_v30 = vrot.slane %v8049_v47, 1  ;;  %v8024_v47 = vunpack.c.l.bf16 %v11273_v37  ;;  %v11403_v37 = vsel %vm2803_vm0, %v6767_v20, %v6769_v31 }
 0x33c   : > { %11814 = vst [vmem:[#allocation53_spill] sm:$0xff] %v11352_v22  ;;  %v11363_v21 = vadd.f32 %v5336_v19, %v11119_v55  ;;  %v11365_v23 = vpop.f32.mrf.mxu0  ;;  %v6739_v22 = vrot.slane %v8016_v0, 1  ;;  %v11378_v55 = vsel %vm2803_vm0, %v6731_v17, %v6733_v49  ;;  %v11381_v50 = vsel %vm2803_vm0, %v6769_v31, %v6771_v10 }
 0x33d   : > { %11817 = vst [vmem:[#allocation56_spill] sm:$0xff] %v11365_v23  ;;  %v9179_v56 = vpop.f32.mrf.mxu1  ;;  %v6735_v19 = vrot.slane %v8012_v25, 1  ;;  %v8021_v0 = vunpack.c.h.bf16 %v8248_v2  ;;  %v6777_v25 = vrot.slane %v8053_v46, 1  ;;  %v11400_v48 = vsel %vm2803_vm0, %v6771_v10, %v6773_v30 }
 0x33e   : > { %11816 = vst [vmem:[#allocation55_spill] sm:$0xff] %v11363_v21  ;;  %v11373_v26 = vadd.f32 %v9179_v56, %v11122_v44  ;;  %v11375_v35 = vpop.f32.mrf.mxu0  ;;  %v11384_v21 = vsel %vm2803_vm0, %v6765_v34, %v6767_v20  ;;  %v6094_v44 = vadd.f32 %v11178_v9, %v11146_v7  ;;  %v6779_v56 = vrot.slane %v8056_v62, 1 }
 0x33f   : > { %11819 = vst [vmem:[#allocation58_spill] sm:$0xff] %v11375_v35  ;;  %v5339_v28 = vpop.f32.mrf.mxu1  ;;  %v11397_v34 = vsel %vm2803_vm0, %v6737_v57, %v6739_v22  ;;  %v6775_v35 = vrot.slane %v8052_v61, 1  ;;  %v6092_v7 = vadd.f32 %v11183_v52, %v11151_v39  ;;  %v11410_v46 = vsel %vm2803_vm0, %v6733_v49, %v6735_v19 }
 0x340   : > { %11818 = vst [vmem:[#allocation57_spill] sm:$0xff] %v11373_v26  ;;  %v11392_v17 = vadd.f32 %v5339_v28, %v11125_v27  ;;  %v11394_v33 = vpop.f32.mrf.mxu0  ;;  %v8057_v62 = vunpack.c.h.bf16 %v11349_v32  ;;  %v8258_v28 = vld [vmem:[%s9721_s6 + $0x80] sm:$0xff]   ;;  %v11416_v10 = vsel %vm2803_vm0, %v6735_v19, %v6737_v57  ;;  %v6745_v31 = vrot.slane %v8021_v0, 1 }
 0x341   : > { %11821 = vst [vmem:[#allocation60_spill] sm:$0xff] %v11394_v33  ;;  %v9274_v26 = vpop.f32.mrf.mxu1  ;;  %v6747_v20 = vrot.slane %v8024_v47, 1  ;;  %v8020_v61 = vunpack.c.l.bf16 %v8248_v2  ;;  %v6095_v39 = vadd.f32 %v11188_v63, %v11156_v29  ;;  %v11424_v49 = vsel %vm2803_vm0, %v6739_v22, %v11386_v40 }
 0x342   : > { %11820 = vst [vmem:[#allocation59_spill] sm:$0xff] %v11392_v17  ;;  %v11407_v27 = vpop.f32.mrf.mxu0  ;;  %v6508_v9 = vadd.f32 %v9274_v26, %v6094_v44  ;;  %v8259_v17 = vld [vmem:[%s9721_s6 + $0x88] sm:$0xff]   ;;  %v11427_v32 = vsel %vm2803_vm0, %v6777_v25, %v6779_v56  ;;  %v11430_v57 = vsel %vm2803_vm0, %v6773_v30, %v6775_v35  ;;  %v8061_v19 = vunpack.c.h.bf16 %v8258_v28 }
 0x343   : > { %11822 = vst [vmem:[#allocation61_spill] sm:$0xff] %v11407_v27  ;;  %v6351_v33 = vpop.f32.mrf.mxu1  ;;  %11824 = vst [vmem:[#allocation63_spill] sm:$0xff] %v11430_v57  ;;  %v8064_v2 = vunpack.c.l.bf16 %v8259_v17  ;;  %v8060_v0 = vunpack.c.l.bf16 %v8258_v28  ;;  %v6093_v29 = vadd.f32 %v11193_v1, %v11161_v58  ;;  %v6743_v27 = vrot.slane %v8020_v61, 1 }
 0x344   : > { %v11420_v52 = vpop.f32.mrf.mxu0  ;;  %v6506_v26 = vadd.f32 %v6351_v33, %v6092_v7  ;;  %v6556_v63 = vmax.f32 %v6508_v9, 0.0  ;;  %v6781_v7 = vrot.slane %v8057_v62, 1  ;;  %v11441_v30 = vsel %vm2803_vm0, %v6775_v35, %v6777_v25 }
 0x345   : > { %11823 = vst [vmem:[#allocation62_spill] sm:$0xff] %v11420_v52  ;;  %v9275_v44 = vpop.f32.mrf.mxu1  ;;  %v11438_v52 = vsel %vm2803_vm0, %v6745_v31, %v6747_v20  ;;  %v8065_v23 = vunpack.c.h.bf16 %v8259_v17  ;;  %v6098_v28 = vadd.f32 %v11198_v15, %v11166_v54  ;;  %v6096_v62 = vadd.f32 %v11203_v59, %v11171_v18 }
 0x346   : > { %v11434_v47 = vpop.f32.mrf.mxu0  ;;  %v6509_v33 = vadd.f32 %v9275_v44, %v6095_v39  ;;  %11826 = vst [vmem:[#allocation65_spill] sm:$0xff] %v11438_v52  ;;  %v6554_v57 = vmax.f32 %v6506_v26, 0.0  ;;  %v6785_v44 = vrot.slane %v8061_v19, 1  ;;  %v6783_v52 = vrot.slane %v8060_v0, 1  ;;  %v11474_v0 = vld [vmem:[%s9721_s6 + $0x90] sm:$0xff]  }
 0x347   : > { %11825 = vst [vmem:[#allocation64_spill] sm:$0xff] %v11434_v47  ;;  %v6354_v22 = vpop.f32.mrf.mxu1  ;;  %v6787_v47 = vrot.slane %v8064_v2, 1  ;;  %v6874_v61 = vadd.f32 %v11304_v13, %v6556_v63  ;;  %v6099_v15 = vadd.f32 %v11208_v12, %v11176_v6  ;;  %v11461_v59 = vsel %vm2803_vm0, %v6779_v56, %v6781_v7 }
 0x348   : > { %v6557_v58 = vmax.f32 %v6509_v33, 0.0  ;;  %v11445_v1 = vpop.f32.mrf.mxu0  ;;  %v6507_v9 = vadd.f32 %v6354_v22, %v6093_v29  ;;  %v11465_v13 = vsel %vm2803_vm0, %v6747_v20, %v11296_v4  ;;  %v6872_v26 = vadd.f32 %v11315_v24, %v6554_v57 }
 0x349   : > { %v9278_v39 = vpop.f32.mrf.mxu1  ;;  %v11478_v56 = vsel %vm2803_vm0, %v11386_v40, %v6743_v27  ;;  %v11481_v4 = vsel %vm2803_vm0, %v6785_v44, %v6787_v47  ;;  %v11484_v24 = vsel %vm2803_vm0, %v6743_v27, %v6745_v31  ;;  %v11493_v40 = vld [vmem:[%s9721_s6 + $0x98] sm:$0xff]   ;;  %v11501_v31 = vsel %vm2803_vm0, %v6783_v52, %v6785_v44 }
 0x34a   : > { %v6875_v35 = vadd.f32 %v11318_v42, %v6557_v58  ;;  %v6555_v17 = vmax.f32 %v6507_v9, 0.0  ;;  %v11451_v25 = vpop.f32.mrf.mxu0  ;;  %v6512_v54 = vadd.f32 %v9278_v39, %v6098_v28  ;;  %v11467_v42 = vrot.slane %v8065_v23, 1 }
 0x34b   : > { %v6367_v18 = vpop.f32.mrf.mxu1  ;;  %v11487_v23 = vsel %vm2803_vm0, %v6781_v7, %v6783_v52  ;;  %v8069_v7 = vunpack.c.h.bf16 %v11474_v0  ;;  %v8068_v52 = vunpack.c.l.bf16 %v11474_v0  ;;  %v11868_v0 = vld [vmem:[#allocation45_spill] sm:$0xff] }
 0x34c   : > { %v8128_v19 = vpack.c.bf16 %v6875_v35, %v6874_v61  ;;  %v6873_v6 = vadd.f32 %v11321_v3, %v6555_v17  ;;  %v11471_v12 = vpop.f32.mrf.mxu0  ;;  %v6510_v2 = vadd.f32 %v6367_v18, %v6096_v62  ;;  %v6097_v3 = vadd.f32 %v11213_v5, %v11181_v60 }
 0x34d   : > { %v9279_v29 = vpop.f32.mrf.mxu1  ;;  %v6560_v57 = vmax.f32 %v6512_v54, 0.0  ;;  %v11498_v27 = vsel %vm2803_vm0, %v6787_v47, %v11467_v42  ;;  %v6102_v60 = vadd.f32 %v11218_v41, %v11186_v11  ;;  %v8072_v61 = vunpack.c.l.bf16 %v11493_v40  ;;  %v11827_v54 = vld [vmem:[#allocation10_spill] sm:$0xff] }
 0x34e   : > { %8272 = vst [vmem:[%s11458_s28 + $0x38] sm:$0xff] %v8128_v19   ;;  %v8123_v20 = vpack.c.bf16 %v6873_v6, %v6872_v26  ;;  %v9262_v63 = vpop.f32.mrf.mxu0  ;;  %v6513_v33 = vadd.f32 %v9279_v29, %v6099_v15  ;;  %v6558_v5 = vmax.f32 %v6510_v2, 0.0  ;;  %v6103_v15 = vadd.f32 %v11827_v54, %v11196_v14  ;;  %v11829_v19 = vld [vmem:[#allocation50_spill] sm:$0xff]  ;;  %v11830_v29 = vld [vmem:[#allocation52_spill] sm:$0xff] }
 0x34f   : > { %v6496_v22 = vadd.f32 %v9262_v63, %v11128_v36  ;;  %v6370_v28 = vpop.f32.mrf.mxu1  ;;  %v6100_v36 = vadd.f32 %v11223_v45, %v11191_v8  ;;  %v6878_v44 = vadd.f32 %v11329_v16, %v6560_v57  ;;  %v11828_v8 = vld [vmem:[#allocation17_spill] sm:$0xff]  ;;  %v8073_v26 = vunpack.c.h.bf16 %v11493_v40  ;;  %v11832_v57 = vld [vmem:[#allocation12_spill] sm:$0xff] }
 0x350   : > { %8271 = vst [vmem:[%s11458_s28 + $0x30] sm:$0xff] %v8123_v20   ;;  %v6561_v58 = vmax.f32 %v6513_v33, 0.0  ;;  %v6303_v9 = vpop.f32.mrf.mxu0  ;;  %v6511_v62 = vadd.f32 %v6370_v28, %v6097_v3  ;;  %v6876_v6 = vadd.f32 %v11829_v19, %v6558_v5  ;;  %v11831_v20 = vld [vmem:[#allocation20_spill] sm:$0xff]  ;;  %v11833_v28 = vld [vmem:[#allocation3_spill] sm:$0xff] }
 0x351   : > { %v6494_v39 = vadd.f32 %v6303_v9, %v11131_v53  ;;  %v9282_v47 = vpop.f32.mrf.mxu1  ;;  %v6544_v18 = vmax.f32 %v6496_v22, 0.0  ;;  %v6101_v63 = vadd.f32 %v11832_v57, %v11831_v20  ;;  %v11835_v9 = vld [vmem:[#allocation13_spill] sm:$0xff]  ;;  %v11839_v19 = vld [vmem:[#allocation27_spill] sm:$0xff] }
 0x352   : > { %v6879_v35 = vadd.f32 %v11357_v51, %v6561_v58  ;;  %v6559_v11 = vmax.f32 %v6511_v62, 0.0  ;;  %v9263_v41 = vpop.f32.mrf.mxu0  ;;  %v6516_v17 = vadd.f32 %v9282_v47, %v6102_v60  ;;  %v11834_v58 = vld [vmem:[#allocation21_spill] sm:$0xff] }
 0x353   : > { %v6497_v45 = vadd.f32 %v9263_v41, %v11828_v8  ;;  %v6383_v53 = vpop.f32.mrf.mxu1  ;;  %v6542_v33 = vmax.f32 %v6494_v39, 0.0  ;;  %v6106_v62 = vadd.f32 %v11835_v9, %v11834_v58  ;;  %v11837_v8 = vld [vmem:[#allocation18_spill] sm:$0xff]  ;;  %v11842_v9 = vld [vmem:[#allocation29_spill] sm:$0xff] }
 0x354   : > { %v8138_v2 = vpack.c.bf16 %v6879_v35, %v6878_v44  ;;  %v6877_v16 = vadd.f32 %v11830_v29, %v6559_v11  ;;  %v6306_v3 = vpop.f32.mrf.mxu0  ;;  %v6514_v51 = vadd.f32 %v6383_v53, %v6100_v36  ;;  %v6564_v5 = vmax.f32 %v6516_v17, 0.0  ;;  %v11836_v11 = vld [vmem:[#allocation51_spill] sm:$0xff] }
 0x355   : > { %v6545_v14 = vmax.f32 %v6497_v45, 0.0  ;;  %v6495_v22 = vadd.f32 %v6306_v3, %v11833_v28  ;;  %v9283_v60 = vpop.f32.mrf.mxu1  ;;  %v6862_v41 = vadd.f32 %v11836_v11, %v6544_v18  ;;  %v11838_v45 = vld [vmem:[#allocation22_spill] sm:$0xff]  ;;  %v6860_v17 = vadd.f32 %v11360_v43, %v6542_v33  ;;  %v11843_v33 = vld [vmem:[#allocation5_spill] sm:$0xff] }
 0x356   : > { %8274 = vst [vmem:[%s11458_s28 + $0x48] sm:$0xff] %v8138_v2   ;;  %v8133_v47 = vpack.c.bf16 %v6877_v16, %v6876_v6  ;;  %v9266_v44 = vpop.f32.mrf.mxu0  ;;  %v6517_v35 = vadd.f32 %v9283_v60, %v6103_v15  ;;  %v6104_v29 = vadd.f32 %v11839_v19, %v11838_v45  ;;  %v6562_v3 = vmax.f32 %v6514_v51, 0.0  ;;  %v11840_v16 = vld [vmem:[#allocation4_spill] sm:$0xff]  ;;  %v11841_v51 = vld [vmem:[#allocation23_spill] sm:$0xff]  ;;  %v11847_v19 = vld [vmem:[#allocation25_spill] sm:$0xff] }
 0x357   : > { %v6863_v36 = vadd.f32 %v11378_v55, %v6545_v14  ;;  %v6543_v54 = vmax.f32 %v6495_v22, 0.0  ;;  %v6500_v39 = vadd.f32 %v9266_v44, %v11837_v8  ;;  %v6386_v53 = vpop.f32.mrf.mxu1  ;;  %v6882_v14 = vadd.f32 %v11381_v50, %v6564_v5 }
 0x358   : > { %8273 = vst [vmem:[%s11458_s28 + $0x40] sm:$0xff] %v8133_v47   ;;  %v6565_v20 = vmax.f32 %v6517_v35, 0.0  ;;  %v6319_v2 = vpop.f32.mrf.mxu0  ;;  %v6515_v6 = vadd.f32 %v6386_v53, %v6101_v63  ;;  %v6107_v47 = vadd.f32 %v11842_v9, %v11841_v51  ;;  %v6880_v35 = vadd.f32 %v11384_v21, %v6562_v3  ;;  %v11846_v53 = vld [vmem:[#allocation6_spill] sm:$0xff] }
 0x359   : > { %v8098_v15 = vpack.c.bf16 %v6863_v36, %v6862_v41  ;;  %v6861_v18 = vadd.f32 %v11368_v38, %v6543_v54  ;;  %v6498_v55 = vadd.f32 %v6319_v2, %v11840_v16  ;;  %v9286_v57 = vpop.f32.mrf.mxu1  ;;  %v6548_v43 = vmax.f32 %v6500_v39, 0.0  ;;  %v11844_v41 = vld [vmem:[#allocation24_spill] sm:$0xff]  ;;  %v11845_v36 = vld [vmem:[#allocation31_spill] sm:$0xff] }
 0x35a   : > { %v6883_v28 = vadd.f32 %v11400_v48, %v6565_v20  ;;  %v6563_v22 = vmax.f32 %v6515_v6, 0.0  ;;  %v9267_v60 = vpop.f32.mrf.mxu0  ;;  %v6520_v58 = vadd.f32 %v9286_v57, %v6106_v62  ;;  %v6105_v62 = vadd.f32 %v11845_v36, %v11844_v41  ;;  %v11848_v20 = vld [vmem:[#allocation33_spill] sm:$0xff]  ;;  %v11850_v57 = vld [vmem:[#allocation11_spill] sm:$0xff] }
 0x35b   : > { %8266 = vst [vmem:[%s11458_s28 + $0x8] sm:$0xff] %v8098_v15   ;;  %v8093_v63 = vpack.c.bf16 %v6861_v18, %v6860_v17  ;;  %v6501_v38 = vadd.f32 %v9267_v60, %v11843_v33  ;;  %v6399_v44 = vpop.f32.mrf.mxu1  ;;  %v6546_v54 = vmax.f32 %v6498_v55, 0.0  ;;  %v6110_v2 = vadd.f32 %v11848_v20, %v11847_v19  ;;  %v11849_v18 = vld [vmem:[#allocation7_spill] sm:$0xff]  ;;  %v11857_v20 = vld [vmem:[#allocation9_spill] sm:$0xff] }
 0x35c   : > { %v8148_v11 = vpack.c.bf16 %v6883_v28, %v6882_v14  ;;  %v6881_v50 = vadd.f32 %v11403_v37, %v6563_v22  ;;  %v6322_v48 = vpop.f32.mrf.mxu0  ;;  %v6518_v5 = vadd.f32 %v6399_v44, %v6104_v29  ;;  %v6568_v3 = vmax.f32 %v6520_v58, 0.0  ;;  %v11851_v14 = vld [vmem:[#allocation16_spill] sm:$0xff]  ;;  %v11855_v36 = vld [vmem:[#allocation19_spill] sm:$0xff] }
 0x35d   : > { %8094 = vst [vmem:[%s11458_s28] sm:$0xff] %v8093_v63   ;;  %v6549_v8 = vmax.f32 %v6501_v38, 0.0  ;;  %v6499_v45 = vadd.f32 %v6322_v48, %v11846_v53  ;;  %v9287_v39 = vpop.f32.mrf.mxu1  ;;  %v6866_v29 = vadd.f32 %v11397_v34, %v6548_v43  ;;  %v6108_v28 = vadd.f32 %v11851_v14, %v11850_v57  ;;  %v11852_v63 = vld [vmem:[#allocation8_spill] sm:$0xff]  ;;  %v11854_v48 = vld [vmem:[#allocation35_spill] sm:$0xff] }
 0x35e   : > { %8276 = vst [vmem:[%s11458_s28 + $0x58] sm:$0xff] %v8148_v11   ;;  %v8143_v21 = vpack.c.bf16 %v6881_v50, %v6880_v35  ;;  %v9270_v6 = vpop.f32.mrf.mxu0  ;;  %v6521_v37 = vadd.f32 %v9287_v39, %v6107_v47  ;;  %v6566_v22 = vmax.f32 %v6518_v5, 0.0  ;;  %v6864_v58 = vadd.f32 %v11410_v46, %v6546_v54  ;;  %v11853_v50 = vld [vmem:[#allocation26_spill] sm:$0xff]  ;;  %v11856_v54 = vld [vmem:[#allocation63_spill] sm:$0xff] }
 0x35f   : > { %v6867_v17 = vadd.f32 %v11424_v49, %v6549_v8  ;;  %v6547_v15 = vmax.f32 %v6499_v45, 0.0  ;;  %v6504_v16 = vadd.f32 %v9270_v6, %v11849_v18  ;;  %v6402_v55 = vpop.f32.mrf.mxu1  ;;  %v6886_v33 = vadd.f32 %v11427_v32, %v6568_v3  ;;  %v11858_v6 = vld [vmem:[#allocation14_spill] sm:$0xff] }
 0x360   : > { %8275 = vst [vmem:[%s11458_s28 + $0x50] sm:$0xff] %v8143_v21   ;;  %v6569_v60 = vmax.f32 %v6521_v37, 0.0  ;;  %v6335_v51 = vpop.f32.mrf.mxu0  ;;  %v6519_v9 = vadd.f32 %v6402_v55, %v6105_v62  ;;  %v6111_v5 = vadd.f32 %v11854_v48, %v11853_v50  ;;  %v6884_v8 = vadd.f32 %v11856_v54, %v6566_v22  ;;  %v11859_v37 = vld [vmem:[#allocation37_spill] sm:$0xff]  ;;  %v11861_v22 = vld [vmem:[#allocation28_spill] sm:$0xff] }
 0x361   : > { %v8108_v47 = vpack.c.bf16 %v6867_v17, %v6866_v29  ;;  %v6865_v34 = vadd.f32 %v11416_v10, %v6547_v15  ;;  %v6502_v49 = vadd.f32 %v6335_v51, %v11852_v63  ;;  %v9290_v43 = vpop.f32.mrf.mxu1  ;;  %v6552_v46 = vmax.f32 %v6504_v16, 0.0  ;;  %v8263_v50 = vld [vmem:[%s9721_s6 + $0xa8] sm:$0xff]  }
 0x362   : > { %v6887_v38 = vadd.f32 %v11461_v59, %v6569_v60  ;;  %v6567_v44 = vmax.f32 %v6519_v9, 0.0  ;;  %v9271_v35 = vpop.f32.mrf.mxu0  ;;  %v6524_v11 = vadd.f32 %v9290_v43, %v6110_v2  ;;  %v6793_v3 = vrot.slane %v8069_v7, 1  ;;  %v11862_v60 = vld [vmem:[#allocation39_spill] sm:$0xff]  ;;  %v11865_v48 = vld [vmem:[#allocation32_spill] sm:$0xff] }
 0x363   : > { %8268 = vst [vmem:[%s11458_s28 + $0x18] sm:$0xff] %v8108_v47   ;;  %v8103_v41 = vpack.c.bf16 %v6865_v34, %v6864_v58  ;;  %v6505_v10 = vadd.f32 %v9271_v35, %v11855_v36  ;;  %v6415_v62 = vpop.f32.mrf.mxu1  ;;  %v6550_v39 = vmax.f32 %v6502_v49, 0.0  ;;  %v6109_v29 = vadd.f32 %v11859_v37, %v11858_v6  ;;  %v11863_v47 = vld [vmem:[#allocation30_spill] sm:$0xff]  ;;  %v11864_v34 = vld [vmem:[#allocation41_spill] sm:$0xff] }
 0x364   : > { %v8158_v53 = vpack.c.bf16 %v6887_v38, %v6886_v33  ;;  %v6885_v32 = vadd.f32 %v11441_v30, %v6567_v44  ;;  %v6338_v45 = vpop.f32.mrf.mxu0  ;;  %v6522_v59 = vadd.f32 %v6415_v62, %v6108_v28  ;;  %v6572_v15 = vmax.f32 %v6524_v11, 0.0  ;;  %v11860_v30 = vld [vmem:[#allocation65_spill] sm:$0xff]  ;;  %v8262_v11 = vld [vmem:[%s9721_s6 + $0xa0] sm:$0xff]  }
 0x365   : > { %8267 = vst [vmem:[%s11458_s28 + $0x10] sm:$0xff] %v8103_v41   ;;  %v6553_v19 = vmax.f32 %v6505_v10, 0.0  ;;  %v6503_v2 = vadd.f32 %v6338_v45, %v11857_v20  ;;  %v9291_v21 = vpop.f32.mrf.mxu1  ;;  %v6870_v16 = vadd.f32 %v11860_v30, %v6552_v46  ;;  %v6795_v28 = vrot.slane %v8072_v61, 1  ;;  %v11867_v45 = vld [vmem:[#allocation15_spill] sm:$0xff] }
 0x366   : > { %8278 = vst [vmem:[%s11458_s28 + $0x68] sm:$0xff] %v8158_v53   ;;  %v8153_v17 = vpack.c.bf16 %v6885_v32, %v6884_v8  ;;  %v6525_v18 = vadd.f32 %v9291_v21, %v6111_v5  ;;  %v6114_v7 = vadd.f32 %v11862_v60, %v11861_v22  ;;  %v6570_v51 = vmax.f32 %v6522_v59, 0.0  ;;  %v11866_v5 = vld [vmem:[#allocation43_spill] sm:$0xff]  ;;  %v11873_v60 = vld [vmem:[#allocation38_spill] sm:$0xff] }
 0x367   : > { %v6871_v55 = vadd.f32 %v11465_v13, %v6553_v19  ;;  %v6551_v57 = vmax.f32 %v6503_v2, 0.0  ;;  %v6418_v14 = vpop.f32.mrf.mxu1  ;;  %v6112_v63 = vadd.f32 %v11864_v34, %v11863_v47  ;;  %v6868_v13 = vadd.f32 %v11478_v56, %v6550_v39  ;;  %v11869_v2 = vld [vmem:[#allocation34_spill] sm:$0xff]  ;;  %v11870_v21 = vld [vmem:[#allocation47_spill] sm:$0xff] }
 0x368   : > { %8277 = vst [vmem:[%s11458_s28 + $0x60] sm:$0xff] %v8153_v17   ;;  %v6573_v9 = vmax.f32 %v6525_v18, 0.0  ;;  %v6523_v58 = vadd.f32 %v6418_v14, %v6109_v29  ;;  %v6890_v61 = vadd.f32 %v11481_v4, %v6572_v15  ;;  %v6115_v41 = vadd.f32 %v11866_v5, %v11865_v48  ;;  %v11871_v15 = vld [vmem:[#allocation36_spill] sm:$0xff]  ;;  %v11872_v18 = vld [vmem:[#allocation49_spill] sm:$0xff] }
 0x369   : > { %v8118_v49 = vpack.c.bf16 %v6871_v55, %v6870_v16  ;;  %v6869_v43 = vadd.f32 %v11484_v24, %v6551_v57  ;;  %v9294_v33 = vpop.f32.mrf.mxu1  ;;  %v6791_v24 = vrot.slane %v8068_v52, 1  ;;  %v11596_v4 = vrot.slane %v8073_v26, 1 }
 0x36a   : > { %v6891_v38 = vadd.f32 %v11498_v27, %v6573_v9  ;;  %v6571_v44 = vmax.f32 %v6523_v58, 0.0  ;;  %v6528_v35 = vadd.f32 %v9294_v33, %v6114_v7  ;;  %v6888_v27 = vadd.f32 %v11487_v23, %v6570_v51  ;;  %v11874_v7 = vld [vmem:[#allocation54_spill] sm:$0xff] }
 0x36b   : > { %8270 = vst [vmem:[%s11458_s28 + $0x28] sm:$0xff] %v8118_v49   ;;  %v8113_v46 = vpack.c.bf16 %v6869_v43, %v6868_v13  ;;  %v6431_v56 = vpop.f32.mrf.mxu1  ;;  %v6796_v54 = vsel %vm2803_vm0, %v6793_v3, %v6795_v28  ;;  %v8077_v53 = vunpack.c.h.bf16 %v8262_v11  ;;  %v8080_v32 = vunpack.c.l.bf16 %v8263_v50  ;;  %v8264_v49 = vld [vmem:[%s9721_s6 + $0xb0] sm:$0xff]   ;;  %v8265_v43 = vld [vmem:[%s9721_s6 + $0xb8] sm:$0xff]  }
 0x36c   : > { %v8168_v36 = vpack.c.bf16 %v6891_v38, %v6890_v61  ;;  %v6889_v10 = vadd.f32 %v11501_v31, %v6571_v44  ;;  %v6526_v62 = vadd.f32 %v6431_v56, %v6112_v63  ;;  %v6113_v52 = vadd.f32 %v11868_v0, %v11867_v45  ;;  %v11875_v44 = vld [vmem:[#allocation40_spill] sm:$0xff] }
 0x36d   : > { %8269 = vst [vmem:[%s11458_s28 + $0x20] sm:$0xff] %v8113_v46   ;;  %v9295_v8 = vpop.f32.mrf.mxu1  ;;  %v6576_v26 = vmax.f32 %v6528_v35, 0.0  ;;  %v6792_v23 = vsel %vm2803_vm0, %v11467_v42, %v6791_v24  ;;  %v6798_v31 = vsel %vm2803_vm0, %v6795_v28, %v11596_v4  ;;  %v6794_v19 = vsel %vm2803_vm0, %v6791_v24, %v6793_v3  ;;  %v11876_v35 = vld [vmem:[#allocation56_spill] sm:$0xff] }
 0x36e   : > { %8280 = vst [vmem:[%s11458_s28 + $0x78] sm:$0xff] %v8168_v36   ;;  %v8163_v40 = vpack.c.bf16 %v6889_v10, %v6888_v27  ;;  %v6529_v59 = vadd.f32 %v9295_v8, %v6115_v41  ;;  %v8081_v20 = vunpack.c.h.bf16 %v8263_v50  ;;  %v6118_v6 = vadd.f32 %v11870_v21, %v11869_v2  ;;  %v11877_v36 = vld [vmem:[#allocation42_spill] sm:$0xff]  ;;  %v11880_v45 = vld [vmem:[#allocation60_spill] sm:$0xff]  ;;  %v11882_v21 = vld [vmem:[#allocation61_spill] sm:$0xff] }
 0x36f   : > { %v6434_v39 = vpop.f32.mrf.mxu1  ;;  %v6574_v37 = vmax.f32 %v6526_v62, 0.0  ;;  %v6116_v30 = vadd.f32 %v11872_v18, %v11871_v15  ;;  %v6801_v42 = vrot.slane %v8077_v53, 1  ;;  %v6803_v55 = vrot.slane %v8080_v32, 1  ;;  %v11878_v10 = vld [vmem:[#allocation58_spill] sm:$0xff]  ;;  %v11879_v32 = vld [vmem:[#allocation44_spill] sm:$0xff] }
 0x370   : > { %8279 = vst [vmem:[%s11458_s28 + $0x70] sm:$0xff] %v8163_v40   ;;  %v6577_v29 = vmax.f32 %v6529_v59, 0.0  ;;  %v6527_v17 = vadd.f32 %v6434_v39, %v6113_v52  ;;  %v8076_v57 = vunpack.c.l.bf16 %v8262_v11  ;;  %v6894_v14 = vadd.f32 %v6796_v54, %v6576_v26  ;;  %v11881_v2 = vld [vmem:[#allocation46_spill] sm:$0xff] }
 0x371   : > { %v9298_v16 = vpop.f32.mrf.mxu1  ;;  %v6119_v51 = vadd.f32 %v11874_v7, %v11873_v60  ;;  %v11617_v58 = vrot.slane %v8081_v20, 1  ;;  %v6892_v47 = vadd.f32 %v6792_v23, %v6574_v37  ;;  %v6804_v33 = vsel %vm2803_vm0, %v6801_v42, %v6803_v55  ;;  %v8201_v20 = vld [vmem:[%s9761_s11] sm:$0xff]  }
 0x372   : > { %v6895_v28 = vadd.f32 %v6798_v31, %v6577_v29  ;;  %v6575_v3 = vmax.f32 %v6527_v17, 0.0  ;;  %v6532_v22 = vadd.f32 %v9298_v16, %v6118_v6  ;;  %v6799_v61 = vrot.slane %v8076_v57, 1 }
 0x373   : > { %v6447_v9 = vpop.f32.mrf.mxu1  ;;  %v6117_v11 = vadd.f32 %v11876_v35, %v11875_v44  ;;  %v6806_v41 = vsel %vm2803_vm0, %v6803_v55, %v11617_v58  ;;  %v8085_v56 = vunpack.c.h.bf16 %v8264_v49  ;;  %v8088_v24 = vunpack.c.l.bf16 %v8265_v43  ;;  %v7139_v55 = vld [vmem:[%s9761_s11 + $0xc] sm:$0x1] }
 0x374   : > { %v8178_v34 = vpack.c.bf16 %v6895_v28, %v6894_v14  ;;  %v6893_v63 = vadd.f32 %v6794_v19, %v6575_v3  ;;  %v6530_v13 = vadd.f32 %v6447_v9, %v6116_v30  ;;  %v6580_v48 = vmax.f32 %v6532_v22, 0.0  ;;  %v11883_v3 = vld [vmem:[#allocation48_spill] sm:$0xff]  ;;  %v11884_v22 = vld [vmem:[#allocation62_spill] sm:$0xff] }
 0x375   : > { %v9299_v38 = vpop.f32.mrf.mxu1  ;;  %v8089_v27 = vunpack.c.h.bf16 %v8265_v43  ;;  %v6122_v62 = vadd.f32 %v11878_v10, %v11877_v36  ;;  %v6120_v0 = vadd.f32 %v11880_v45, %v11879_v32  ;;  %v6800_v52 = vsel %vm2803_vm0, %v11596_v4, %v6799_v61  ;;  %v11885_v43 = vld [vmem:[#allocation53_spill] sm:$0xff] }
 0x376   : > { %8282 = vst [vmem:[%s11458_s28 + $0x88] sm:$0xff] %v8178_v34   ;;  %v8173_v50 = vpack.c.bf16 %v6893_v63, %v6892_v47  ;;  %v6533_v5 = vadd.f32 %v9299_v38, %v6119_v51  ;;  %v6578_v54 = vmax.f32 %v6530_v13, 0.0  ;;  %v6802_v40 = vsel %vm2803_vm0, %v6799_v61, %v6801_v42  ;;  %v7138_v42 = vld [vmem:[%s9761_s11 + $0x8] sm:$0xf]  ;;  %v11888_v10 = vld [vmem:[#allocation57_spill] sm:$0xff] }
 0x377   : > { %v6450_v46 = vpop.f32.mrf.mxu1  ;;  %v8084_v59 = vunpack.c.l.bf16 %v8264_v49  ;;  %v6898_v23 = vadd.f32 %v6804_v33, %v6580_v48  ;;  %v6123_v6 = vadd.f32 %v11882_v21, %v11881_v2  ;;  %v6809_v37 = vrot.slane %v8085_v56, 1  ;;  %v11886_v33 = vld [vmem:[#allocation64_spill] sm:$0xff] }
 0x378   : > { %8281 = vst [vmem:[%s11458_s28 + $0x80] sm:$0xff] %v8173_v50   ;;  %v6581_v8 = vmax.f32 %v6533_v5, 0.0  ;;  %v6531_v53 = vadd.f32 %v6450_v46, %v6117_v11  ;;  %v6811_v29 = vrot.slane %v8088_v24, 1  ;;  %v6813_v15 = vrot.slane %v8089_v27, 1  ;;  %v11887_v11 = vld [vmem:[#allocation55_spill] sm:$0xff] }
 0x379   : > { %v9302_v26 = vpop.f32.mrf.mxu1  ;;  %v6896_v4 = vadd.f32 %v6800_v52, %v6578_v54  ;;  %v6807_v57 = vrot.slane %v8084_v59, 1  ;;  %v8203_v28 = vunpack.c.h.bf16 %v8201_v20  ;;  %v6121_v60 = vadd.f32 %v11884_v22, %v11883_v3  ;;  %v11889_v52 = vld [vmem:[#allocation59_spill] sm:$0xff] }
 0x37a   : > { %v6899_v31 = vadd.f32 %v6806_v41, %v6581_v8  ;;  %v6579_v39 = vmax.f32 %v6531_v53, 0.0  ;;  %v6536_v19 = vadd.f32 %v9302_v26, %v6122_v62  ;;  %v6812_v47 = vsel %vm2803_vm0, %v6809_v37, %v6811_v29 }
 0x37b   : > { %v6463_v17 = vpop.f32.mrf.mxu1  ;;  %v6814_v34 = vsel %vm2803_vm0, %v6811_v29, %v6813_v15  ;;  %v7142_v13 = vunpack.c.l.bf16 %v7138_v42  ;;  %v7143_v49 = vunpack.c.l.bf16 %v7139_v55  ;;  %v6126_v61 = vadd.f32 %v11886_v33, %v11885_v43 }
 0x37c   : > { %v8188_v18 = vpack.c.bf16 %v6899_v31, %v6898_v23  ;;  %v6897_v30 = vadd.f32 %v6802_v40, %v6579_v39  ;;  %v6534_v16 = vadd.f32 %v6463_v17, %v6120_v0  ;;  %v6584_v51 = vmax.f32 %v6536_v19, 0.0 }
 0x37d   : > { %v9303_v14 = vpop.f32.mrf.mxu1  ;;  %v6124_v50 = vadd.f32 %v11445_v1, %v11887_v11  ;;  %v6808_v48 = vsel %vm2803_vm0, %v11617_v58, %v6807_v57  ;;  %v6810_v5 = vsel %vm2803_vm0, %v6807_v57, %v6809_v37  ;;  %v7149_v46 = vrot.slane %v8203_v28, 1  ;;  %v7133_v37 = vld [vmem:[%s11458_s28 + $0xb0] sm:$0xf] }
 0x37e   : > { %8284 = vst [vmem:[%s11458_s28 + $0x98] sm:$0xff] %v8188_v18   ;;  %v8183_v7 = vpack.c.bf16 %v6897_v30, %v6896_v4  ;;  %v6537_v9 = vadd.f32 %v9303_v14, %v6123_v6  ;;  %v6582_v38 = vmax.f32 %v6534_v16, 0.0  ;;  %v6902_v56 = vadd.f32 %v6812_v47, %v6584_v51 }
 0x37f   : > { %v6466_v63 = vpop.f32.mrf.mxu1  ;;  %v6127_v62 = vadd.f32 %v11451_v25, %v11888_v10  ;;  %v7151_v54 = vrot.slane %v7142_v13, 1  ;;  %v8202_v53 = vunpack.c.l.bf16 %v8201_v20  ;;  %v7153_v32 = vrot.slane %v7143_v49, 1 }
 0x380   : > { %8283 = vst [vmem:[%s11458_s28 + $0x90] sm:$0xff] %v8183_v7   ;;  %v6585_v44 = vmax.f32 %v6537_v9, 0.0  ;;  %v6535_v35 = vadd.f32 %v6466_v63, %v6121_v60  ;;  %v6900_v1 = vadd.f32 %v6808_v48, %v6582_v38  ;;  %v6125_v40 = vadd.f32 %v11471_v12, %v11889_v52 }
 0x381   : > { %v9306_v41 = vpop.f32.mrf.mxu1  ;;  %v7152_v39 = vsel %vm2803_vm0, %v7149_v46, %v7151_v54  ;;  %v7148_v19 = vrot.slane %v8202_v53, 1  ;;  %v7154_v20 = vsel %vm2803_vm0, %v7151_v54, %v7153_v32 }
 0x382   : > { %v6903_v24 = vadd.f32 %v6814_v34, %v6585_v44  ;;  %v6583_v27 = vmax.f32 %v6535_v35, 0.0  ;;  %v6540_v36 = vadd.f32 %v9306_v41, %v6126_v61 }
 0x383   : > { %v6479_v8 = vpop.f32.mrf.mxu1  ;;  %v7150_v29 = vsel %vm2803_vm0, %v7148_v19, %v7149_v46 }
 0x384   : > { %v8198_v45 = vpack.c.bf16 %v6903_v24, %v6902_v56  ;;  %v6901_v58 = vadd.f32 %v6810_v5, %v6583_v27  ;;  %v6538_v0 = vadd.f32 %v6479_v8, %v6124_v50  ;;  %v6588_v23 = vmax.f32 %v6540_v36, 0.0 }
 0x385   : > { %v9307_v26 = vpop.f32.mrf.mxu1 }
 0x386   : > { %8286 = vst [vmem:[%s11458_s28 + $0xa8] sm:$0xff] %v8198_v45   ;;  %v8193_v59 = vpack.c.bf16 %v6901_v58, %v6900_v1  ;;  %v6586_v25 = vmax.f32 %v6538_v0, 0.0  ;;  %v6541_v31 = vadd.f32 %v9307_v26, %v6127_v62  ;;  %v7161_v17 = vadd.f32 %v7152_v39, %v6588_v23 }
 0x387   : > { %v6482_v2 = vpop.f32.mrf.mxu1 }
 0x388   : > { %8285 = vst [vmem:[%s11458_s28 + $0xa0] sm:$0xff] %v8193_v59   ;;  %v6904_v21 = vadd.f32 %v6813_v15, %v6586_v25  ;;  %v6589_v12 = vmax.f32 %v6541_v31, 0.0  ;;  %v6539_v6 = vadd.f32 %v6482_v2, %v6125_v40  ;;  %v7159_v57 = vadd.f32 %v7148_v19, %v6586_v25 }
 0x38a   : > { %v7817_v4 = vpack.c.bf16 %v6904_v21, %v6904_v21  ;;  %v7162_v18 = vadd.f32 %v7154_v20, %v6589_v12  ;;  %v6587_v30 = vmax.f32 %v6539_v6, 0.0  ;;  %v7818_v14 = vpack.c.bf16 %v7159_v57, %v7159_v57 }
 0x38c   : > { %v7134_v16 = vsel %vm7132_vm4, %v7817_v4, %v7133_v37  ;;  %v8207_v42 = vpack.c.bf16 %v7162_v18, %v7161_v17  ;;  %v7160_v55 = vadd.f32 %v7150_v29, %v6587_v30 }
 0x38d   : > { %7135 = vst [vmem:[%s11458_s28 + $0xb0] sm:$0xf] %v7134_v16 }
 0x38e   : > { %8287 = vst [vmem:[%s11458_s28 + $0xb8] sm:$0xff] %v8207_v42   ;;  %v7819_v15 = vpack.c.bf16 %v7160_v55, %v7160_v55 }
 0x390   : > { %7185 = vst [vmem:[%s11458_s28 + $0xb4] sm:$0xf] %v7819_v15 }
 0x394   : > { %v7182_v28 = vld [vmem:[%s11458_s28 + $0xb0] sm:$0x8] }
 0x395   : > { %v7183_v3 = vsel %vm7181_vm7, %v7818_v14, %v7182_v28 }
 0x396   : > { %7184 = vst [vmem:[%s11458_s28 + $0xb0] sm:$0x8] %v7183_v3 }
 0x397 PF: > { %s15_s20 = sadd.s32 1, %s9654_s20   ;;  %s11890_s18 = smov %s9650_s19 }
 0x398   : > { %p12_p5 = scmp.ge.s32.totalorder %s15_s20, 4   ;;  %s11891_s19 = smov %s11893_s21 }
 0x39a   :  { %14 = sbr.rel (!%p12_p5) target bundleno = 2 (0x2), region = 73 }

</bundles_post_ra>
